<compile_context>
chip_gen: v6e
topology: v6e:2x2x1
jax: 0.10.0
libtpu: 0.0.40
codegen_flags: <defaults>
</compile_context>

<pallas_src>
import functools

import jax
import jax.numpy as jnp
from jax.experimental import pallas as pl
from jax.experimental.pallas import tpu as pltpu

d_model = 768
d_ff = 3072
dropout = 0.1  # unused at inference (eval-mode dropout = identity)


def _round_up(x, m):
    return ((x + m - 1) // m) * m


# ----------------------------------------------------------------------------
# Kernels
# ----------------------------------------------------------------------------
def ffn_resident_kernel(x_ref, w1_ref, b1_ref, w2_ref, b2_ref, o_ref, acc_ref,
                        *, dff_chunk):
    """Large-M schedule: full bf16 W1/W2 VMEM-resident (single-buffered),
    grid = (M // tm,).

    d_ff is chunked inside the kernel with static slices so the f32 hidden
    never exceeds (tm, dff_chunk); b2 is folded into the accumulator init.
    x arrives in its native dtype and is cast to bf16 on the VPU.
    """
    xb = x_ref[...].astype(jnp.bfloat16)
    acc_ref[...] = jnp.broadcast_to(b2_ref[...], acc_ref.shape)  # fold b2
    dff = w1_ref.shape[1]
    for off in range(0, dff, dff_chunk):            # static slices: free views
        w1c = w1_ref[:, off:off + dff_chunk]
        b1c = b1_ref[:, off:off + dff_chunk]
        w2c = w2_ref[off:off + dff_chunk, :]
        h = jnp.dot(xb, w1c, preferred_element_type=jnp.float32)
        h = jnp.maximum(h + b1c, 0.0)
        acc_ref[...] += jnp.dot(h.astype(jnp.bfloat16), w2c,
                                preferred_element_type=jnp.float32)
    o_ref[...] = acc_ref[...].astype(o_ref.dtype)


def ffn_stream_kernel(x_ref, w1_ref, b1_ref, w2_ref, b2_ref, o_ref, acc_ref):
    """Small-M (decode-like) schedule: grid = (M // tm, d_ff // tf); d_ff is a
    streamed reduction for the second matmul.  Partial products accumulate in
    an f32 VMEM scratch; b2 is folded into the accumulator init; the result is
    written on the last d_ff step."""
    j = pl.program_id(1)

    @pl.when(j == 0)
    def _():
        acc_ref[...] = jnp.broadcast_to(b2_ref[...], acc_ref.shape)

    xb = x_ref[...].astype(jnp.bfloat16)
    # hidden tile: relu(x @ W1[:, j*tf:(j+1)*tf] + b1[j*tf:(j+1)*tf])
    h = jnp.dot(xb, w1_ref[...], preferred_element_type=jnp.float32)
    h = jnp.maximum(h + b1_ref[...], 0.0)
    # partial second matmul: h_tile @ W2[j*tf:(j+1)*tf, :]
    acc_ref[...] += jnp.dot(h.astype(jnp.bfloat16), w2_ref[...],
                            preferred_element_type=jnp.float32)

    @pl.when(j == pl.num_programs(1) - 1)
    def _():
        o_ref[...] = acc_ref[...].astype(o_ref.dtype)


# ----------------------------------------------------------------------------
# Parameter prep (one-time, NOT per forward call)
# ----------------------------------------------------------------------------
def prepare_ffn_params(w1, b1, w2, b2):
    """Cast weights to bf16 (MXU fast path, half the weight HBM traffic) and
    biases to f32 row vectors ONCE.  Cache and reuse the result."""
    w1b = w1 if w1.dtype == jnp.bfloat16 else w1.astype(jnp.bfloat16)
    w2b = w2 if w2.dtype == jnp.bfloat16 else w2.astype(jnp.bfloat16)
    b1f = jnp.asarray(b1, jnp.float32).reshape(1, -1)
    b2f = jnp.asarray(b2, jnp.float32).reshape(1, -1)
    return w1b, b1f, w2b, b2f


# ----------------------------------------------------------------------------
# Tile selection
# ----------------------------------------------------------------------------
def _pick_tm(M):
    """Row tile.  Tiny M -> single tile (streaming schedule).  Otherwise split
    into >= 2 row tiles (both v7x TensorCores get work) with tm <= 512."""
    if M < 128:
        return max(8, _round_up(M, 8))
    n_tiles = max(2, -(-M // 512))
    return max(8, _round_up(-(-M // n_tiles), 8))


def _pick_tf(dff):
    """d_ff slab for the streaming schedule (2.25 MiB bf16 slab pair at 768)."""
    for cand in (768, 1024, 512, 384, 256, 128):
        if dff % cand == 0:
            return cand
    return dff


def _pick_dff_chunk(dff):
    """In-kernel d_ff chunk for the resident schedule."""
    for cand in (768, 512, 384, 256, 128):
        if dff % cand == 0:
            return cand
    return dff


# ----------------------------------------------------------------------------
# Wrapper
# ----------------------------------------------------------------------------
def position_wise_feed_forward(x, w1, b1, w2, b2, *, tm=None, tf=None,
                               dff_chunk=None):
    """x: [batch, seq, d_model] -> [batch, seq, d_model].

    Pass parameters through prepare_ffn_params() once; raw f32 weights are
    cast here only as a fallback."""
    batch, seq, dm = x.shape
    dff = w1.shape[1]
    M = batch * seq
    out_dtype = x.dtype
    out_bytes = jnp.dtype(out_dtype).itemsize
    x_bytes = jnp.dtype(x.dtype).itemsize

    # Fallback casts (no-ops when prepare_ffn_params was used).
    if w1.dtype != jnp.bfloat16:
        w1 = w1.astype(jnp.bfloat16)
    if w2.dtype != jnp.bfloat16:
        w2 = w2.astype(jnp.bfloat16)
    b1 = jnp.asarray(b1, jnp.float32).reshape(1, dff)
    b2 = jnp.asarray(b2, jnp.float32).reshape(1, dm)

    if tm is None:
        tm = _pick_tm(M)
    tm = max(8, _round_up(min(int(tm), 512), 8))

    # Pad rows so M is a multiple of tm (padded rows are sliced off at the end).
    M_pad = _round_up(M, tm)
    x2d = x.reshape(M, dm)
    if M_pad != M:
        x2d = jnp.pad(x2d, ((0, M_pad - M), (0, 0)))

    n_row_tiles = M_pad // tm
    use_resident = n_row_tiles >= 2  # large-M: keep full weights in VMEM

    if use_resident:
        if dff_chunk is None:
            dff_chunk = _pick_dff_chunk(dff)
        kernel = functools.partial(ffn_resident_kernel, dff_chunk=dff_chunk)
        # VMEM budget: double-buffered x/out tiles + SINGLE-buffered bf16
        # weights + biases + f32 hidden chunk + f32 accumulator scratch.
        vmem_bytes = (2 * tm * dm * x_bytes
                      + 2 * tm * dm * out_bytes
                      + (dm * dff + dff * dm) * 2
                      + (dff + dm) * 4
                      + tm * dff_chunk * 4
                      + tm * dm * 4)
        out2d = pl.pallas_call(
            kernel,
            out_shape=jax.ShapeDtypeStruct((M_pad, dm), out_dtype),
            grid_spec=pltpu.PrefetchScalarGridSpec(
                num_scalar_prefetch=0,
                grid=(n_row_tiles,),
                in_specs=[
                    pl.BlockSpec((tm, dm), lambda i: (i, 0)),      # x rows
                    pl.BlockSpec((dm, dff), lambda i: (0, 0),
                                 pipeline_mode=pl.Buffered(1)),    # W1 resident
                    pl.BlockSpec((1, dff), lambda i: (0, 0),
                                 pipeline_mode=pl.Buffered(1)),    # b1
                    pl.BlockSpec((dff, dm), lambda i: (0, 0),
                                 pipeline_mode=pl.Buffered(1)),    # W2 resident
                    pl.BlockSpec((1, dm), lambda i: (0, 0),
                                 pipeline_mode=pl.Buffered(1)),    # b2
                ],
                out_specs=pl.BlockSpec((tm, dm), lambda i: (i, 0)),
                scratch_shapes=[pltpu.VMEM((tm, dm), jnp.float32)],
            ),
            compiler_params=pltpu.CompilerParams(
                dimension_semantics=("parallel",),
                vmem_limit_bytes=int(vmem_bytes) + (8 << 20)),
        )(x2d, w1, b1, w2, b2)
    else:
        if tf is None:
            tf = _pick_tf(dff)
        assert dff % tf == 0
        vmem_bytes = (2 * tm * dm * x_bytes                  # x tiles
                      + 2 * tm * dm * out_bytes              # out tiles
                      + 2 * (dm * tf + tf * dm) * 2          # W1/W2 slabs (bf16)
                      + 2 * (tf + dm) * 4                    # bias slabs
                      + tm * tf * 4                          # hidden intermediate
                      + tm * dm * 4)                         # acc scratch
        out2d = pl.pallas_call(
            ffn_stream_kernel,
            out_shape=jax.ShapeDtypeStruct((M_pad, dm), out_dtype),
            grid_spec=pltpu.PrefetchScalarGridSpec(
                num_scalar_prefetch=0,
                grid=(n_row_tiles, dff // tf),
                in_specs=[
                    pl.BlockSpec((tm, dm), lambda i, j: (i, 0)),   # x rows
                    pl.BlockSpec((dm, tf), lambda i, j: (0, j)),   # W1 column slab
                    pl.BlockSpec((1, tf), lambda i, j: (0, j)),    # b1 slab
                    pl.BlockSpec((tf, dm), lambda i, j: (j, 0)),   # W2 row slab
                    pl.BlockSpec((1, dm), lambda i, j: (0, 0)),    # b2
                ],
                out_specs=pl.BlockSpec((tm, dm), lambda i, j: (i, 0)),
                scratch_shapes=[pltpu.VMEM((tm, dm), jnp.float32)],
            ),
            compiler_params=pltpu.CompilerParams(
                dimension_semantics=("parallel", "arbitrary"),
                vmem_limit_bytes=int(vmem_bytes) + (8 << 20)),
        )(x2d, w1, b1, w2, b2)

    if M_pad != M:
        out2d = out2d[:M]
    return out2d.reshape(batch, seq, dm)


def init_params(key, d_model, d_ff, dtype=jnp.float32):
    """Deterministic init mimicking nn.Linear's U(-1/sqrt(fan_in), +...)."""
    k1, k2, k3, k4 = jax.random.split(key, 4)
    bnd1 = 1.0 / (d_model ** 0.5)
    bnd2 = 1.0 / (d_ff ** 0.5)
    # stored as [in_features, out_features] (transpose of torch layout)
    w1 = jax.random.uniform(k1, (d_model, d_ff), dtype, -bnd1, bnd1)
    b1 = jax.random.uniform(k2, (1, d_ff), dtype, -bnd1, bnd1)
    w2 = jax.random.uniform(k3, (d_ff, d_model), dtype, -bnd2, bnd2)
    b2 = jax.random.uniform(k4, (1, d_model), dtype, -bnd2, bnd2)
    return w1, b1, w2, b2


if __name__ == "__main__":
    key = jax.random.PRNGKey(0)
    kx, kp = jax.random.split(key)

    w1f, b1f, w2f, b2f = init_params(kp, d_model, d_ff)
    # One-time parameter prep (bf16 weights) -- reused across all forward calls.
    w1, b1, w2, b2 = prepare_ffn_params(w1f, b1f, w2f, b2f)

    def reference_bf16(x):
        """Same math as the kernel (bf16 operands, f32 accumulation)."""
        x2d = x.reshape(-1, d_model)
        h = jnp.maximum(
            jnp.dot(x2d.astype(jnp.bfloat16), w1,
                    preferred_element_type=jnp.float32) + b1, 0.0)
        o = jnp.dot(h.astype(jnp.bfloat16), w2,
                    preferred_element_type=jnp.float32) + b2
        return o.reshape(x.shape)

    def reference_f32(x):
        x2d = x.reshape(-1, d_model)
        h = jnp.maximum(x2d @ w1f + b1f, 0.0)
        return (h @ w2f + b2f).reshape(x.shape)

    # --- small (decode-like) M=16: exercises the weight-streaming schedule ---
    x_small = jax.random.normal(kx, (2, 8, d_model), jnp.float32)
    out_small = jax.block_until_ready(
        position_wise_feed_forward(x_small, w1, b1, w2, b2))
    assert out_small.shape == x_small.shape
    assert jnp.allclose(out_small, reference_bf16(x_small), atol=2e-3, rtol=2e-3), \
        "small-M mismatch vs bf16 reference"
    assert jnp.allclose(out_small, reference_f32(x_small), atol=5e-2, rtol=5e-2), \
        "small-M mismatch vs f32 reference"

    # --- larger M=512: exercises the resident-weight schedule (2 row tiles) ---
    x_large = jax.random.normal(kx, (4, 128, d_model), jnp.float32)
    out_large = jax.block_until_ready(
        position_wise_feed_forward(x_large, w1, b1, w2, b2))
    assert out_large.shape == x_large.shape
    assert jnp.allclose(out_large, reference_bf16(x_large), atol=2e-3, rtol=2e-3), \
        "large-M mismatch vs bf16 reference"

    print("KERNEL_OK")
</pallas_src>

<mosaic_0001>
module attributes {stable_mosaic.version = 11 : i64} {
  func.func @ffn_stream_kernel(%arg0: i32, %arg1: i32, %arg2: memref<16x768xf32, #tpu.memory_space<vmem>>, %arg3: memref<768x768xbf16, #tpu.memory_space<vmem>>, %arg4: memref<1x768xf32, #tpu.memory_space<vmem>>, %arg5: memref<768x768xbf16, #tpu.memory_space<vmem>>, %arg6: memref<1x768xf32, #tpu.memory_space<vmem>>, %arg7: memref<16x768xf32, #tpu.memory_space<vmem>>, %arg8: memref<16x768xf32, #tpu.memory_space<vmem>>) attributes {dimension_semantics = [#tpu.dimension_semantics<parallel>, #tpu.dimension_semantics<arbitrary>], iteration_bounds = array<i64: 1, 4>, scalar_prefetch = 0 : i64, scratch_operands = 1 : i64, tpu.core_type = #tpu.core_type<tc>, window_params = [{transform_indices = @transform_0, window_bounds = array<i64: 16, 768>}, {transform_indices = @transform_1, window_bounds = array<i64: 768, 768>}, {transform_indices = @transform_2, window_bounds = array<i64: 1, 768>}, {transform_indices = @transform_3, window_bounds = array<i64: 768, 768>}, {pipeline_mode = #tpu.pipeline_mode<synchronous>, transform_indices = @transform_4, window_bounds = array<i64: 1, 768>}, {transform_indices = @transform_5, window_bounds = array<i64: 16, 768>}]} {
    %c0_i32 = arith.constant 0 : i32
    %0 = arith.cmpi eq, %arg1, %c0_i32 : i32
    %1 = arith.extui %0 : i1 to i32
    %c0_i32_0 = arith.constant 0 : i32
    %2 = arith.cmpi ne, %1, %c0_i32_0 : i32
    scf.if %2 {
      %c0_15 = arith.constant 0 : index
      %c0_16 = arith.constant 0 : index
      %21 = vector.load %arg6[%c0_15, %c0_16] : memref<1x768xf32, #tpu.memory_space<vmem>>, vector<1x768xf32>
      %22 = vector.shape_cast %21 : vector<1x768xf32> to vector<1x768xf32>
      %23 = vector.broadcast %22 : vector<1x768xf32> to vector<16x768xf32>
      %c0_17 = arith.constant 0 : index
      %c0_18 = arith.constant 0 : index
      %24 = vector.load %arg8[%c0_17, %c0_18] : memref<16x768xf32, #tpu.memory_space<vmem>>, vector<16x768xf32>
      tpu.vector_store %arg8[%c0_17, %c0_18], %23 {strides = array<i32>} : memref<16x768xf32, #tpu.memory_space<vmem>>, vector<16x768xf32>,
    } else {
    }
    %c0 = arith.constant 0 : index
    %c0_1 = arith.constant 0 : index
    %3 = vector.load %arg2[%c0, %c0_1] : memref<16x768xf32, #tpu.memory_space<vmem>>, vector<16x768xf32>
    %4 = arith.truncf %3 : vector<16x768xf32> to vector<16x768xbf16>
    %c0_2 = arith.constant 0 : index
    %c0_3 = arith.constant 0 : index
    %5 = vector.load %arg3[%c0_2, %c0_3] : memref<768x768xbf16, #tpu.memory_space<vmem>>, vector<768x768xbf16>
    %cst = arith.constant dense<0.000000e+00> : vector<16x768xf32>
    %6 = tpu.matmul %4, %5, %cst {dimension_numbers = #tpu.dot_dimension_numbers<[1], [0], [0], [1], [0, 0, 1, 1], [], []>} : vector<16x768xbf16>, vector<768x768xbf16>, vector<16x768xf32> -> vector<16x768xf32>
    %c0_4 = arith.constant 0 : index
    %c0_5 = arith.constant 0 : index
    %7 = vector.load %arg4[%c0_4, %c0_5] : memref<1x768xf32, #tpu.memory_space<vmem>>, vector<1x768xf32>
    %8 = vector.broadcast %7 : vector<1x768xf32> to vector<16x768xf32>
    %9 = arith.addf %6, %8 : vector<16x768xf32>
    %cst_6 = arith.constant 0.000000e+00 : f32
    %10 = vector.broadcast %cst_6 : f32 to vector<16x768xf32>
    %11 = arith.maximumf %9, %10 : vector<16x768xf32>
    %c0_7 = arith.constant 0 : index
    %c0_8 = arith.constant 0 : index
    %12 = vector.load %arg8[%c0_7, %c0_8] : memref<16x768xf32, #tpu.memory_space<vmem>>, vector<16x768xf32>
    %13 = arith.truncf %11 : vector<16x768xf32> to vector<16x768xbf16>
    %c0_9 = arith.constant 0 : index
    %c0_10 = arith.constant 0 : index
    %14 = vector.load %arg5[%c0_9, %c0_10] : memref<768x768xbf16, #tpu.memory_space<vmem>>, vector<768x768xbf16>
    %cst_11 = arith.constant dense<0.000000e+00> : vector<16x768xf32>
    %15 = tpu.matmul %13, %14, %cst_11 {dimension_numbers = #tpu.dot_dimension_numbers<[1], [0], [0], [1], [0, 0, 1, 1], [], []>} : vector<16x768xbf16>, vector<768x768xbf16>, vector<16x768xf32> -> vector<16x768xf32>
    %16 = arith.addf %12, %15 : vector<16x768xf32>
    %c0_12 = arith.constant 0 : index
    %c0_13 = arith.constant 0 : index
    %17 = vector.load %arg8[%c0_12, %c0_13] : memref<16x768xf32, #tpu.memory_space<vmem>>, vector<16x768xf32>
    tpu.vector_store %arg8[%c0_12, %c0_13], %16 {strides = array<i32>} : memref<16x768xf32, #tpu.memory_space<vmem>>, vector<16x768xf32>,
    %c3_i32 = arith.constant 3 : i32
    %18 = arith.cmpi eq, %arg1, %c3_i32 : i32
    %19 = arith.extui %18 : i1 to i32
    %c0_i32_14 = arith.constant 0 : i32
    %20 = arith.cmpi ne, %19, %c0_i32_14 : i32
    scf.if %20 {
      %c0_15 = arith.constant 0 : index
      %c0_16 = arith.constant 0 : index
      %21 = vector.load %arg8[%c0_15, %c0_16] : memref<16x768xf32, #tpu.memory_space<vmem>>, vector<16x768xf32>
      %c0_17 = arith.constant 0 : index
      %c0_18 = arith.constant 0 : index
      %22 = vector.load %arg7[%c0_17, %c0_18] : memref<16x768xf32, #tpu.memory_space<vmem>>, vector<16x768xf32>
      tpu.vector_store %arg7[%c0_17, %c0_18], %21 {strides = array<i32>} : memref<16x768xf32, #tpu.memory_space<vmem>>, vector<16x768xf32>,
    } else {
    }
    return
  }
  func.func @transform_0(%arg0: i32, %arg1: i32) -> (i32, i32) {
    %c0_i32 = arith.constant 0 : i32
    %c0_i32_0 = arith.constant 0 : i32
    return %arg0, %c0_i32 : i32, i32
  }
  func.func @transform_1(%arg0: i32, %arg1: i32) -> (i32, i32) {
    %c0_i32 = arith.constant 0 : i32
    %c0_i32_0 = arith.constant 0 : i32
    return %c0_i32, %arg1 : i32, i32
  }
  func.func @transform_2(%arg0: i32, %arg1: i32) -> (i32, i32) {
    %c0_i32 = arith.constant 0 : i32
    %c0_i32_0 = arith.constant 0 : i32
    return %c0_i32, %arg1 : i32, i32
  }
  func.func @transform_3(%arg0: i32, %arg1: i32) -> (i32, i32) {
    %c0_i32 = arith.constant 0 : i32
    %c0_i32_0 = arith.constant 0 : i32
    return %arg1, %c0_i32 : i32, i32
  }
  func.func @transform_4(%arg0: i32, %arg1: i32) -> (i32, i32) {
    %c0_i32 = arith.constant 0 : i32
    %c0_i32_0 = arith.constant 0 : i32
    %c0_i32_1 = arith.constant 0 : i32
    return %c0_i32, %c0_i32_0 : i32, i32
  }
  func.func @transform_5(%arg0: i32, %arg1: i32) -> (i32, i32) {
    %c0_i32 = arith.constant 0 : i32
    %c0_i32_0 = arith.constant 0 : i32
    return %arg0, %c0_i32 : i32, i32
  }
}

</mosaic_0001>

<bundles_post_ra>
// kernel: tpu_custom_call.1
= control target key start
LH: loop header
LB: loop body
LE: loop exit
PB: predicated region body
PF: predicated region fallthrough
CT: control target
= control target key end

     0   :  { %s7610_s0 = inlined_call_operand.hbm [shape: f32[16,768], index: 0, kind: input, shape index: {}]   ;;  %s7611_s1 = inlined_call_operand.hbm [shape: bf16[768,3072], index: 1, kind: input, shape index: {}]   ;;  %s7612_s2 = inlined_call_operand.hbm [shape: f32[1,3072], index: 2, kind: input, shape index: {}]   ;;  %s7613_s3 = inlined_call_operand.hbm [shape: bf16[3072,768], index: 3, kind: input, shape index: {}]   ;;  %s7614_s4 = inlined_call_operand.hbm [shape: f32[1,768], index: 4, kind: input, shape index: {}]   ;;  %s7615_s5 = inlined_call_operand.hbm [shape: f32[16,768], index: 5, kind: output, shape index: {}]  }
   0x1   :  { %7621 = sst [smem:[#allocation20_spill]] %s7611_s1 }
   0x2   :  { %7622 = sst [smem:[#allocation21_spill]] %s7614_s4 }
   0x3   :  { %10 = vsyncpa [#allocation4], 0 }
   0x4   :  { %11 = vsyncpa [#allocation7], 0 }
   0x5   :  { %13 = vsyncpa [#allocation7 + $0x1], 0 }
   0x6   :  { %14 = vsyncpa [#allocation10], 0 }
   0x7   :  { %16 = vsyncpa [#allocation10 + $0x1], 0 }
   0x8   :  { %17 = vsyncpa [#allocation5], 0  ;;  %s6752_s18 = smov 0   ;;  %s6754_s19 = smov 0  }
   0x9   :  { %s6756_s20 = smov 0   ;;  %s6758_s21 = smov 0  }
   0xa   :  { %s6760_s22 = smov 0   ;;  %s6762_s23 = smov 0  }
   0xb LB: > { %s6781_s24 = sadd.s32 4294967295, %s6707_s23   ;;  %s68_s25 = sadd.s32 1, %s6695_s20  ;;  %s6707_s23 = sphi %s6762_s23, %s23_s23   ;;  %s6703_s22 = sphi %s6760_s22, %s7644_s22   ;;  %s6699_s21 = sphi %s6758_s21, %s7643_s21   ;;  %s6695_s20 = sphi %s6756_s20, %s7642_s20   ;;  %s6691_s19 = sphi %s6754_s19, %s7641_s19   ;;  %s6687_s18 = sphi %s6752_s18, %s7640_s18  }
   0xc   : > { %p75_p0 = scmp.ne.s32.totalorder %s6695_s20, %s6691_s19  ;;  %p76_p1 = scmp.eq.s32.totalorder %s6707_s23, 0 }
   0xd   : > { %p81_p2 = scmp.ne.s32.totalorder %s6691_s19, %s6687_s18  ;;  %p7616_p3 = scmp.eq.s32.totalorder %s6781_s24, 0 }
   0xe   : > { %p77_p4 = por %p76_p1, %p75_p0  ;;  %p4916_p5 = scmp.ge.s32.totalorder %s6707_s23, 1 }
   0xf   : > { %p6792_p6 = por %p7616_p3, %p81_p2  ;;  %p191_p7 = scmp.lt.s32.totalorder %s6707_s23, 5 }
  0x10   : > { %s6709_s28 = smov [#allocation11]   ;;  %p5553_p10 = scmp.lt.s32.totalorder %s6707_s23, 4 }
  0x11   : > { %p6797_p8 = pnand %p4916_p5, %p191_p7  ;;  %s221_s29 = sshll.u32 %s6709_s28, 4  ;;  %s222_s29 = int_to_ptr.vmem [resolvable:$true] %s221_s29 }
  0x12   : > { %s7617_s30 = sand.u32 1, %s6707_s23   ;;  %p6811_p12 = pnand %p5553_p10, %p77_p4 }
  0x13   : > { %p5534_p9 = pneg %p6797_p8  ;;  %s6492_s8 = scalar_lea.vmem %s222_s29, 96 }
  0x14   : > { %p6493_p0 = scmp.ne.s32.totalorder %s222_s29, %s6492_s8  ;;  %p6500_p5 = scmp.lt.s32.totalorder %s222_s29, %s222_s29 }
  0x15   : > { %p6807_p11 = pnand %p5534_p9, %p7616_p3  ;;  %p6501_p7 = scmp.lt.s32.totalorder %s6492_s8, %s6492_s8 }
  0x17   : > { %p6483_p13 = pneg %p6807_p11  ;;  %p6502_p9 = por %p6501_p7, %p6500_p5 }
  0x19   : > { %p6495_p1 = pnand %p6493_p0, %p6483_p13 }
  0x1b   : > { %p6496_p2 = pneg %p6495_p1 }
  0x1d   : > { %p6503_p3 = pnand %p6502_p9, %p6496_p2 }
  0x1f   : > { %6506 = shalt.err (!%p6503_p3)
}
  0x20   : > { %s7627_s4 = sld [smem:[#allocation21_spill]]  ;;  %s32_s11 = sadd.s32 1, %s6703_s22 }
  0x21   : > { %s234_s12 = sand.u32 1, %s6695_s20   ;;  %p33_p4 = scmp.ge.s32.totalorder %s32_s11, 4 }
  0x22   : > { %s6829_s13 = smul.u32 2304, %s234_s12  ;;  %s7629_s1 = sld [smem:[#allocation20_spill]] }
  0x23   : > { %s5508_s14 = smul.u32 384, %s6703_s22  ;;  %s7646_s11 = smov (%p33_p4, %s32_s11), 0 }
  0x24   : > { %7628 = sst [smem:[#allocation18_spill]] %s7646_s11  ;;  %s65_s18 = ssub.s32 %s6703_s22, %s7646_s11 }
  0x25   : > { %s236_s28 = scalar_lea.vmem [#allocation6], %s6829_s13  ;;  %p66_p3 = scmp.eq.s32.totalorder %s65_s18, 0 }
  0x26   : > { %5540 = dma.hbm_to_vmem [thread:$0]  (!%p6807_p11), %s7627_s4, 96, %s222_s29, [#allocation10]  }
  0x27   : > { %s243_s29 = sshll.u32 %s236_s28, 4  ;;  %s6849_s9 = scalar_lea.sflag [#allocation7], %s7617_s30  ;;  %s244_s29 = int_to_ptr.vmem [resolvable:$true] %s243_s29 }
  0x28   : > { %s6837_s17 = scalar_lea.hbm %s7629_s1, %s5508_s14  ;;  %p6509_p10 = pneg %p6811_p12 }
  0x29   : > { %s6845_s8 = scalar_select %p66_p3, %s6695_s20, %s68_s25  }
  0x2a   : > { %s6520_s10 = scalar_lea.vmem %s244_s29, 36864  ;;  %s6710_s14 = smov [#allocation6]  }
  0x2b   : > { %7630 = sst [smem:[#allocation19_spill]] %s6845_s8  ;;  %p6521_p0 = scmp.ne.s32.totalorder %s244_s29, %s6520_s10 }
  0x2c   : > { %s6525_s15 = sshll.u32 %s6710_s14, 4  ;;  %s6526_s15 = int_to_ptr.vmem [resolvable:$false] %s6525_s15 }
  0x2d   : > { %p6523_p1 = pnand %p6521_p0, %p6509_p10  ;;  %s6527_s16 = scalar_lea.vmem %s6526_s15, 73728 }
  0x2e   : > { %p6528_p5 = scmp.lt.s32.totalorder %s244_s29, %s6526_s15  ;;  %p6529_p7 = scmp.lt.s32.totalorder %s6527_s16, %s6520_s10 }
  0x2f   : > { %p6524_p2 = pneg %p6523_p1 }
  0x30   : > { %p6530_p9 = por %p6529_p7, %p6528_p5 }
  0x32   : > { %p6531_p4 = pnand %p6530_p9, %p6524_p2 }
  0x34   : > { %6534 = shalt.err (!%p6531_p4)
}
  0x35   : > { %s6711_s25 = smov 1536   ;;  %s7618_s18 = smov 384  }
  0x36   : > { %s7619_s28 = smov 24   ;;  %s6714_s14 = smov [#allocation3]  }
  0x37   : > { %5544 = dma.hbm_to_vmem [thread:$0]  (!%p6811_p12), %s6837_s17, 36864, %s244_s29, %s6849_s9, %s6711_s25, %s7618_s18, %s7619_s28  }
  0x38   : > { %s207_s30 = sshll.u32 %s6714_s14, 4  ;;  %s5511_s10 = smul.u32 6, %s234_s12  ;;  %s208_s30 = int_to_ptr.vmem [resolvable:$true] %s207_s30 }
  0x39   : > { %s6546_s15 = scalar_lea.vmem %s208_s30, 1536  ;;  %p6554_p2 = scmp.lt.s32.totalorder %s208_s30, %s208_s30 }
  0x3a   : > { %p6547_p3 = scmp.ne.s32.totalorder %s208_s30, %s6546_s15  ;;  %p6555_p5 = scmp.lt.s32.totalorder %s6546_s15, %s6546_s15 }
  0x3c   : > { %p6549_p0 = pnand %p6547_p3, %p6483_p13  ;;  %p6556_p7 = por %p6555_p5, %p6554_p2 }
  0x3e   : > { %p6550_p1 = pneg %p6549_p0 }
  0x40   : > { %p6557_p9 = pnand %p6556_p7, %p6550_p1 }
  0x42   : > { %6560 = shalt.err (!%p6557_p9)
}
  0x43   : > { %s6715_s16 = smov 768   ;;  %s6716_s17 = smov 48  }
  0x44   : > { %5537 = dma.hbm_to_vmem [thread:$0]  (!%p6807_p11), %s7610_s0, 1536, %s208_s30, [#allocation4], %s6715_s16, %s6715_s16, %s6716_s17  }
  0x45   : > { %s5509_s12 = smul.u32 96, %s6703_s22  ;;  %s257_s14 = scalar_lea.vmem [#allocation8], %s5511_s10 }
  0x46   : > { %s265_s18 = sshll.u32 %s257_s14, 4  ;;  %s6717_s11 = smov [#allocation8]   ;;  %s266_s18 = int_to_ptr.vmem [resolvable:$true] %s265_s18 }
  0x47   : > { %s263_s15 = scalar_lea.hbm %s7612_s2, %s5509_s12  ;;  %s6574_s4 = scalar_lea.vmem %s266_s18, 96 }
  0x48   : > { %p6575_p13 = scmp.ne.s32.totalorder %s266_s18, %s6574_s4  ;;  %s6579_s6 = sshll.u32 %s6717_s11, 4  ;;  %s6580_s6 = int_to_ptr.vmem [resolvable:$false] %s6579_s6 }
  0x49   : > { %s6581_s8 = scalar_lea.vmem %s6580_s6, 192  ;;  %p6582_p0 = scmp.lt.s32.totalorder %s266_s18, %s6580_s6 }
  0x4a   : > { %p6577_p4 = pnand %p6575_p13, %p6509_p10  ;;  %p6583_p11 = scmp.lt.s32.totalorder %s6581_s8, %s6574_s4 }
  0x4c   : > { %p6578_p3 = pneg %p6577_p4  ;;  %p6584_p1 = por %p6583_p11, %p6582_p0 }
  0x4e   : > { %p6585_p2 = pnand %p6584_p1, %p6578_p3 }
  0x50   : > { %6588 = shalt.err (!%p6585_p2)
}
  0x51   : > { %5547 = dma.hbm_to_vmem [thread:$0]  (!%p6811_p12), %s263_s15, 96, %s266_s18, %s6849_s9  }
  0x52   : > { %s5554_s1 = smul.u32 36864, %s6703_s22  ;;  %s276_s30 = scalar_lea.vmem [#allocation9], %s6829_s13 }
  0x53   : > { %s284_s28 = sshll.u32 %s276_s30, 4  ;;  %s7631_s4 = sand.u32 1, %s6707_s23   ;;  %s285_s28 = int_to_ptr.vmem [resolvable:$true] %s284_s28 }
  0x54   : > { %s283_s16 = scalar_lea.hbm %s7613_s3, %s5554_s1  ;;  %s273_s8 = scalar_lea.sflag [#allocation10], %s7631_s4 }
  0x55   : > { %s6602_s17 = scalar_lea.vmem %s285_s28, 36864  ;;  %s6718_s29 = smov [#allocation9]  }
  0x56   : > { %p6603_p5 = scmp.ne.s32.totalorder %s285_s28, %s6602_s17  ;;  %s6607_s25 = sshll.u32 %s6718_s29, 4  ;;  %s6608_s25 = int_to_ptr.vmem [resolvable:$false] %s6607_s25 }
  0x57   : > { %s6609_s9 = scalar_lea.vmem %s6608_s25, 73728  ;;  %p6610_p13 = scmp.lt.s32.totalorder %s285_s28, %s6608_s25 }
  0x58   : > { %p6605_p7 = pnand %p6603_p5, %p6509_p10  ;;  %p6611_p4 = scmp.lt.s32.totalorder %s6609_s9, %s6602_s17 }
  0x5a   : > { %p6606_p9 = pneg %p6605_p7  ;;  %p6612_p3 = por %p6611_p4, %p6610_p13 }
  0x5c   : > { %p6613_p0 = pnand %p6612_p3, %p6606_p9 }
  0x5e   : > { %6616 = shalt.err (!%p6613_p0)
}
  0x5f   : > { %s7632_s13 = smov 24   ;;  %s7633_s18 = smov 384  }
  0x60   : > { %5550 = dma.hbm_to_vmem [thread:$0]  (!%p6811_p12), %s283_s16, 36864, %s285_s28, %s273_s8, %s7633_s18, %s7633_s18, %s7632_s13  }
  0x61   : > { %296 = sbr.rel (%p6797_p8) target bundleno = 1083 (0x43b), region = 40  ;;  %p7634_p10 = scmp.eq.s32.totalorder (!%p6797_p8), %s6781_s24, 0 }
  0x66   : > { %6666 = dma.done.wait (%p7634_p10), [#allocation4], 1536   ;;  %p7635_p11 = pmov %p7634_p10 }
  0x67   : > { %s302_s12 = sand.u32 1, %s6781_s24   ;;  %s304_s14 = sand.u32 1, %s6691_s19  }
  0x68   : > { %6668 = vsyncadd (%p7635_p11), [#allocation4], 4294965760  ;;  %s5514_s15 = smul.u32 2304, %s304_s14  ;;  %s303_s7 = scalar_lea.sflag [#allocation7], %s302_s12 }
  0x6a   : > { %s6905_s6 = scalar_lea.vmem [#allocation6], %s5514_s15 }
  0x6b   : > { %6670 = dma.done.wait (%p6792_p6), %s303_s7, 36960  }
  0x6c   : > { %6672 = vsyncadd (%p6792_p6), %s303_s7, 4294930336  ;;  %s6911_s27 = smul.u32 6, %s304_s14  ;;  %s321_s30 = scalar_lea.sflag [#allocation10], %s302_s12 }
  0x6d   : > { %s6914_s28 = scalar_lea.vmem [#allocation9], %s5514_s15 }
  0x6e   : > { %s315_s1 = scalar_lea.vmem [#allocation8], %s6911_s27 }
  0x6f   : > { %6674 = dma.done.wait (%p6792_p6), %s321_s30, 36864  }
  0x70   : > { %6676 = vsyncadd (%p6792_p6), %s321_s30, 4294930432  ;;  %p7636_p8 = pmov %p7634_p10 }
  0x72   : > { %6678 = dma.done.wait (%p7636_p8), [#allocation10], 96   ;;  %p7637_p12 = pmov %p7636_p8 }
  0x73   : > { %p4926_p1 = scmp.ne.s32.totalorder %s6699_s21, 0 }
  0x74   : > { %6680 = vsyncadd (%p7637_p12), [#allocation10], 4294967200 }
  0x75   : > { %368 = sbr.rel (%p4926_p1) target bundleno = 136 (0x88), region = 64 }
  0x7a   : > { %v371_v0 = vlaneseq  ;;  %v369_v2 = vld [vmem:[#allocation11] sm:$0x3f] }
  0x7c   : > { %v372_v1 = vshrl.u32 %v371_v0, 7 }
  0x7e   : > { %v373_v3 = vsub.s32 0, %v372_v1  ;;  %v377_v4 = vsub.s32 1, %v372_v1  ;;  %v381_v5 = vsub.s32 2, %v372_v1  ;;  %v385_v6 = vsub.s32 3, %v372_v1 }
  0x7f   : > { %v389_v7 = vsub.s32 4, %v372_v1  ;;  %v393_v8 = vsub.s32 5, %v372_v1 }
  0x80   : > { %v374_v9 = vrot.slane %v369_v2, %v373_v3  ;;  %v378_v10 = vrot.slane %v369_v2, %v377_v4  ;;  %v382_v11 = vrot.slane %v369_v2, %v381_v5  ;;  %v386_v12 = vrot.slane %v369_v2, %v385_v6 }
  0x81   : > { %v390_v13 = vrot.slane %v369_v2, %v389_v7  ;;  %v394_v14 = vrot.slane %v369_v2, %v393_v8 }
  0x82   : > { %401 = vst [vmem:[#allocation2 + $0x30] sm:$0xff] %v374_v9  ;;  %407 = vst [vmem:[#allocation2 + $0x8] sm:$0xff] %v374_v9 }
  0x83   : > { %402 = vst [vmem:[#allocation2] sm:$0xff] %v378_v10  ;;  %408 = vst [vmem:[#allocation2 + $0x38] sm:$0xff] %v378_v10 }
  0x84   : > { %403 = vst [vmem:[#allocation2 + $0x58] sm:$0xff] %v382_v11  ;;  %409 = vst [vmem:[#allocation2 + $0x28] sm:$0xff] %v382_v11 }
  0x85   : > { %404 = vst [vmem:[#allocation2 + $0x18] sm:$0xff] %v386_v12  ;;  %410 = vst [vmem:[#allocation2 + $0x48] sm:$0xff] %v386_v12 }
  0x86   : > { %405 = vst [vmem:[#allocation2 + $0x50] sm:$0xff] %v390_v13  ;;  %411 = vst [vmem:[#allocation2 + $0x10] sm:$0xff] %v390_v13 }
  0x87   : > { %406 = vst [vmem:[#allocation2 + $0x20] sm:$0xff] %v394_v14  ;;  %412 = vst [vmem:[#allocation2 + $0x40] sm:$0xff] %v394_v14 }
  0x88 PF: > { %v5617_v15 = vld [vmem:[%s6905_s6 + $0x154] ss:$24 sps:$4 sm:$0xff]   ;;  %v5619_v16 = vld [vmem:[%s6905_s6 + $0x150] ss:$24 sps:$4 sm:$0xff]   ;;  %v5623_v19 = vld [vmem:[%s6905_s6 + $0x124] ss:$24 sps:$4 sm:$0xff]  }
  0x89   : > { %2191 = vmatprep.subr.bf16.mxu0 %v5617_v15  ;;  %v5620_v17 = vld [vmem:[%s6905_s6 + $0x454] ss:$24 sps:$4 sm:$0xff]   ;;  %v5622_v18 = vld [vmem:[%s6905_s6 + $0x450] ss:$24 sps:$4 sm:$0xff]   ;;  %v5625_v20 = vld [vmem:[%s6905_s6 + $0x120] ss:$24 sps:$4 sm:$0xff]  }
  0x8a   : > { %2192 = vmatpush1.bf16.msra.mxu0 %v5619_v16  ;;  %2234 = vmatprep.subr.bf16.mxu1 %v5620_v17  ;;  %v5626_v21 = vld [vmem:[%s6905_s6 + $0x424] ss:$24 sps:$4 sm:$0xff]   ;;  %v5628_v22 = vld [vmem:[%s6905_s6 + $0x420] ss:$24 sps:$4 sm:$0xff]   ;;  %v5629_v23 = vld [vmem:[%s6905_s6 + $0xf4] ss:$24 sps:$4 sm:$0xff]  }
  0x8b   : > { %2235 = vmatpush1.bf16.msra.mxu1 %v5622_v18  ;;  %2193 = vmatprep.subr.bf16.mxu0 %v5623_v19  ;;  %v5631_v24 = vld [vmem:[%s6905_s6 + $0xf0] ss:$24 sps:$4 sm:$0xff]   ;;  %v5632_v25 = vld [vmem:[%s6905_s6 + $0x3f4] ss:$24 sps:$4 sm:$0xff]   ;;  %v5635_v26 = vld [vmem:[%s6905_s6 + $0xc4] ss:$24 sps:$4 sm:$0xff]  }
  0x8c   : > { %2236 = vmatprep.subr.bf16.mxu1 %v5626_v21  ;;  %v5634_v27 = vld [vmem:[%s6905_s6 + $0x3f0] ss:$24 sps:$4 sm:$0xff]   ;;  %v5638_v28 = vld [vmem:[%s6905_s6 + $0x3c4] ss:$24 sps:$4 sm:$0xff]   ;;  %v5637_v29 = vld [vmem:[%s6905_s6 + $0xc0] ss:$24 sps:$4 sm:$0xff]  }
  0x8d   : > { %v5641_v30 = vld [vmem:[%s6905_s6 + $0x94] ss:$24 sps:$4 sm:$0xff]   ;;  %v5640_v31 = vld [vmem:[%s6905_s6 + $0x3c0] ss:$24 sps:$4 sm:$0xff]   ;;  %v5643_v33 = vld [vmem:[%s6905_s6 + $0x90] ss:$24 sps:$4 sm:$0xff]  }
  0x8e   : > { %2194 = vmatpush1.bf16.msra.mxu0 %v5625_v20  ;;  %v5644_v32 = vld [vmem:[%s6905_s6 + $0x394] ss:$24 sps:$4 sm:$0xff]   ;;  %v5647_v34 = vld [vmem:[%s6905_s6 + $0x64] ss:$24 sps:$4 sm:$0xff]   ;;  %v5646_v35 = vld [vmem:[%s6905_s6 + $0x390] ss:$24 sps:$4 sm:$0xff]  }
  0x8f   : > { %2195 = vmatprep.subr.bf16.mxu0 %v5629_v23  ;;  %2237 = vmatpush1.bf16.msra.mxu1 %v5628_v22  ;;  %v5650_v36 = vld [vmem:[%s6905_s6 + $0x364] ss:$24 sps:$4 sm:$0xff]   ;;  %v5649_v37 = vld [vmem:[%s6905_s6 + $0x60] ss:$24 sps:$4 sm:$0xff]   ;;  %v5653_v38 = vld [vmem:[%s6905_s6 + $0x34] ss:$24 sps:$4 sm:$0xff]  }
  0x90   : > { %2238 = vmatprep.subr.bf16.mxu1 %v5632_v25  ;;  %v5652_v39 = vld [vmem:[%s6905_s6 + $0x360] ss:$24 sps:$4 sm:$0xff]   ;;  %v5656_v40 = vld [vmem:[%s6905_s6 + $0x334] ss:$24 sps:$4 sm:$0xff]   ;;  %v5655_v41 = vld [vmem:[%s6905_s6 + $0x30] ss:$24 sps:$4 sm:$0xff]  }
  0x91   : > { %v5659_v42 = vld [vmem:[%s6905_s6 + $0x4] ss:$24 sps:$4 sm:$0xff]   ;;  %v5658_v43 = vld [vmem:[%s6905_s6 + $0x330] ss:$24 sps:$4 sm:$0xff]   ;;  %v5661_v45 = vld [vmem:[%s6905_s6] ss:$24 sps:$4 sm:$0xff]  }
  0x92   : > { %2196 = vmatpush1.bf16.msra.mxu0 %v5631_v24  ;;  %v5662_v44 = vld [vmem:[%s6905_s6 + $0x304] ss:$24 sps:$4 sm:$0xff]   ;;  %v5665_v46 = vld [vmem:[%s6905_s6 + $0x2d4] ss:$24 sps:$4 sm:$0xff]   ;;  %v5664_v47 = vld [vmem:[%s6905_s6 + $0x300] ss:$24 sps:$4 sm:$0xff]  }
  0x93   : > { %2197 = vmatprep.subr.bf16.mxu0 %v5635_v26  ;;  %2239 = vmatpush1.bf16.msra.mxu1 %v5634_v27  ;;  %v5668_v48 = vld [vmem:[%s6905_s6 + $0x5d4] ss:$24 sps:$4 sm:$0xff]   ;;  %v5667_v49 = vld [vmem:[%s6905_s6 + $0x2d0] ss:$24 sps:$4 sm:$0xff]   ;;  %v5671_v50 = vld [vmem:[%s6905_s6 + $0x2a4] ss:$24 sps:$4 sm:$0xff]  }
  0x94   : > { %2240 = vmatprep.subr.bf16.mxu1 %v5638_v28  ;;  %v5670_v51 = vld [vmem:[%s6905_s6 + $0x5d0] ss:$24 sps:$4 sm:$0xff]   ;;  %v5674_v52 = vld [vmem:[%s6905_s6 + $0x5a4] ss:$24 sps:$4 sm:$0xff]   ;;  %v5673_v53 = vld [vmem:[%s6905_s6 + $0x2a0] ss:$24 sps:$4 sm:$0xff]  }
  0x95   : > { %v5677_v54 = vld [vmem:[%s6905_s6 + $0x274] ss:$24 sps:$4 sm:$0xff]   ;;  %v5676_v55 = vld [vmem:[%s6905_s6 + $0x5a0] ss:$24 sps:$4 sm:$0xff]   ;;  %v5679_v57 = vld [vmem:[%s6905_s6 + $0x270] ss:$24 sps:$4 sm:$0xff]  }
  0x96   : > { %2198 = vmatpush1.bf16.msra.mxu0 %v5637_v29  ;;  %v5680_v56 = vld [vmem:[%s6905_s6 + $0x574] ss:$24 sps:$4 sm:$0xff]   ;;  %v5683_v58 = vld [vmem:[%s6905_s6 + $0x244] ss:$24 sps:$4 sm:$0xff]   ;;  %v5682_v59 = vld [vmem:[%s6905_s6 + $0x570] ss:$24 sps:$4 sm:$0xff]  }
  0x97   : > { %2199 = vmatprep.subr.bf16.mxu0 %v5641_v30  ;;  %2241 = vmatpush1.bf16.msra.mxu1 %v5640_v31  ;;  %v5686_v60 = vld [vmem:[%s6905_s6 + $0x544] ss:$24 sps:$4 sm:$0xff]   ;;  %v414_v61 = vld [vmem:[#allocation3 + $0x8] sm:$0xff]  ;;  %v5685_v63 = vld [vmem:[%s6905_s6 + $0x240] ss:$24 sps:$4 sm:$0xff]   ;;  %p5503_p6 = scmp.ne.s32.totalorder %s6699_s21, 3 }
  0x98   : > { %2242 = vmatprep.subr.bf16.mxu1 %v5644_v32  ;;  %v420_v62 = vld [vmem:[#allocation3 + $0x38] sm:$0xff]  ;;  %v5689_v1 = vld [vmem:[%s6905_s6 + $0x214] ss:$24 sps:$4 sm:$0xff]   ;;  %v5691_v7 = vld [vmem:[%s6905_s6 + $0x210] ss:$24 sps:$4 sm:$0xff]  }
  0x99   : > { %v6972_v0 = vpack.c.bf16 %v420_v62, %v414_v61  ;;  %v5688_v2 = vld [vmem:[%s6905_s6 + $0x540] ss:$24 sps:$4 sm:$0xff]   ;;  %v422_v4 = vld [vmem:[#allocation3 + $0x48] sm:$0xff]  ;;  %v5695_v8 = vld [vmem:[%s6905_s6 + $0x1e4] ss:$24 sps:$4 sm:$0xff]  }
  0x9a   : > { %2200 = vmatpush1.bf16.msra.mxu0 %v5643_v33  ;;  %v416_v3 = vld [vmem:[#allocation3 + $0x18] sm:$0xff]  ;;  %v5692_v5 = vld [vmem:[%s6905_s6 + $0x514] ss:$24 sps:$4 sm:$0xff]   ;;  %v5694_v9 = vld [vmem:[%s6905_s6 + $0x510] ss:$24 sps:$4 sm:$0xff]  }
  0x9b   : > { %2201 = vmatprep.subr.bf16.mxu0 %v5647_v34  ;;  %2243 = vmatpush1.bf16.msra.mxu1 %v5646_v35  ;;  %v6978_v6 = vpack.c.bf16 %v422_v4, %v416_v3  ;;  %v5698_v10 = vld [vmem:[%s6905_s6 + $0x4e4] ss:$24 sps:$4 sm:$0xff]   ;;  %v5697_v11 = vld [vmem:[%s6905_s6 + $0x1e0] ss:$24 sps:$4 sm:$0xff]   ;;  %v5701_v12 = vld [vmem:[%s6905_s6 + $0x1b4] ss:$24 sps:$4 sm:$0xff]  }
  0x9c   : > { %2244 = vmatprep.subr.bf16.mxu1 %v5650_v36  ;;  %2223 = vmatprep.mubr.bf16.mxu0 %v6972_v0  ;;  %v5700_v13 = vld [vmem:[%s6905_s6 + $0x4e0] ss:$24 sps:$4 sm:$0xff]   ;;  %v5704_v14 = vld [vmem:[%s6905_s6 + $0x4b4] ss:$24 sps:$4 sm:$0xff]   ;;  %v5703_v15 = vld [vmem:[%s6905_s6 + $0x1b0] ss:$24 sps:$4 sm:$0xff]  }
  0x9d   : > { %2266 = vmatprep.mubr.bf16.mxu1 %v6978_v6  ;;  %v5706_v16 = vld [vmem:[%s6905_s6 + $0x4b0] ss:$24 sps:$4 sm:$0xff]   ;;  %v5707_v17 = vld [vmem:[%s6905_s6 + $0x184] ss:$24 sps:$4 sm:$0xff]   ;;  %v5709_v18 = vld [vmem:[%s6905_s6 + $0x180] ss:$24 sps:$4 sm:$0xff]  }
  0x9e   : > { %2202 = vmatpush1.bf16.msra.mxu0 %v5649_v37  ;;  %v5710_v19 = vld [vmem:[%s6905_s6 + $0x484] ss:$24 sps:$4 sm:$0xff]   ;;  %v5712_v21 = vld [vmem:[%s6905_s6 + $0x480] ss:$24 sps:$4 sm:$0xff]   ;;  %v419_v22 = vld [vmem:[#allocation3 + $0x30] sm:$0xff] }
  0x9f   : > { %2203 = vmatprep.subr.bf16.mxu0 %v5653_v38  ;;  %2245 = vmatpush1.bf16.msra.mxu1 %v5652_v39  ;;  %v413_v20 = vld [vmem:[#allocation3] sm:$0xff]  ;;  %v5715_v23 = vld [vmem:[%s6905_s6 + $0x754] ss:$24 sps:$4 sm:$0xff]   ;;  %v5713_v28 = vld [vmem:[%s6905_s6 + $0x750] ss:$24 sps:$4 sm:$0xff]  }
  0xa0   : > { %2246 = vmatprep.subr.bf16.mxu1 %v5656_v40  ;;  %v415_v24 = vld [vmem:[#allocation3 + $0x10] sm:$0xff]  ;;  %v421_v25 = vld [vmem:[#allocation3 + $0x40] sm:$0xff]  ;;  %v6996_v26 = vpack.c.bf16 %v419_v22, %v413_v20 }
  0xa1   : > { %v5718_v27 = vld [vmem:[%s6905_s6 + $0x15c] ss:$24 sps:$4 sm:$0xff]   ;;  %v7000_v29 = vpack.c.bf16 %v421_v25, %v415_v24  ;;  %v5716_v31 = vld [vmem:[%s6905_s6 + $0x158] ss:$24 sps:$4 sm:$0xff]   ;;  %v5724_v32 = vld [vmem:[%s6905_s6 + $0x12c] ss:$24 sps:$4 sm:$0xff]  }
  0xa2   : > { %2204 = vmatpush1.bf16.msra.mxu0 %v5655_v41  ;;  %v5721_v30 = vld [vmem:[%s6905_s6 + $0x724] ss:$24 sps:$4 sm:$0xff]   ;;  %v5719_v33 = vld [vmem:[%s6905_s6 + $0x720] ss:$24 sps:$4 sm:$0xff]   ;;  %v5727_v34 = vld [vmem:[%s6905_s6 + $0x6f4] ss:$24 sps:$4 sm:$0xff]  }
  0xa3   : > { %2205 = vmatprep.subr.bf16.mxu0 %v5659_v42  ;;  %2247 = vmatpush1.bf16.msra.mxu1 %v5658_v43  ;;  %v5722_v35 = vld [vmem:[%s6905_s6 + $0x128] ss:$24 sps:$4 sm:$0xff]   ;;  %v5730_v36 = vld [vmem:[%s6905_s6 + $0xfc] ss:$24 sps:$4 sm:$0xff]   ;;  %v5728_v39 = vld [vmem:[%s6905_s6 + $0xf8] ss:$24 sps:$4 sm:$0xff]  }
  0xa4   : > { %2248 = vmatprep.subr.bf16.mxu1 %v5662_v44  ;;  %v5725_v37 = vld [vmem:[%s6905_s6 + $0x6f0] ss:$24 sps:$4 sm:$0xff]   ;;  %v5733_v38 = vld [vmem:[%s6905_s6 + $0x6c4] ss:$24 sps:$4 sm:$0xff]   ;;  %v5731_v41 = vld [vmem:[%s6905_s6 + $0x6c0] ss:$24 sps:$4 sm:$0xff]  }
  0xa5   : > { %v5736_v40 = vld [vmem:[%s6905_s6 + $0xcc] ss:$24 sps:$4 sm:$0xff]   ;;  %v5734_v43 = vld [vmem:[%s6905_s6 + $0xc8] ss:$24 sps:$4 sm:$0xff]   ;;  %v5742_v44 = vld [vmem:[%s6905_s6 + $0x9c] ss:$24 sps:$4 sm:$0xff]  }
  0xa6   : > { %2206 = vmatpush1.bf16.msra.mxu0 %v5661_v45  ;;  %v5739_v42 = vld [vmem:[%s6905_s6 + $0x694] ss:$24 sps:$4 sm:$0xff]   ;;  %v5737_v45 = vld [vmem:[%s6905_s6 + $0x690] ss:$24 sps:$4 sm:$0xff]   ;;  %v5791_v22 = vld [vmem:[%s6905_s6 + $0x7e0] ss:$24 sps:$4 sm:$0xff]  }
  0xa7   : > { %2207 = vmatprep.subr.bf16.mxu0 %v5665_v46  ;;  %2249 = vmatpush1.bf16.msra.mxu1 %v5664_v47  ;;  %v5745_v46 = vld [vmem:[%s6905_s6 + $0x664] ss:$24 sps:$4 sm:$0xff]   ;;  %v5740_v47 = vld [vmem:[%s6905_s6 + $0x98] ss:$24 sps:$4 sm:$0xff]   ;;  %v5763_v61 = vld [vmem:[%s6905_s6 + $0x8d4] ss:$24 sps:$4 sm:$0xff]  }
  0xa8   : > { %2250 = vmatprep.subr.bf16.mxu1 %v5668_v48  ;;  %v5748_v48 = vld [vmem:[%s6905_s6 + $0x6c] ss:$24 sps:$4 sm:$0xff]   ;;  %v5758_v62 = vld [vmem:[%s6905_s6 + $0x8] ss:$24 sps:$4 sm:$0xff]   ;;  %v5764_v3 = vld [vmem:[%s6905_s6 + $0x2d8] ss:$24 sps:$4 sm:$0xff]  }
  0xa9   : > { %v5772_v4 = vld [vmem:[%s6905_s6 + $0x2ac] ss:$24 sps:$4 sm:$0xff]   ;;  %v5788_v20 = vld [vmem:[%s6905_s6 + $0x218] ss:$24 sps:$4 sm:$0xff]   ;;  %v5794_v24 = vld [vmem:[%s6905_s6 + $0x1e8] ss:$24 sps:$4 sm:$0xff]  }
  0xaa   : > { %2208 = vmatpush2.bf16.msra.mxu0 %v5667_v49  ;;  %v5743_v49 = vld [vmem:[%s6905_s6 + $0x660] ss:$24 sps:$4 sm:$0xff]   ;;  %v5802_v25 = vld [vmem:[%s6905_s6 + $0x1bc] ss:$24 sps:$4 sm:$0xff]  }
  0xab   : > { %2209 = vmatprep.subr.bf16.mxu0 %v5671_v50  ;;  %2251 = vmatpush2.bf16.msra.mxu1 %v5670_v51  ;;  %v5751_v50 = vld [vmem:[%s6905_s6 + $0x634] ss:$24 sps:$4 sm:$0xff]   ;;  %v5746_v51 = vld [vmem:[%s6905_s6 + $0x68] ss:$24 sps:$4 sm:$0xff]  }
  0xac   : > { %2252 = vmatprep.subr.bf16.mxu1 %v5674_v52  ;;  %v5754_v52 = vld [vmem:[%s6905_s6 + $0x3c] ss:$24 sps:$4 sm:$0xff]  }
  0xae   : > { %2210 = vmatpush2.bf16.msra.mxu0 %v5673_v53  ;;  %v5749_v53 = vld [vmem:[%s6905_s6 + $0x630] ss:$24 sps:$4 sm:$0xff]  }
  0xaf   : > { %2211 = vmatprep.subr.bf16.mxu0 %v5677_v54  ;;  %2253 = vmatpush2.bf16.msra.mxu1 %v5676_v55  ;;  %v5757_v54 = vld [vmem:[%s6905_s6 + $0x604] ss:$24 sps:$4 sm:$0xff]   ;;  %v418_v55 = vld [vmem:[#allocation3 + $0x28] sm:$0xff] }
  0xb0   : > { %2254 = vmatprep.subr.bf16.mxu1 %v5680_v56  ;;  %v424_v56 = vld [vmem:[#allocation3 + $0x58] sm:$0xff] }
  0xb2   : > { %2212 = vmatpush2.bf16.msra.mxu0 %v5679_v57  ;;  %v5752_v57 = vld [vmem:[%s6905_s6 + $0x38] ss:$24 sps:$4 sm:$0xff]  }
  0xb3   : > { %2213 = vmatprep.subr.bf16.mxu0 %v5683_v58  ;;  %2255 = vmatpush2.bf16.msra.mxu1 %v5682_v59  ;;  %v7031_v58 = vpack.c.bf16 %v424_v56, %v418_v55  ;;  %v5760_v59 = vld [vmem:[%s6905_s6 + $0xc] ss:$24 sps:$4 sm:$0xff]   ;;  %v5833_v55 = vld [vmem:[%s6905_s6 + $0x398] ss:$24 sps:$4 sm:$0xff]  }
  0xb4   : > { %2256 = vmatprep.subr.bf16.mxu1 %v5686_v60  ;;  %v5755_v60 = vld [vmem:[%s6905_s6 + $0x600] ss:$24 sps:$4 sm:$0xff]   ;;  %v5841_v56 = vld [vmem:[%s6905_s6 + $0x36c] ss:$24 sps:$4 sm:$0xff]  }
  0xb6   : > { %2214 = vmatpush2.bf16.msra.mxu0 %v5685_v63  ;;  %v5766_v63 = vld [vmem:[%s6905_s6 + $0x2dc] ss:$24 sps:$4 sm:$0xff]  }
  0xb7   : > { %2215 = vmatprep.subr.bf16.mxu0 %v5689_v1  ;;  %2257 = vmatpush2.bf16.msra.mxu1 %v5688_v2  ;;  %v5761_v1 = vld [vmem:[%s6905_s6 + $0x8d0] ss:$24 sps:$4 sm:$0xff]   ;;  %v5769_v2 = vld [vmem:[%s6905_s6 + $0x8a4] ss:$24 sps:$4 sm:$0xff]  }
  0xb8   : > { %2258 = vmatprep.subr.bf16.mxu1 %v5692_v5  ;;  %v5767_v5 = vld [vmem:[%s6905_s6 + $0x8a0] ss:$24 sps:$4 sm:$0xff]  }
  0xba   : > { %2216 = vmatpush2.bf16.msra.mxu0 %v5691_v7  ;;  %v5775_v7 = vld [vmem:[%s6905_s6 + $0x874] ss:$24 sps:$4 sm:$0xff]  }
  0xbb   : > { %2217 = vmatprep.subr.bf16.mxu0 %v5695_v8  ;;  %2259 = vmatpush2.bf16.msra.mxu1 %v5694_v9  ;;  %v5770_v8 = vld [vmem:[%s6905_s6 + $0x2a8] ss:$24 sps:$4 sm:$0xff]   ;;  %v5778_v9 = vld [vmem:[%s6905_s6 + $0x27c] ss:$24 sps:$4 sm:$0xff]  }
  0xbc   : > { %2260 = vmatprep.subr.bf16.mxu1 %v5698_v10  ;;  %v5773_v10 = vld [vmem:[%s6905_s6 + $0x870] ss:$24 sps:$4 sm:$0xff]  }
  0xbe   : > { %2218 = vmatpush2.bf16.msra.mxu0 %v5697_v11  ;;  %v5781_v11 = vld [vmem:[%s6905_s6 + $0x844] ss:$24 sps:$4 sm:$0xff]  }
  0xbf   : > { %2219 = vmatprep.subr.bf16.mxu0 %v5701_v12  ;;  %2261 = vmatpush2.bf16.msra.mxu1 %v5700_v13  ;;  %v5776_v12 = vld [vmem:[%s6905_s6 + $0x278] ss:$24 sps:$4 sm:$0xff]   ;;  %v5784_v13 = vld [vmem:[%s6905_s6 + $0x24c] ss:$24 sps:$4 sm:$0xff]  }
  0xc0   : > { %2262 = vmatprep.subr.bf16.mxu1 %v5704_v14  ;;  %v5779_v14 = vld [vmem:[%s6905_s6 + $0x840] ss:$24 sps:$4 sm:$0xff]  }
  0xc2   : > { %2220 = vmatpush2.bf16.msra.mxu0 %v5703_v15  ;;  %v5787_v15 = vld [vmem:[%s6905_s6 + $0x814] ss:$24 sps:$4 sm:$0xff]  }
  0xc3   : > { %2221 = vmatprep.subr.bf16.mxu0 %v5707_v17  ;;  %2263 = vmatpush2.bf16.msra.mxu1 %v5706_v16  ;;  %v5782_v16 = vld [vmem:[%s6905_s6 + $0x248] ss:$24 sps:$4 sm:$0xff]   ;;  %v5790_v17 = vld [vmem:[%s6905_s6 + $0x21c] ss:$24 sps:$4 sm:$0xff]  }
  0xc4   : > { %2264 = vmatprep.subr.bf16.mxu1 %v5710_v19  ;;  %v5793_v19 = vld [vmem:[%s6905_s6 + $0x7e4] ss:$24 sps:$4 sm:$0xff]  }
  0xc6   : > { %2222 = vmatpush2.bf16.msra.mxu0 %v5709_v18  ;;  %v5785_v18 = vld [vmem:[%s6905_s6 + $0x810] ss:$24 sps:$4 sm:$0xff]  }
  0xc7   : > { %2277 = vmatprep.subr.bf16.mxu0 %v5715_v23  ;;  %2265 = vmatpush2.bf16.msra.mxu1 %v5712_v21  ;;  %v5796_v21 = vld [vmem:[%s6905_s6 + $0x1ec] ss:$24 sps:$4 sm:$0xff]  }
  0xc8   : > { %2320 = vmatprep.subr.bf16.mxu1 %v5718_v27  ;;  %v5799_v23 = vld [vmem:[%s6905_s6 + $0x7b4] ss:$24 sps:$4 sm:$0xff]   ;;  %v5797_v27 = vld [vmem:[%s6905_s6 + $0x7b0] ss:$24 sps:$4 sm:$0xff]  }
  0xc9   : > { %2224 = vmatmul.mubr.bf16.vlgmr.msra.gmra.mxu0 %v6996_v26 }
  0xca   : > { %2278 = vmatpush1.bf16.msra.mxu0 %v5713_v28  ;;  %2267 = vmatmul.mubr.bf16.vlgmr.msra.gmra.mxu1 %v7000_v29  ;;  %v5805_v28 = vld [vmem:[%s6905_s6 + $0x784] ss:$24 sps:$4 sm:$0xff]  }
  0xcb   : > { %2279 = vmatprep.subr.bf16.mxu0 %v5721_v30  ;;  %2321 = vmatpush1.bf16.msra.mxu1 %v5716_v31  ;;  %v5800_v30 = vld [vmem:[%s6905_s6 + $0x1b8] ss:$24 sps:$4 sm:$0xff]  }
  0xcc   : > { %2352 = vmatprep.mubr.bf16.mxu1 %v6972_v0  ;;  %2322 = vmatprep.subr.bf16.mxu1 %v5724_v32  ;;  %v5803_v31 = vld [vmem:[%s6905_s6 + $0x780] ss:$24 sps:$4 sm:$0xff]   ;;  %v5808_v32 = vld [vmem:[%s6905_s6 + $0x18c] ss:$24 sps:$4 sm:$0xff]  }
  0xcd   : > { %2309 = vmatprep.mubr.bf16.mxu0 %v7031_v58 }
  0xce   : > { %2280 = vmatpush1.bf16.msra.mxu0 %v5719_v33  ;;  %v417_v33 = vld [vmem:[#allocation3 + $0x20] sm:$0xff] }
  0xcf   : > { %2281 = vmatprep.subr.bf16.mxu0 %v5727_v34  ;;  %2323 = vmatpush1.bf16.msra.mxu1 %v5722_v35  ;;  %v423_v34 = vld [vmem:[#allocation3 + $0x50] sm:$0xff] }
  0xd0   : > { %2324 = vmatprep.subr.bf16.mxu1 %v5730_v36  ;;  %v5811_v35 = vld [vmem:[%s6905_s6 + $0x45c] ss:$24 sps:$4 sm:$0xff]   ;;  %v5806_v36 = vld [vmem:[%s6905_s6 + $0x188] ss:$24 sps:$4 sm:$0xff]  }
  0xd2   : > { %2282 = vmatpush1.bf16.msra.mxu0 %v5725_v37  ;;  %v7070_v37 = vpack.c.bf16 %v423_v34, %v417_v33  ;;  %v5895_v33 = vld [vmem:[%s6905_s6 + $0x4bc] ss:$24 sps:$4 sm:$0xff]   ;;  %v5890_v34 = vld [vmem:[%s6905_s6 + $0x7e8] ss:$24 sps:$4 sm:$0xff]  }
  0xd3   : > { %2283 = vmatprep.subr.bf16.mxu0 %v5733_v38  ;;  %2325 = vmatpush1.bf16.msra.mxu1 %v5728_v39  ;;  %v5814_v38 = vld [vmem:[%s6905_s6 + $0x75c] ss:$24 sps:$4 sm:$0xff]   ;;  %v5809_v39 = vld [vmem:[%s6905_s6 + $0x458] ss:$24 sps:$4 sm:$0xff]  }
  0xd4   : > { %2326 = vmatprep.subr.bf16.mxu1 %v5736_v40  ;;  %v5817_v40 = vld [vmem:[%s6905_s6 + $0x42c] ss:$24 sps:$4 sm:$0xff]  }
  0xd6   : > { %2284 = vmatpush1.bf16.msra.mxu0 %v5731_v41  ;;  %v5812_v41 = vld [vmem:[%s6905_s6 + $0x758] ss:$24 sps:$4 sm:$0xff]  }
  0xd7   : > { %2285 = vmatprep.subr.bf16.mxu0 %v5739_v42  ;;  %2327 = vmatpush1.bf16.msra.mxu1 %v5734_v43  ;;  %v5820_v42 = vld [vmem:[%s6905_s6 + $0x72c] ss:$24 sps:$4 sm:$0xff]   ;;  %v5815_v43 = vld [vmem:[%s6905_s6 + $0x428] ss:$24 sps:$4 sm:$0xff]  }
  0xd8   : > { %2328 = vmatprep.subr.bf16.mxu1 %v5742_v44  ;;  %v5823_v44 = vld [vmem:[%s6905_s6 + $0x3fc] ss:$24 sps:$4 sm:$0xff]  }
  0xda   : > { %2286 = vmatpush1.bf16.msra.mxu0 %v5737_v45  ;;  %v5818_v45 = vld [vmem:[%s6905_s6 + $0x728] ss:$24 sps:$4 sm:$0xff]  }
  0xdb   : > { %2287 = vmatprep.subr.bf16.mxu0 %v5745_v46  ;;  %2329 = vmatpush1.bf16.msra.mxu1 %v5740_v47  ;;  %v5826_v46 = vld [vmem:[%s6905_s6 + $0x6fc] ss:$24 sps:$4 sm:$0xff]   ;;  %v5821_v47 = vld [vmem:[%s6905_s6 + $0x3f8] ss:$24 sps:$4 sm:$0xff]  }
  0xdc   : > { %2330 = vmatprep.subr.bf16.mxu1 %v5748_v48  ;;  %v5829_v48 = vld [vmem:[%s6905_s6 + $0x3cc] ss:$24 sps:$4 sm:$0xff]  }
  0xde   : > { %2288 = vmatpush1.bf16.msra.mxu0 %v5743_v49  ;;  %v5824_v49 = vld [vmem:[%s6905_s6 + $0x6f8] ss:$24 sps:$4 sm:$0xff]  }
  0xdf   : > { %2289 = vmatprep.subr.bf16.mxu0 %v5751_v50  ;;  %2331 = vmatpush1.bf16.msra.mxu1 %v5746_v51  ;;  %v5832_v50 = vld [vmem:[%s6905_s6 + $0x6cc] ss:$24 sps:$4 sm:$0xff]   ;;  %v5827_v51 = vld [vmem:[%s6905_s6 + $0x3c8] ss:$24 sps:$4 sm:$0xff]  }
  0xe0   : > { %2332 = vmatprep.subr.bf16.mxu1 %v5754_v52  ;;  %v5835_v52 = vld [vmem:[%s6905_s6 + $0x39c] ss:$24 sps:$4 sm:$0xff]  }
  0xe2   : > { %2290 = vmatpush1.bf16.msra.mxu0 %v5749_v53  ;;  %v5830_v53 = vld [vmem:[%s6905_s6 + $0x6c8] ss:$24 sps:$4 sm:$0xff]  }
  0xe3   : > { %2291 = vmatprep.subr.bf16.mxu0 %v5757_v54  ;;  %2333 = vmatpush1.bf16.msra.mxu1 %v5752_v57  ;;  %v5838_v54 = vld [vmem:[%s6905_s6 + $0x69c] ss:$24 sps:$4 sm:$0xff]   ;;  %v5836_v57 = vld [vmem:[%s6905_s6 + $0x698] ss:$24 sps:$4 sm:$0xff]  }
  0xe4   : > { %2334 = vmatprep.subr.bf16.mxu1 %v5760_v59  ;;  %v5844_v59 = vld [vmem:[%s6905_s6 + $0x66c] ss:$24 sps:$4 sm:$0xff]  }
  0xe6   : > { %2292 = vmatpush1.bf16.msra.mxu0 %v5755_v60  ;;  %v5839_v60 = vld [vmem:[%s6905_s6 + $0x368] ss:$24 sps:$4 sm:$0xff]  }
  0xe7   : > { %2293 = vmatprep.subr.bf16.mxu0 %v5763_v61  ;;  %2335 = vmatpush1.bf16.msra.mxu1 %v5758_v62  ;;  %v5847_v61 = vld [vmem:[%s6905_s6 + $0x33c] ss:$24 sps:$4 sm:$0xff]   ;;  %v5842_v62 = vld [vmem:[%s6905_s6 + $0x668] ss:$24 sps:$4 sm:$0xff]  }
  0xe8   : > { %2336 = vmatprep.subr.bf16.mxu1 %v5766_v63  ;;  %v5850_v63 = vld [vmem:[%s6905_s6 + $0x63c] ss:$24 sps:$4 sm:$0xff]  }
  0xea   : > { %2294 = vmatpush2.bf16.msra.mxu0 %v5761_v1  ;;  %v5845_v1 = vld [vmem:[%s6905_s6 + $0x338] ss:$24 sps:$4 sm:$0xff]  }
  0xeb   : > { %2295 = vmatprep.subr.bf16.mxu0 %v5769_v2  ;;  %2337 = vmatpush2.bf16.msra.mxu1 %v5764_v3  ;;  %v5853_v2 = vld [vmem:[%s6905_s6 + $0x30c] ss:$24 sps:$4 sm:$0xff]   ;;  %v5848_v3 = vld [vmem:[%s6905_s6 + $0x638] ss:$24 sps:$4 sm:$0xff]  }
  0xec   : > { %2338 = vmatprep.subr.bf16.mxu1 %v5772_v4  ;;  %v5856_v4 = vld [vmem:[%s6905_s6 + $0x60c] ss:$24 sps:$4 sm:$0xff]  }
  0xee   : > { %2296 = vmatpush2.bf16.msra.mxu0 %v5767_v5  ;;  %v5851_v5 = vld [vmem:[%s6905_s6 + $0x308] ss:$24 sps:$4 sm:$0xff]  }
  0xef   : > { %2297 = vmatprep.subr.bf16.mxu0 %v5775_v7  ;;  %2339 = vmatpush2.bf16.msra.mxu1 %v5770_v8  ;;  %v5859_v7 = vld [vmem:[%s6905_s6 + $0x5dc] ss:$24 sps:$4 sm:$0xff]   ;;  %v5854_v8 = vld [vmem:[%s6905_s6 + $0x608] ss:$24 sps:$4 sm:$0xff]  }
  0xf0   : > { %2340 = vmatprep.subr.bf16.mxu1 %v5778_v9  ;;  %v5862_v9 = vld [vmem:[%s6905_s6 + $0x8dc] ss:$24 sps:$4 sm:$0xff]  }
  0xf2   : > { %2298 = vmatpush2.bf16.msra.mxu0 %v5773_v10  ;;  %v5857_v10 = vld [vmem:[%s6905_s6 + $0x5d8] ss:$24 sps:$4 sm:$0xff]  }
  0xf3   : > { %2299 = vmatprep.subr.bf16.mxu0 %v5781_v11  ;;  %2341 = vmatpush2.bf16.msra.mxu1 %v5776_v12  ;;  %v5865_v11 = vld [vmem:[%s6905_s6 + $0x5ac] ss:$24 sps:$4 sm:$0xff]   ;;  %v5860_v12 = vld [vmem:[%s6905_s6 + $0x8d8] ss:$24 sps:$4 sm:$0xff]  }
  0xf4   : > { %2342 = vmatprep.subr.bf16.mxu1 %v5784_v13  ;;  %v5868_v13 = vld [vmem:[%s6905_s6 + $0x8ac] ss:$24 sps:$4 sm:$0xff]  }
  0xf6   : > { %2300 = vmatpush2.bf16.msra.mxu0 %v5779_v14  ;;  %v5863_v14 = vld [vmem:[%s6905_s6 + $0x5a8] ss:$24 sps:$4 sm:$0xff]  }
  0xf7   : > { %2301 = vmatprep.subr.bf16.mxu0 %v5787_v15  ;;  %2343 = vmatpush2.bf16.msra.mxu1 %v5782_v16  ;;  %v5871_v15 = vld [vmem:[%s6905_s6 + $0x57c] ss:$24 sps:$4 sm:$0xff]   ;;  %v5866_v16 = vld [vmem:[%s6905_s6 + $0x8a8] ss:$24 sps:$4 sm:$0xff]  }
  0xf8   : > { %2344 = vmatprep.subr.bf16.mxu1 %v5790_v17  ;;  %v5874_v17 = vld [vmem:[%s6905_s6 + $0x87c] ss:$24 sps:$4 sm:$0xff]  }
  0xfa   : > { %2302 = vmatpush2.bf16.msra.mxu0 %v5785_v18  ;;  %v5869_v18 = vld [vmem:[%s6905_s6 + $0x578] ss:$24 sps:$4 sm:$0xff]  }
  0xfb   : > { %2303 = vmatprep.subr.bf16.mxu0 %v5793_v19  ;;  %2345 = vmatpush2.bf16.msra.mxu1 %v5788_v20  ;;  %v5877_v19 = vld [vmem:[%s6905_s6 + $0x54c] ss:$24 sps:$4 sm:$0xff]   ;;  %v5872_v20 = vld [vmem:[%s6905_s6 + $0x878] ss:$24 sps:$4 sm:$0xff]  }
  0xfc   : > { %2346 = vmatprep.subr.bf16.mxu1 %v5796_v21  ;;  %v5880_v21 = vld [vmem:[%s6905_s6 + $0x84c] ss:$24 sps:$4 sm:$0xff]  }
  0xfe   : > { %2304 = vmatpush2.bf16.msra.mxu0 %v5791_v22  ;;  %v5875_v22 = vld [vmem:[%s6905_s6 + $0x548] ss:$24 sps:$4 sm:$0xff]  }
  0xff   : > { %2305 = vmatprep.subr.bf16.mxu0 %v5799_v23  ;;  %2347 = vmatpush2.bf16.msra.mxu1 %v5794_v24  ;;  %v5883_v23 = vld [vmem:[%s6905_s6 + $0x51c] ss:$24 sps:$4 sm:$0xff]   ;;  %v5878_v24 = vld [vmem:[%s6905_s6 + $0x848] ss:$24 sps:$4 sm:$0xff]  }
 0x100   : > { %2348 = vmatprep.subr.bf16.mxu1 %v5802_v25  ;;  %v5886_v25 = vld [vmem:[%s6905_s6 + $0x81c] ss:$24 sps:$4 sm:$0xff]  }
 0x102   : > { %2306 = vmatpush2.bf16.msra.mxu0 %v5797_v27  ;;  %v5881_v27 = vld [vmem:[%s6905_s6 + $0x518] ss:$24 sps:$4 sm:$0xff]  }
 0x103   : > { %2307 = vmatprep.subr.bf16.mxu0 %v5805_v28  ;;  %2349 = vmatpush2.bf16.msra.mxu1 %v5800_v30  ;;  %v5889_v28 = vld [vmem:[%s6905_s6 + $0x4ec] ss:$24 sps:$4 sm:$0xff]   ;;  %v5884_v30 = vld [vmem:[%s6905_s6 + $0x818] ss:$24 sps:$4 sm:$0xff]  }
 0x104   : > { %2350 = vmatprep.subr.bf16.mxu1 %v5808_v32  ;;  %v5887_v32 = vld [vmem:[%s6905_s6 + $0x4e8] ss:$24 sps:$4 sm:$0xff]  }
 0x106   : > { %2308 = vmatpush2.bf16.msra.mxu0 %v5803_v31  ;;  %v5892_v31 = vld [vmem:[%s6905_s6 + $0x7ec] ss:$24 sps:$4 sm:$0xff]  }
 0x107   : > { %2363 = vmatprep.subr.bf16.mxu0 %v5811_v35  ;;  %2351 = vmatpush2.bf16.msra.mxu1 %v5806_v36  ;;  %v5898_v35 = vld [vmem:[%s6905_s6 + $0x7bc] ss:$24 sps:$4 sm:$0xff]   ;;  %v5893_v36 = vld [vmem:[%s6905_s6 + $0x4b8] ss:$24 sps:$4 sm:$0xff]  }
 0x108   : > { %2406 = vmatprep.subr.bf16.mxu1 %v5814_v38  ;;  %v5901_v38 = vld [vmem:[%s6905_s6 + $0x48c] ss:$24 sps:$4 sm:$0xff]  }
 0x109   : > { %2310 = vmatmul.mubr.bf16.vlgmr.msra.gmra.mxu0 %v7070_v37 }
 0x10a   : > { %2364 = vmatpush1.bf16.msra.mxu0 %v5809_v39  ;;  %2395 = vmatprep.mubr.bf16.mxu0 %v6978_v6  ;;  %v5896_v39 = vld [vmem:[%s6905_s6 + $0x7b8] ss:$24 sps:$4 sm:$0xff]  }
 0x10b   : > { %2353 = vmatmul.mubr.bf16.vlgmr.msra.gmra.mxu1 %v6996_v26  ;;  %2365 = vmatprep.subr.bf16.mxu0 %v5817_v40  ;;  %v5904_v40 = vld [vmem:[%s6905_s6 + $0x78c] ss:$24 sps:$4 sm:$0xff]  }
 0x10c   : > { %2407 = vmatpush1.bf16.msra.mxu1 %v5812_v41  ;;  %2438 = vmatprep.mubr.bf16.mxu1 %v7031_v58  ;;  %v5899_v41 = vld [vmem:[%s6905_s6 + $0x488] ss:$24 sps:$4 sm:$0xff]  }
 0x10d   : > { %2408 = vmatprep.subr.bf16.mxu1 %v5820_v42  ;;  %v5907_v42 = vld [vmem:[%s6905_s6 + $0x164] ss:$24 sps:$4 sm:$0xff]  }
 0x10e   : > { %2366 = vmatpush1.bf16.msra.mxu0 %v5815_v43  ;;  %v5902_v43 = vld [vmem:[%s6905_s6 + $0x788] ss:$24 sps:$4 sm:$0xff]  }
 0x10f   : > { %2367 = vmatprep.subr.bf16.mxu0 %v5823_v44  ;;  %v5910_v44 = vld [vmem:[%s6905_s6 + $0x464] ss:$24 sps:$4 sm:$0xff]  }
 0x110   : > { %2409 = vmatpush1.bf16.msra.mxu1 %v5818_v45  ;;  %v5905_v45 = vld [vmem:[%s6905_s6 + $0x160] ss:$24 sps:$4 sm:$0xff]  }
 0x111   : > { %2410 = vmatprep.subr.bf16.mxu1 %v5826_v46  ;;  %v5913_v46 = vld [vmem:[%s6905_s6 + $0x134] ss:$24 sps:$4 sm:$0xff]  }
 0x112   : > { %2368 = vmatpush1.bf16.msra.mxu0 %v5821_v47  ;;  %v5908_v47 = vld [vmem:[%s6905_s6 + $0x460] ss:$24 sps:$4 sm:$0xff]  }
 0x113   : > { %2369 = vmatprep.subr.bf16.mxu0 %v5829_v48  ;;  %v5916_v48 = vld [vmem:[%s6905_s6 + $0x434] ss:$24 sps:$4 sm:$0xff]  }
 0x114   : > { %2411 = vmatpush1.bf16.msra.mxu1 %v5824_v49  ;;  %v5911_v49 = vld [vmem:[%s6905_s6 + $0x130] ss:$24 sps:$4 sm:$0xff]  }
 0x115   : > { %2412 = vmatprep.subr.bf16.mxu1 %v5832_v50  ;;  %v5919_v50 = vld [vmem:[%s6905_s6 + $0x104] ss:$24 sps:$4 sm:$0xff]  }
 0x116   : > { %2370 = vmatpush1.bf16.msra.mxu0 %v5827_v51  ;;  %v5914_v51 = vld [vmem:[%s6905_s6 + $0x430] ss:$24 sps:$4 sm:$0xff]  }
 0x117   : > { %2371 = vmatprep.subr.bf16.mxu0 %v5835_v52  ;;  %v5922_v52 = vld [vmem:[%s6905_s6 + $0x404] ss:$24 sps:$4 sm:$0xff]  }
 0x118   : > { %2413 = vmatpush1.bf16.msra.mxu1 %v5830_v53  ;;  %v5917_v53 = vld [vmem:[%s6905_s6 + $0x100] ss:$24 sps:$4 sm:$0xff]  }
 0x119   : > { %2414 = vmatprep.subr.bf16.mxu1 %v5838_v54  ;;  %v5920_v54 = vld [vmem:[%s6905_s6 + $0x400] ss:$24 sps:$4 sm:$0xff]  }
 0x11a   : > { %2372 = vmatpush1.bf16.msra.mxu0 %v5833_v55  ;;  %v5928_v55 = vld [vmem:[%s6905_s6 + $0x3d4] ss:$24 sps:$4 sm:$0xff]  }
 0x11b   : > { %2373 = vmatprep.subr.bf16.mxu0 %v5841_v56  ;;  %v5923_v56 = vld [vmem:[%s6905_s6 + $0xd0] ss:$24 sps:$4 sm:$0xff]  }
 0x11c   : > { %2415 = vmatpush1.bf16.msra.mxu1 %v5836_v57  ;;  %v5926_v57 = vld [vmem:[%s6905_s6 + $0x3d0] ss:$24 sps:$4 sm:$0xff]  }
 0x11d   : > { %2416 = vmatprep.subr.bf16.mxu1 %v5844_v59  ;;  %v5934_v59 = vld [vmem:[%s6905_s6 + $0x3a4] ss:$24 sps:$4 sm:$0xff]  }
 0x11e   : > { %2374 = vmatpush1.bf16.msra.mxu0 %v5839_v60  ;;  %v5929_v60 = vld [vmem:[%s6905_s6 + $0xa0] ss:$24 sps:$4 sm:$0xff]  }
 0x11f   : > { %2375 = vmatprep.subr.bf16.mxu0 %v5847_v61  ;;  %v5937_v61 = vld [vmem:[%s6905_s6 + $0x74] ss:$24 sps:$4 sm:$0xff]  }
 0x120   : > { %2417 = vmatpush1.bf16.msra.mxu1 %v5842_v62  ;;  %v5932_v62 = vld [vmem:[%s6905_s6 + $0x3a0] ss:$24 sps:$4 sm:$0xff]  }
 0x121   : > { %2418 = vmatprep.subr.bf16.mxu1 %v5850_v63  ;;  %v5940_v63 = vld [vmem:[%s6905_s6 + $0x374] ss:$24 sps:$4 sm:$0xff]  }
 0x122   : > { %2376 = vmatpush1.bf16.msra.mxu0 %v5845_v1  ;;  %v5935_v1 = vld [vmem:[%s6905_s6 + $0x70] ss:$24 sps:$4 sm:$0xff]  }
 0x123   : > { %2377 = vmatprep.subr.bf16.mxu0 %v5853_v2  ;;  %v5943_v2 = vld [vmem:[%s6905_s6 + $0x44] ss:$24 sps:$4 sm:$0xff]  }
 0x124   : > { %2419 = vmatpush1.bf16.msra.mxu1 %v5848_v3  ;;  %v5938_v3 = vld [vmem:[%s6905_s6 + $0x370] ss:$24 sps:$4 sm:$0xff]  }
 0x125   : > { %2420 = vmatprep.subr.bf16.mxu1 %v5856_v4  ;;  %v5946_v4 = vld [vmem:[%s6905_s6 + $0x344] ss:$24 sps:$4 sm:$0xff]  }
 0x126   : > { %2378 = vmatpush1.bf16.msra.mxu0 %v5851_v5  ;;  %v5941_v5 = vld [vmem:[%s6905_s6 + $0x40] ss:$24 sps:$4 sm:$0xff]  }
 0x127   : > { %2379 = vmatprep.subr.bf16.mxu0 %v5859_v7  ;;  %v5949_v7 = vld [vmem:[%s6905_s6 + $0x14] ss:$24 sps:$4 sm:$0xff]  }
 0x128   : > { %2421 = vmatpush1.bf16.msra.mxu1 %v5854_v8  ;;  %v5944_v8 = vld [vmem:[%s6905_s6 + $0x340] ss:$24 sps:$4 sm:$0xff]  }
 0x129   : > { %2422 = vmatprep.subr.bf16.mxu1 %v5862_v9  ;;  %v5952_v9 = vld [vmem:[%s6905_s6 + $0x314] ss:$24 sps:$4 sm:$0xff]  }
 0x12a   : > { %2380 = vmatpush2.bf16.msra.mxu0 %v5857_v10  ;;  %v5947_v10 = vld [vmem:[%s6905_s6 + $0x10] ss:$24 sps:$4 sm:$0xff]  }
 0x12b   : > { %2381 = vmatprep.subr.bf16.mxu0 %v5865_v11  ;;  %v5955_v11 = vld [vmem:[%s6905_s6 + $0x2e4] ss:$24 sps:$4 sm:$0xff]  }
 0x12c   : > { %2423 = vmatpush2.bf16.msra.mxu1 %v5860_v12  ;;  %v5950_v12 = vld [vmem:[%s6905_s6 + $0x310] ss:$24 sps:$4 sm:$0xff]  }
 0x12d   : > { %2424 = vmatprep.subr.bf16.mxu1 %v5868_v13  ;;  %v5958_v13 = vld [vmem:[%s6905_s6 + $0x5e4] ss:$24 sps:$4 sm:$0xff]  }
 0x12e   : > { %2382 = vmatpush2.bf16.msra.mxu0 %v5863_v14  ;;  %v5953_v14 = vld [vmem:[%s6905_s6 + $0x2e0] ss:$24 sps:$4 sm:$0xff]  }
 0x12f   : > { %2383 = vmatprep.subr.bf16.mxu0 %v5871_v15  ;;  %v5961_v15 = vld [vmem:[%s6905_s6 + $0x2b4] ss:$24 sps:$4 sm:$0xff]  }
 0x130   : > { %2425 = vmatpush2.bf16.msra.mxu1 %v5866_v16  ;;  %v5956_v16 = vld [vmem:[%s6905_s6 + $0x5e0] ss:$24 sps:$4 sm:$0xff]  }
 0x131   : > { %2426 = vmatprep.subr.bf16.mxu1 %v5874_v17  ;;  %v5964_v17 = vld [vmem:[%s6905_s6 + $0x5b4] ss:$24 sps:$4 sm:$0xff]  }
 0x132   : > { %2384 = vmatpush2.bf16.msra.mxu0 %v5869_v18  ;;  %v5959_v18 = vld [vmem:[%s6905_s6 + $0x2b0] ss:$24 sps:$4 sm:$0xff]  }
 0x133   : > { %2385 = vmatprep.subr.bf16.mxu0 %v5877_v19  ;;  %v5967_v19 = vld [vmem:[%s6905_s6 + $0x284] ss:$24 sps:$4 sm:$0xff]  }
 0x134   : > { %2427 = vmatpush2.bf16.msra.mxu1 %v5872_v20  ;;  %v5962_v20 = vld [vmem:[%s6905_s6 + $0x5b0] ss:$24 sps:$4 sm:$0xff]  }
 0x135   : > { %2428 = vmatprep.subr.bf16.mxu1 %v5880_v21  ;;  %v5965_v21 = vld [vmem:[%s6905_s6 + $0x280] ss:$24 sps:$4 sm:$0xff]  }
 0x136   : > { %2386 = vmatpush2.bf16.msra.mxu0 %v5875_v22  ;;  %v5970_v22 = vld [vmem:[%s6905_s6 + $0x584] ss:$24 sps:$4 sm:$0xff]  }
 0x137   : > { %2387 = vmatprep.subr.bf16.mxu0 %v5883_v23  ;;  %v5968_v23 = vld [vmem:[%s6905_s6 + $0x580] ss:$24 sps:$4 sm:$0xff]  }
 0x138   : > { %2429 = vmatpush2.bf16.msra.mxu1 %v5878_v24  ;;  %v5973_v24 = vld [vmem:[%s6905_s6 + $0x254] ss:$24 sps:$4 sm:$0xff]  }
 0x139   : > { %2430 = vmatprep.subr.bf16.mxu1 %v5886_v25  ;;  %v5976_v25 = vld [vmem:[%s6905_s6 + $0x554] ss:$24 sps:$4 sm:$0xff]  }
 0x13a   : > { %2388 = vmatpush2.bf16.msra.mxu0 %v5881_v27  ;;  %v5971_v27 = vld [vmem:[%s6905_s6 + $0x250] ss:$24 sps:$4 sm:$0xff]  }
 0x13b   : > { %2389 = vmatprep.subr.bf16.mxu0 %v5889_v28  ;;  %v5974_v28 = vld [vmem:[%s6905_s6 + $0x550] ss:$24 sps:$4 sm:$0xff]  }
 0x13c   : > { %2431 = vmatpush2.bf16.msra.mxu1 %v5884_v30  ;;  %v5979_v30 = vld [vmem:[%s6905_s6 + $0x224] ss:$24 sps:$4 sm:$0xff]  }
 0x13d   : > { %2432 = vmatprep.subr.bf16.mxu1 %v5892_v31  ;;  %v5982_v31 = vld [vmem:[%s6905_s6 + $0x524] ss:$24 sps:$4 sm:$0xff]  }
 0x13e   : > { %2390 = vmatpush2.bf16.msra.mxu0 %v5887_v32  ;;  %v5977_v32 = vld [vmem:[%s6905_s6 + $0x220] ss:$24 sps:$4 sm:$0xff]  }
 0x13f   : > { %2391 = vmatprep.subr.bf16.mxu0 %v5895_v33  ;;  %v5980_v33 = vld [vmem:[%s6905_s6 + $0x520] ss:$24 sps:$4 sm:$0xff]  }
 0x140   : > { %2433 = vmatpush2.bf16.msra.mxu1 %v5890_v34  ;;  %v5985_v34 = vld [vmem:[%s6905_s6 + $0x1f4] ss:$24 sps:$4 sm:$0xff]  }
 0x141   : > { %2434 = vmatprep.subr.bf16.mxu1 %v5898_v35  ;;  %v5988_v35 = vld [vmem:[%s6905_s6 + $0x4f4] ss:$24 sps:$4 sm:$0xff]  }
 0x142   : > { %2392 = vmatpush2.bf16.msra.mxu0 %v5893_v36  ;;  %v5983_v36 = vld [vmem:[%s6905_s6 + $0x1f0] ss:$24 sps:$4 sm:$0xff]  }
 0x143   : > { %2393 = vmatprep.subr.bf16.mxu0 %v5901_v38  ;;  %v5991_v38 = vld [vmem:[%s6905_s6 + $0x1c4] ss:$24 sps:$4 sm:$0xff]  }
 0x144   : > { %2435 = vmatpush2.bf16.msra.mxu1 %v5896_v39  ;;  %v5986_v39 = vld [vmem:[%s6905_s6 + $0x4f0] ss:$24 sps:$4 sm:$0xff]  }
 0x145   : > { %2436 = vmatprep.subr.bf16.mxu1 %v5904_v40  ;;  %v5994_v40 = vld [vmem:[%s6905_s6 + $0x4c4] ss:$24 sps:$4 sm:$0xff]  }
 0x146   : > { %2394 = vmatpush2.bf16.msra.mxu0 %v5899_v41  ;;  %v5989_v41 = vld [vmem:[%s6905_s6 + $0x1c0] ss:$24 sps:$4 sm:$0xff]  }
 0x147   : > { %2449 = vmatprep.subr.bf16.mxu0 %v5907_v42  ;;  %v5997_v42 = vld [vmem:[%s6905_s6 + $0x194] ss:$24 sps:$4 sm:$0xff]  }
 0x148   : > { %2437 = vmatpush2.bf16.msra.mxu1 %v5902_v43  ;;  %v5992_v43 = vld [vmem:[%s6905_s6 + $0x4c0] ss:$24 sps:$4 sm:$0xff]  }
 0x149   : > { %2396 = vmatmul.mubr.bf16.vlgmr.msra.gmra.mxu0 %v7000_v29  ;;  %2492 = vmatprep.subr.bf16.mxu1 %v5910_v44  ;;  %v6000_v44 = vld [vmem:[%s6905_s6 + $0x494] ss:$24 sps:$4 sm:$0xff]  }
 0x14a   : > { %2450 = vmatpush1.bf16.msra.mxu0 %v5905_v45  ;;  %2481 = vmatprep.mubr.bf16.mxu0 %v6972_v0  ;;  %v5925_v0 = vld [vmem:[%s6905_s6 + $0xd4] ss:$24 sps:$4 sm:$0xff]   ;;  %v5995_v45 = vld [vmem:[%s6905_s6 + $0x190] ss:$24 sps:$4 sm:$0xff]  }
 0x14b   : > { %2439 = vmatmul.mubr.bf16.vlgmr.msra.gmra.mxu1 %v7070_v37  ;;  %2451 = vmatprep.subr.bf16.mxu0 %v5913_v46  ;;  %v6003_v46 = vld [vmem:[%s6905_s6 + $0x764] ss:$24 sps:$4 sm:$0xff]  }
 0x14c   : > { %2493 = vmatpush1.bf16.msra.mxu1 %v5908_v47  ;;  %2524 = vmatprep.mubr.bf16.mxu1 %v6978_v6  ;;  %v5931_v6 = vld [vmem:[%s6905_s6 + $0xa4] ss:$24 sps:$4 sm:$0xff]   ;;  %v5998_v47 = vld [vmem:[%s6905_s6 + $0x490] ss:$24 sps:$4 sm:$0xff]  }
 0x14d   : > { %2494 = vmatprep.subr.bf16.mxu1 %v5916_v48  ;;  %v6015_v48 = vld [vmem:[%s6914_s28 + $0x154] ss:$24 sps:$4 sm:$0xff]  }
 0x14e   : > { %2452 = vmatpush1.bf16.msra.mxu0 %v5911_v49  ;;  %v6001_v49 = vld [vmem:[%s6905_s6 + $0x760] ss:$24 sps:$4 sm:$0xff]  }
 0x14f   : > { %2453 = vmatprep.subr.bf16.mxu0 %v5919_v50  ;;  %v6006_v50 = vld [vmem:[%s6905_s6 + $0x734] ss:$24 sps:$4 sm:$0xff]  }
 0x150   : > { %2495 = vmatpush1.bf16.msra.mxu1 %v5914_v51  ;;  %v6013_v51 = vld [vmem:[%s6914_s28 + $0x150] ss:$24 sps:$4 sm:$0xff]  }
 0x151   : > { %2496 = vmatprep.subr.bf16.mxu1 %v5922_v52  ;;  %v6021_v52 = vld [vmem:[%s6914_s28 + $0x124] ss:$24 sps:$4 sm:$0xff]  }
 0x152   : > { %2454 = vmatpush1.bf16.msra.mxu0 %v5917_v53  ;;  %v6004_v53 = vld [vmem:[%s6905_s6 + $0x730] ss:$24 sps:$4 sm:$0xff]  }
 0x153   : > { %2455 = vmatprep.subr.bf16.mxu0 %v5925_v0  ;;  %v6009_v0 = vld [vmem:[%s6905_s6 + $0x704] ss:$24 sps:$4 sm:$0xff]  }
 0x154   : > { %2497 = vmatpush1.bf16.msra.mxu1 %v5920_v54  ;;  %v6019_v54 = vld [vmem:[%s6914_s28 + $0x120] ss:$24 sps:$4 sm:$0xff]  }
 0x155   : > { %2498 = vmatprep.subr.bf16.mxu1 %v5928_v55  ;;  %v6027_v55 = vld [vmem:[%s6914_s28 + $0xf4] ss:$24 sps:$4 sm:$0xff]  }
 0x156   : > { %2456 = vmatpush1.bf16.msra.mxu0 %v5923_v56  ;;  %v6007_v56 = vld [vmem:[%s6905_s6 + $0x700] ss:$24 sps:$4 sm:$0xff]  }
 0x157   : > { %2457 = vmatprep.subr.bf16.mxu0 %v5931_v6  ;;  %v6012_v6 = vld [vmem:[%s6905_s6 + $0x6d4] ss:$24 sps:$4 sm:$0xff]  }
 0x158   : > { %2499 = vmatpush1.bf16.msra.mxu1 %v5926_v57  ;;  %v6033_v57 = vld [vmem:[%s6914_s28 + $0xc4] ss:$24 sps:$4 sm:$0xff]  }
 0x159   : > { %2500 = vmatprep.subr.bf16.mxu1 %v5934_v59  ;;  %v6010_v59 = vld [vmem:[%s6905_s6 + $0x6d0] ss:$24 sps:$4 sm:$0xff]  }
 0x15a   : > { %2458 = vmatpush1.bf16.msra.mxu0 %v5929_v60  ;;  %v6039_v60 = vld [vmem:[%s6914_s28 + $0x94] ss:$24 sps:$4 sm:$0xff]  }
 0x15b   : > { %2459 = vmatprep.subr.bf16.mxu0 %v5937_v61  ;;  %v6016_v61 = vld [vmem:[%s6905_s6 + $0x6a0] ss:$24 sps:$4 sm:$0xff]  }
 0x15c   : > { %2501 = vmatpush1.bf16.msra.mxu1 %v5932_v62  ;;  %v6024_v62 = vld [vmem:[%s6905_s6 + $0x674] ss:$24 sps:$4 sm:$0xff]  }
 0x15d   : > { %2502 = vmatprep.subr.bf16.mxu1 %v5940_v63  ;;  %v6037_v63 = vld [vmem:[%s6914_s28 + $0x90] ss:$24 sps:$4 sm:$0xff]  }
 0x15e   : > { %2460 = vmatpush1.bf16.msra.mxu0 %v5935_v1  ;;  %v6045_v1 = vld [vmem:[%s6914_s28 + $0x64] ss:$24 sps:$4 sm:$0xff]  }
 0x15f   : > { %2461 = vmatprep.subr.bf16.mxu0 %v5943_v2  ;;  %v6022_v2 = vld [vmem:[%s6905_s6 + $0x670] ss:$24 sps:$4 sm:$0xff]  }
 0x160   : > { %2503 = vmatpush1.bf16.msra.mxu1 %v5938_v3  ;;  %v6030_v3 = vld [vmem:[%s6905_s6 + $0x644] ss:$24 sps:$4 sm:$0xff]  }
 0x161   : > { %2504 = vmatprep.subr.bf16.mxu1 %v5946_v4  ;;  %v6043_v4 = vld [vmem:[%s6914_s28 + $0x60] ss:$24 sps:$4 sm:$0xff]  }
 0x162   : > { %2462 = vmatpush1.bf16.msra.mxu0 %v5941_v5  ;;  %v6051_v5 = vld [vmem:[%s6914_s28 + $0x34] ss:$24 sps:$4 sm:$0xff]  }
 0x163   : > { %2463 = vmatprep.subr.bf16.mxu0 %v5949_v7  ;;  %v6028_v7 = vld [vmem:[%s6905_s6 + $0x640] ss:$24 sps:$4 sm:$0xff]  }
 0x164   : > { %2505 = vmatpush1.bf16.msra.mxu1 %v5944_v8  ;;  %v6036_v8 = vld [vmem:[%s6905_s6 + $0x614] ss:$24 sps:$4 sm:$0xff]  }
 0x165   : > { %2506 = vmatprep.subr.bf16.mxu1 %v5952_v9  ;;  %v6049_v9 = vld [vmem:[%s6914_s28 + $0x30] ss:$24 sps:$4 sm:$0xff]  }
 0x166   : > { %2464 = vmatpush1.bf16.msra.mxu0 %v5947_v10  ;;  %v6057_v10 = vld [vmem:[%s6914_s28 + $0x4] ss:$24 sps:$4 sm:$0xff]  }
 0x167   : > { %2465 = vmatprep.subr.bf16.mxu0 %v5955_v11  ;;  %v6034_v11 = vld [vmem:[%s6905_s6 + $0x610] ss:$24 sps:$4 sm:$0xff]  }
 0x168   : > { %2507 = vmatpush1.bf16.msra.mxu1 %v5950_v12  ;;  %v6042_v12 = vld [vmem:[%s6905_s6 + $0x8e4] ss:$24 sps:$4 sm:$0xff]  }
 0x169   : > { %2508 = vmatprep.subr.bf16.mxu1 %v5958_v13  ;;  %v6055_v13 = vld [vmem:[%s6914_s28] ss:$24 sps:$4 sm:$0xff]  }
 0x16a   : > { %2466 = vmatpush2.bf16.msra.mxu0 %v5953_v14  ;;  %v6063_v14 = vld [vmem:[%s6914_s28 + $0x2d4] ss:$24 sps:$4 sm:$0xff]  }
 0x16b   : > { %2467 = vmatprep.subr.bf16.mxu0 %v5961_v15  ;;  %v6040_v15 = vld [vmem:[%s6905_s6 + $0x8e0] ss:$24 sps:$4 sm:$0xff]  }
 0x16c   : > { %2509 = vmatpush2.bf16.msra.mxu1 %v5956_v16  ;;  %v6048_v16 = vld [vmem:[%s6905_s6 + $0x8b4] ss:$24 sps:$4 sm:$0xff]  }
 0x16d   : > { %2510 = vmatprep.subr.bf16.mxu1 %v5964_v17  ;;  %v6061_v17 = vld [vmem:[%s6914_s28 + $0x2d0] ss:$24 sps:$4 sm:$0xff]  }
 0x16e   : > { %2468 = vmatpush2.bf16.msra.mxu0 %v5959_v18  ;;  %v6069_v18 = vld [vmem:[%s6914_s28 + $0x2a4] ss:$24 sps:$4 sm:$0xff]  }
 0x16f   : > { %2469 = vmatprep.subr.bf16.mxu0 %v5967_v19  ;;  %v6046_v19 = vld [vmem:[%s6905_s6 + $0x8b0] ss:$24 sps:$4 sm:$0xff]  }
 0x170   : > { %2511 = vmatpush2.bf16.msra.mxu1 %v5962_v20  ;;  %v6054_v20 = vld [vmem:[%s6905_s6 + $0x884] ss:$24 sps:$4 sm:$0xff]  }
 0x171   : > { %2512 = vmatprep.subr.bf16.mxu1 %v5970_v22  ;;  %v6075_v22 = vld [vmem:[%s6914_s28 + $0x274] ss:$24 sps:$4 sm:$0xff]  }
 0x172   : > { %2470 = vmatpush2.bf16.msra.mxu0 %v5965_v21  ;;  %v6067_v21 = vld [vmem:[%s6914_s28 + $0x2a0] ss:$24 sps:$4 sm:$0xff]  }
 0x173   : > { %2471 = vmatprep.subr.bf16.mxu0 %v5973_v24  ;;  %v6060_v24 = vld [vmem:[%s6905_s6 + $0x854] ss:$24 sps:$4 sm:$0xff]  }
 0x174   : > { %2513 = vmatpush2.bf16.msra.mxu1 %v5968_v23  ;;  %v6052_v23 = vld [vmem:[%s6905_s6 + $0x880] ss:$24 sps:$4 sm:$0xff]  }
 0x175   : > { %2514 = vmatprep.subr.bf16.mxu1 %v5976_v25  ;;  %v6073_v25 = vld [vmem:[%s6914_s28 + $0x270] ss:$24 sps:$4 sm:$0xff]  }
 0x176   : > { %2472 = vmatpush2.bf16.msra.mxu0 %v5971_v27  ;;  %v6081_v27 = vld [vmem:[%s6914_s28 + $0x244] ss:$24 sps:$4 sm:$0xff]  }
 0x177   : > { %2473 = vmatprep.subr.bf16.mxu0 %v5979_v30  ;;  %v6066_v30 = vld [vmem:[%s6905_s6 + $0x824] ss:$24 sps:$4 sm:$0xff]  }
 0x178   : > { %2515 = vmatpush2.bf16.msra.mxu1 %v5974_v28  ;;  %v6058_v28 = vld [vmem:[%s6905_s6 + $0x850] ss:$24 sps:$4 sm:$0xff]  }
 0x179   : > { %2516 = vmatprep.subr.bf16.mxu1 %v5982_v31  ;;  %v6079_v31 = vld [vmem:[%s6914_s28 + $0x240] ss:$24 sps:$4 sm:$0xff]  }
 0x17a   : > { %2474 = vmatpush2.bf16.msra.mxu0 %v5977_v32  ;;  %v6087_v32 = vld [vmem:[%s6914_s28 + $0x214] ss:$24 sps:$4 sm:$0xff]  }
 0x17b   : > { %2475 = vmatprep.subr.bf16.mxu0 %v5985_v34  ;;  %v6072_v34 = vld [vmem:[%s6905_s6 + $0x7f4] ss:$24 sps:$4 sm:$0xff]  }
 0x17c   : > { %2517 = vmatpush2.bf16.msra.mxu1 %v5980_v33  ;;  %v6064_v33 = vld [vmem:[%s6905_s6 + $0x820] ss:$24 sps:$4 sm:$0xff]  }
 0x17d   : > { %2518 = vmatprep.subr.bf16.mxu1 %v5988_v35  ;;  %v6085_v35 = vld [vmem:[%s6914_s28 + $0x210] ss:$24 sps:$4 sm:$0xff]  }
 0x17e   : > { %2476 = vmatpush2.bf16.msra.mxu0 %v5983_v36  ;;  %v6090_v36 = vld [vmem:[%s6914_s28 + $0x1e4] ss:$24 sps:$4 sm:$0xff]  }
 0x17f   : > { %2477 = vmatprep.subr.bf16.mxu0 %v5991_v38  ;;  %v721_v38 = vlaneseq }
 0x180   : > { %2519 = vmatpush2.bf16.msra.mxu1 %v5986_v39  ;;  %v6070_v39 = vld [vmem:[%s6905_s6 + $0x7f0] ss:$24 sps:$4 sm:$0xff]  }
 0x181   : > { %2520 = vmatprep.subr.bf16.mxu1 %v5994_v40  ;;  %v6078_v40 = vld [vmem:[%s6905_s6 + $0x7c4] ss:$24 sps:$4 sm:$0xff]  }
 0x182   : > { %2478 = vmatpush2.bf16.msra.mxu0 %v5989_v41  ;;  %v6088_v41 = vld [vmem:[%s6914_s28 + $0x1e0] ss:$24 sps:$4 sm:$0xff]  }
 0x183   : > { %2479 = vmatprep.subr.bf16.mxu0 %v5997_v42 }
 0x184   : > { %2521 = vmatpush2.bf16.msra.mxu1 %v5992_v43  ;;  %v6093_v43 = vld [vmem:[%s6914_s28 + $0x1b4] ss:$24 sps:$4 sm:$0xff]  }
 0x185   : > { %2522 = vmatprep.subr.bf16.mxu1 %v6000_v44  ;;  %v7268_v44 = vshrl.u32 %v721_v38, 7  ;;  %v6207_v38 = vld [vmem:[%s6914_s28 + $0x6f4] ss:$24 sps:$4 sm:$0xff]  }
 0x186   : > { %2480 = vmatpush2.bf16.msra.mxu0 %v5995_v45  ;;  %v6076_v45 = vld [vmem:[%s6905_s6 + $0x7c0] ss:$24 sps:$4 sm:$0xff]  }
 0x187   : > { %2535 = vmatprep.subr.bf16.mxu0 %v6003_v46  ;;  %v6084_v46 = vld [vmem:[%s6905_s6 + $0x794] ss:$24 sps:$4 sm:$0xff]  }
 0x188   : > { %2523 = vmatpush2.bf16.msra.mxu1 %v5998_v47  ;;  %v6091_v47 = vld [vmem:[%s6914_s28 + $0x1b0] ss:$24 sps:$4 sm:$0xff]  }
 0x189   : > { %2482 = vmatmul.mubr.bf16.vlgmr.msra.gmra.mxu0 %v6996_v26  ;;  %4336 = vmatprep.subr.bf16.mxu1 %v6015_v48  ;;  %v6025_v26 = vld [vmem:[%s6914_s28 + $0xf0] ss:$24 sps:$4 sm:$0xff]   ;;  %v2225_v42 = vpop.f32.mrf.mxu0  ;;  %v7275_v48 = vld [vmem:[%s315_s1] sm:$0x3f] }
 0x18a   : > { %2536 = vmatpush1.bf16.msra.mxu0 %v6001_v49  ;;  %2567 = vmatprep.mubr.bf16.mxu0 %v7031_v58  ;;  %v6031_v58 = vld [vmem:[%s6914_s28 + $0xc0] ss:$24 sps:$4 sm:$0xff]  }
 0x18b   : > { %2525 = vmatmul.mubr.bf16.vlgmr.msra.gmra.mxu1 %v7000_v29  ;;  %2537 = vmatprep.subr.bf16.mxu0 %v6006_v50  ;;  %v6018_v29 = vld [vmem:[%s6905_s6 + $0x6a4] ss:$24 sps:$4 sm:$0xff]   ;;  %v2227_v49 = vpop.f32.mrf.mxu0  ;;  %v2268_v50 = vpop.f32.mrf.mxu1 }
 0x18c   : > { %4337 = vmatpush1.bf16.msra.mxu1 %v6013_v51  ;;  %v6096_v51 = vld [vmem:[%s6914_s28 + $0x184] ss:$24 sps:$4 sm:$0xff]  }
 0x18d   : > { %4338 = vmatprep.subr.bf16.mxu1 %v6021_v52  ;;  %v727_v52 = vsub.s32 1, %v7268_v44 }
 0x18e   : > { %2538 = vmatpush1.bf16.msra.mxu0 %v6004_v53  ;;  %v6082_v53 = vld [vmem:[%s6905_s6 + $0x790] ss:$24 sps:$4 sm:$0xff]  }
 0x18f   : > { %2539 = vmatprep.subr.bf16.mxu0 %v6009_v0  ;;  %v723_v0 = vsub.s32 0, %v7268_v44 }
 0x190   : > { %4339 = vmatpush1.bf16.msra.mxu1 %v6019_v54  ;;  %v6094_v54 = vld [vmem:[%s6914_s28 + $0x180] ss:$24 sps:$4 sm:$0xff]  }
 0x191   : > { %4340 = vmatprep.subr.bf16.mxu1 %v6027_v55  ;;  %v6099_v55 = vld [vmem:[%s6914_s28 + $0x454] ss:$24 sps:$4 sm:$0xff]  }
 0x192   : > { %2540 = vmatpush1.bf16.msra.mxu0 %v6007_v56  ;;  %v2229_v56 = vpop.f32.mrf.mxu0 }
 0x193   : > { %2541 = vmatprep.subr.bf16.mxu0 %v6012_v6  ;;  %v2270_v6 = vpop.f32.mrf.mxu1 }
 0x194   : > { %4341 = vmatpush1.bf16.msra.mxu1 %v6025_v26  ;;  %v728_v26 = vrot.slane %v7275_v48, %v727_v52  ;;  %v6225_v52 = vld [vmem:[%s6914_s28 + $0x664] ss:$24 sps:$4 sm:$0xff]  }
 0x195   : > { %4342 = vmatprep.subr.bf16.mxu1 %v6033_v57  ;;  %v724_v57 = vrot.slane %v7275_v48, %v723_v0  ;;  %v6223_v0 = vld [vmem:[%s6914_s28 + $0x660] ss:$24 sps:$4 sm:$0xff]  }
 0x196   : > { %2542 = vmatpush1.bf16.msra.mxu0 %v6010_v59  ;;  %v6097_v59 = vld [vmem:[%s6914_s28 + $0x450] ss:$24 sps:$4 sm:$0xff]  }
 0x197   : > { %2543 = vmatprep.subr.bf16.mxu0 %v6018_v29  ;;  %v6102_v29 = vld [vmem:[%s6914_s28 + $0x424] ss:$24 sps:$4 sm:$0xff]  }
 0x198   : > { %4343 = vmatpush1.bf16.msra.mxu1 %v6031_v58  ;;  %v2231_v58 = vpop.f32.mrf.mxu0 }
 0x199   : > { %4344 = vmatprep.subr.bf16.mxu1 %v6039_v60  ;;  %v2272_v60 = vpop.f32.mrf.mxu1 }
 0x19a   : > { %2544 = vmatpush1.bf16.msra.mxu0 %v6016_v61  ;;  %v2228_v61 = vadd.f32 %v2227_v49, %v728_v26  ;;  %v6121_v49 = vld [vmem:[%s6914_s28 + $0x5d0] ss:$24 sps:$4 sm:$0xff]  }
 0x19b   : > { %2545 = vmatprep.subr.bf16.mxu0 %v6024_v62  ;;  %v2230_v62 = vadd.f32 %v2229_v56, %v724_v57  ;;  %v6127_v56 = vld [vmem:[%s6914_s28 + $0x570] ss:$24 sps:$4 sm:$0xff]  }
 0x19c   : > { %4345 = vmatpush1.bf16.msra.mxu1 %v6037_v63  ;;  %v2226_v63 = vadd.f32 %v2225_v42, %v724_v57  ;;  %v6213_v42 = vld [vmem:[%s6914_s28 + $0x6c4] ss:$24 sps:$4 sm:$0xff]  }
 0x19d   : > { %4346 = vmatprep.subr.bf16.mxu1 %v6045_v1  ;;  %v6237_v57 = vld [vmem:[%s6914_s28 + $0x604] ss:$24 sps:$4 sm:$0xff]  }
 0x19e   : > { %2546 = vmatpush1.bf16.msra.mxu0 %v6022_v2  ;;  %v2232_v2 = vadd.f32 %v2231_v58, %v728_v26  ;;  %v6132_v26 = vld [vmem:[%s6914_s28 + $0x544] ss:$24 sps:$4 sm:$0xff]   ;;  %v6135_v58 = vld [vmem:[%s6914_s28 + $0x514] ss:$24 sps:$4 sm:$0xff]  }
 0x19f   : > { %2547 = vmatprep.subr.bf16.mxu0 %v6030_v3  ;;  %v6100_v3 = vld [vmem:[%s6914_s28 + $0x420] ss:$24 sps:$4 sm:$0xff]  }
 0x1a0   : > { %4347 = vmatpush1.bf16.msra.mxu1 %v6043_v4  ;;  %v2274_v4 = vpop.f32.mrf.mxu1 }
 0x1a1   : > { %4348 = vmatprep.subr.bf16.mxu1 %v6051_v5 }
 0x1a2   : > { %2548 = vmatpush1.bf16.msra.mxu0 %v6028_v7  ;;  %v6105_v7 = vld [vmem:[%s6914_s28 + $0x3f4] ss:$24 sps:$4 sm:$0xff]  }
 0x1a3   : > { %2549 = vmatprep.subr.bf16.mxu0 %v6036_v8  ;;  %v2271_v8 = vadd.f32 %v2270_v6, %v2228_v61  ;;  %v6229_v6 = vld [vmem:[%s6914_s28 + $0x630] ss:$24 sps:$4 sm:$0xff]  }
 0x1a4   : > { %4349 = vmatpush1.bf16.msra.mxu1 %v6049_v9  ;;  %v2273_v9 = vadd.f32 %v2272_v60, %v2230_v62  ;;  %v6243_v60 = vld [vmem:[%s6914_s28 + $0x8d4] ss:$24 sps:$4 sm:$0xff]   ;;  %v6133_v61 = vld [vmem:[%s6914_s28 + $0x510] ss:$24 sps:$4 sm:$0xff]  }
 0x1a5   : > { %4350 = vmatprep.subr.bf16.mxu1 %v6057_v10  ;;  %v2269_v10 = vadd.f32 %v2268_v50, %v2226_v63  ;;  %v6217_v50 = vld [vmem:[%s6914_s28 + $0x690] ss:$24 sps:$4 sm:$0xff]   ;;  %v6138_v63 = vld [vmem:[%s6914_s28 + $0x4e4] ss:$24 sps:$4 sm:$0xff]  }
 0x1a6   : > { %2550 = vmatpush1.bf16.msra.mxu0 %v6034_v11  ;;  %v6241_v62 = vld [vmem:[%s6914_s28 + $0x8d0] ss:$24 sps:$4 sm:$0xff]  }
 0x1a7   : > { %2551 = vmatprep.subr.bf16.mxu0 %v6042_v12  ;;  %v2275_v12 = vadd.f32 %v2274_v4, %v2232_v2  ;;  %v6136_v2 = vld [vmem:[%s6914_s28 + $0x4e0] ss:$24 sps:$4 sm:$0xff]  }
 0x1a8   : > { %4351 = vmatpush1.bf16.msra.mxu1 %v6055_v13 }
 0x1a9   : > { %4352 = vmatprep.subr.bf16.mxu1 %v6063_v14 }
 0x1aa   : > { %2552 = vmatpush2.bf16.msra.mxu0 %v6040_v15 }
 0x1ab   : > { %2553 = vmatprep.subr.bf16.mxu0 %v6048_v16 }
 0x1ac   : > { %4353 = vmatpush2.bf16.msra.mxu1 %v6061_v17  ;;  %v6108_v17 = vld [vmem:[%s6914_s28 + $0x3c4] ss:$24 sps:$4 sm:$0xff]  }
 0x1ad   : > { %4354 = vmatprep.subr.bf16.mxu1 %v6069_v18 }
 0x1ae   : > { %2554 = vmatpush2.bf16.msra.mxu0 %v6046_v19 }
 0x1af   : > { %2555 = vmatprep.subr.bf16.mxu0 %v6054_v20 }
 0x1b0   : > { %4355 = vmatpush2.bf16.msra.mxu1 %v6067_v21 }
 0x1b1   : > { %4356 = vmatprep.subr.bf16.mxu1 %v6075_v22  ;;  %v6106_v22 = vld [vmem:[%s6914_s28 + $0x3c0] ss:$24 sps:$4 sm:$0xff]  }
 0x1b2   : > { %2556 = vmatpush2.bf16.msra.mxu0 %v6052_v23 }
 0x1b3   : > { %2557 = vmatprep.subr.bf16.mxu0 %v6060_v24  ;;  %v6111_v24 = vld [vmem:[%s6914_s28 + $0x394] ss:$24 sps:$4 sm:$0xff]  }
 0x1b4   : > { %4357 = vmatpush2.bf16.msra.mxu1 %v6073_v25 }
 0x1b5   : > { %4358 = vmatprep.subr.bf16.mxu1 %v6081_v27 }
 0x1b6   : > { %2558 = vmatpush2.bf16.msra.mxu0 %v6058_v28  ;;  %v6195_v28 = vld [vmem:[%s6914_s28 + $0x754] ss:$24 sps:$4 sm:$0xff]  }
 0x1b7   : > { %2559 = vmatprep.subr.bf16.mxu0 %v6066_v30  ;;  %v6109_v30 = vld [vmem:[%s6914_s28 + $0x390] ss:$24 sps:$4 sm:$0xff]  }
 0x1b8   : > { %4359 = vmatpush2.bf16.msra.mxu1 %v6079_v31  ;;  %v6193_v31 = vld [vmem:[%s6914_s28 + $0x750] ss:$24 sps:$4 sm:$0xff]  }
 0x1b9   : > { %4360 = vmatprep.subr.bf16.mxu1 %v6087_v32  ;;  %v6114_v32 = vld [vmem:[%s6914_s28 + $0x364] ss:$24 sps:$4 sm:$0xff]  }
 0x1ba   : > { %2560 = vmatpush2.bf16.msra.mxu0 %v6064_v33  ;;  %v6201_v33 = vld [vmem:[%s6914_s28 + $0x724] ss:$24 sps:$4 sm:$0xff]  }
 0x1bb   : > { %2561 = vmatprep.subr.bf16.mxu0 %v6072_v34  ;;  %v6112_v34 = vld [vmem:[%s6914_s28 + $0x360] ss:$24 sps:$4 sm:$0xff]  }
 0x1bc   : > { %4361 = vmatpush2.bf16.msra.mxu1 %v6085_v35  ;;  %v6199_v35 = vld [vmem:[%s6914_s28 + $0x720] ss:$24 sps:$4 sm:$0xff]  }
 0x1bd   : > { %4362 = vmatprep.subr.bf16.mxu1 %v6090_v36  ;;  %v6117_v36 = vld [vmem:[%s6914_s28 + $0x334] ss:$24 sps:$4 sm:$0xff]  }
 0x1be   : > { %2562 = vmatpush2.bf16.msra.mxu0 %v6070_v39  ;;  %v6115_v39 = vld [vmem:[%s6914_s28 + $0x330] ss:$24 sps:$4 sm:$0xff]  }
 0x1bf   : > { %2563 = vmatprep.subr.bf16.mxu0 %v6078_v40  ;;  %v6205_v40 = vld [vmem:[%s6914_s28 + $0x6f0] ss:$24 sps:$4 sm:$0xff]  }
 0x1c0   : > { %4363 = vmatpush2.bf16.msra.mxu1 %v6088_v41  ;;  %v6120_v41 = vld [vmem:[%s6914_s28 + $0x304] ss:$24 sps:$4 sm:$0xff]  }
 0x1c1   : > { %4364 = vmatprep.subr.bf16.mxu1 %v6093_v43  ;;  %v6118_v43 = vld [vmem:[%s6914_s28 + $0x300] ss:$24 sps:$4 sm:$0xff]  }
 0x1c2   : > { %2564 = vmatpush2.bf16.msra.mxu0 %v6076_v45  ;;  %v6211_v45 = vld [vmem:[%s6914_s28 + $0x6c0] ss:$24 sps:$4 sm:$0xff]  }
 0x1c3   : > { %2565 = vmatprep.subr.bf16.mxu0 %v6084_v46  ;;  %v6123_v46 = vld [vmem:[%s6914_s28 + $0x5d4] ss:$24 sps:$4 sm:$0xff]  }
 0x1c4   : > { %4365 = vmatpush2.bf16.msra.mxu1 %v6091_v47  ;;  %v6219_v47 = vld [vmem:[%s6914_s28 + $0x694] ss:$24 sps:$4 sm:$0xff]  }
 0x1c5   : > { %4366 = vmatprep.subr.bf16.mxu1 %v6096_v51  ;;  %v6126_v51 = vld [vmem:[%s6914_s28 + $0x5a4] ss:$24 sps:$4 sm:$0xff]  }
 0x1c6   : > { %2566 = vmatpush2.bf16.msra.mxu0 %v6082_v53  ;;  %v6124_v53 = vld [vmem:[%s6914_s28 + $0x5a0] ss:$24 sps:$4 sm:$0xff]  }
 0x1c7   : > { %4379 = vmatprep.subr.bf16.mxu0 %v6099_v55  ;;  %v6231_v55 = vld [vmem:[%s6914_s28 + $0x634] ss:$24 sps:$4 sm:$0xff]  }
 0x1c8   : > { %4367 = vmatpush2.bf16.msra.mxu1 %v6094_v54  ;;  %v6129_v54 = vld [vmem:[%s6914_s28 + $0x574] ss:$24 sps:$4 sm:$0xff]  }
 0x1c9   : > { %v2311_v1 = vpop.f32.mrf.mxu0  ;;  %2568 = vmatmul.mubr.bf16.vlgmr.msra.gmra.mxu0 %v7070_v37  ;;  %v6103_v37 = vld [vmem:[%s6914_s28 + $0x3f0] ss:$24 sps:$4 sm:$0xff]   ;;  %4422 = vmatprep.subr.bf16.mxu1 %v6195_v28 }
 0x1ca   : > { %4380 = vmatpush1.bf16.msra.mxu0 %v6097_v59  ;;  %v2312_v15 = vadd.f32 %v2311_v1, %v2269_v10  ;;  %v6130_v59 = vld [vmem:[%s6914_s28 + $0x540] ss:$24 sps:$4 sm:$0xff]   ;;  %v6249_v1 = vld [vmem:[%s6914_s28 + $0x8a4] ss:$24 sps:$4 sm:$0xff]  }
 0x1cb   : > { %v2313_v5 = vpop.f32.mrf.mxu0  ;;  %4381 = vmatprep.subr.bf16.mxu0 %v6102_v29  ;;  %v6235_v29 = vld [vmem:[%s6914_s28 + $0x600] ss:$24 sps:$4 sm:$0xff]   ;;  %v2354_v4 = vpop.f32.mrf.mxu1 }
 0x1cc   : > { %v2314_v13 = vadd.f32 %v2313_v5, %v2271_v8  ;;  %v2578_v23 = vmax.f32 %v2312_v15, 0.0  ;;  %v6141_v5 = vld [vmem:[%s6914_s28 + $0x4b4] ss:$24 sps:$4 sm:$0xff]   ;;  %v6139_v8 = vld [vmem:[%s6914_s28 + $0x4b0] ss:$24 sps:$4 sm:$0xff]  }
 0x1cd   : > { %v2315_v11 = vpop.f32.mrf.mxu0  ;;  %v2356_v10 = vpop.f32.mrf.mxu1  ;;  %v6259_v15 = vld [vmem:[%s6914_s28 + $0x840] ss:$24 sps:$4 sm:$0xff]  }
 0x1ce   : > { %v2316_v14 = vadd.f32 %v2315_v11, %v2273_v9  ;;  %4382 = vmatpush1.bf16.msra.mxu0 %v6100_v3  ;;  %v2579_v20 = vmax.f32 %v2314_v13, 0.0  ;;  %v6247_v3 = vld [vmem:[%s6914_s28 + $0x8a0] ss:$24 sps:$4 sm:$0xff]   ;;  %v6253_v9 = vld [vmem:[%s6914_s28 + $0x870] ss:$24 sps:$4 sm:$0xff]   ;;  %v731_v13 = vsub.s32 2, %v7268_v44 }
 0x1cf   : > { %v2317_v16 = vpop.f32.mrf.mxu0  ;;  %4383 = vmatprep.subr.bf16.mxu0 %v6105_v7  ;;  %v6255_v7 = vld [vmem:[%s6914_s28 + $0x874] ss:$24 sps:$4 sm:$0xff]   ;;  %v6144_v11 = vld [vmem:[%s6914_s28 + $0x484] ss:$24 sps:$4 sm:$0xff]  }
 0x1d0   : > { %v2318_v18 = vadd.f32 %v2317_v16, %v2275_v12  ;;  %v2584_v19 = vmax.f32 %v2316_v14, 0.0  ;;  %v735_v12 = vsub.s32 3, %v7268_v44  ;;  %v6261_v14 = vld [vmem:[%s6914_s28 + $0x844] ss:$24 sps:$4 sm:$0xff]   ;;  %v2358_v16 = vpop.f32.mrf.mxu1 }
 0x1d2   : > { %v2585_v21 = vmax.f32 %v2318_v18, 0.0  ;;  %4384 = vmatpush1.bf16.msra.mxu0 %v6103_v37  ;;  %v7296_v27 = vpack.c.bf16 %v2584_v19, %v2578_v23  ;;  %v6142_v37 = vld [vmem:[%s6914_s28 + $0x480] ss:$24 sps:$4 sm:$0xff]   ;;  %v736_v18 = vrot.slane %v7275_v48, %v735_v12  ;;  %v732_v19 = vrot.slane %v7275_v48, %v731_v13  ;;  %v6171_v12 = vld [vmem:[%s6914_s28 + $0x2dc] ss:$24 sps:$4 sm:$0xff]  }
 0x1d3   : > { %4385 = vmatprep.subr.bf16.mxu0 %v6108_v17  ;;  %v6147_v17 = vld [vmem:[%s6914_s28 + $0x15c] ss:$24 sps:$4 sm:$0xff]   ;;  %v6169_v13 = vld [vmem:[%s6914_s28 + $0x2d8] ss:$24 sps:$4 sm:$0xff]  }
 0x1d4   : > { %v7294_v25 = vpack.c.bf16 %v2585_v21, %v2579_v20  ;;  %v6267_v20 = vld [vmem:[%s6914_s28 + $0x814] ss:$24 sps:$4 sm:$0xff]   ;;  %v6265_v21 = vld [vmem:[%s6914_s28 + $0x810] ss:$24 sps:$4 sm:$0xff]   ;;  %v2357_v23 = vadd.f32 %v2356_v10, %v736_v18 }
 0x1d5   : > { %v6168_v10 = vld [vmem:[%s6914_s28 + $0xc] ss:$24 sps:$4 sm:$0xff]  }
 0x1d6   : > { %4368 = vmatprep.mubr.bf16.mxu1 %v7294_v25  ;;  %4386 = vmatpush1.bf16.msra.mxu0 %v6106_v22  ;;  %v2360_v22 = vpop.f32.mrf.mxu1 }
 0x1d7   : > { %4369 = vmatmul.mubr.bf16.vlgmr.msra.gmra.mxu1 %v7296_v27  ;;  %4387 = vmatprep.subr.bf16.mxu0 %v6111_v24  ;;  %v2355_v24 = vadd.f32 %v2354_v4, %v732_v19  ;;  %v6157_v4 = vld [vmem:[%s6914_s28 + $0x98] ss:$24 sps:$4 sm:$0xff]  }
 0x1d8   : > { %4423 = vmatpush1.bf16.msra.mxu1 %v6193_v31  ;;  %v6271_v31 = vld [vmem:[%s6914_s28 + $0x7e0] ss:$24 sps:$4 sm:$0xff]  }
 0x1d9   : > { %4424 = vmatprep.subr.bf16.mxu1 %v6201_v33 }
 0x1da   : > { %4388 = vmatpush1.bf16.msra.mxu0 %v6109_v30  ;;  %v6273_v30 = vld [vmem:[%s6914_s28 + $0x7e4] ss:$24 sps:$4 sm:$0xff]  }
 0x1db   : > { %4389 = vmatprep.subr.bf16.mxu0 %v6114_v32 }
 0x1dc   : > { %4425 = vmatpush1.bf16.msra.mxu1 %v6199_v35 }
 0x1dd   : > { %4426 = vmatprep.subr.bf16.mxu1 %v6207_v38 }
 0x1de   : > { %4390 = vmatpush1.bf16.msra.mxu0 %v6112_v34  ;;  %v2359_v34 = vadd.f32 %v2358_v16, %v732_v19  ;;  %v6175_v16 = vld [vmem:[%s6914_s28 + $0x278] ss:$24 sps:$4 sm:$0xff]   ;;  %v6183_v19 = vld [vmem:[%s6914_s28 + $0x21c] ss:$24 sps:$4 sm:$0xff]  }
 0x1df   : > { %4391 = vmatprep.subr.bf16.mxu0 %v6117_v36 }
 0x1e0   : > { %4427 = vmatpush1.bf16.msra.mxu1 %v6205_v40  ;;  %v6279_v40 = vld [vmem:[%s6914_s28 + $0x7b4] ss:$24 sps:$4 sm:$0xff]  }
 0x1e1   : > { %4428 = vmatprep.subr.bf16.mxu1 %v6213_v42 }
 0x1e2   : > { %4392 = vmatpush1.bf16.msra.mxu0 %v6115_v39 }
 0x1e3   : > { %4393 = vmatprep.subr.bf16.mxu0 %v6120_v41  ;;  %v2361_v41 = vadd.f32 %v2360_v22, %v736_v18  ;;  %v6178_v18 = vld [vmem:[%s6914_s28 + $0x248] ss:$24 sps:$4 sm:$0xff]  }
 0x1e4   : > { %4429 = vmatpush1.bf16.msra.mxu1 %v6211_v45  ;;  %v6184_v22 = vld [vmem:[%s6914_s28 + $0x1e8] ss:$24 sps:$4 sm:$0xff]  }
 0x1e5   : > { %4430 = vmatprep.subr.bf16.mxu1 %v6219_v47 }
 0x1e6   : > { %4394 = vmatpush1.bf16.msra.mxu0 %v6118_v43  ;;  %v6277_v43 = vld [vmem:[%s6914_s28 + $0x7b0] ss:$24 sps:$4 sm:$0xff]  }
 0x1e7   : > { %4395 = vmatprep.subr.bf16.mxu0 %v6123_v46 }
 0x1e8   : > { %4431 = vmatpush1.bf16.msra.mxu1 %v6217_v50 }
 0x1e9   : > { %4432 = vmatprep.subr.bf16.mxu1 %v6225_v52 }
 0x1ea   : > { %4396 = vmatpush2.bf16.msra.mxu0 %v6121_v49 }
 0x1eb   : > { %4397 = vmatprep.subr.bf16.mxu0 %v6126_v51 }
 0x1ec   : > { %4433 = vmatpush1.bf16.msra.mxu1 %v6223_v0 }
 0x1ed   : > { %4434 = vmatprep.subr.bf16.mxu1 %v6231_v55 }
 0x1ee   : > { %4398 = vmatpush2.bf16.msra.mxu0 %v6124_v53  ;;  %v6285_v53 = vld [vmem:[%s6914_s28 + $0x784] ss:$24 sps:$4 sm:$0xff]  }
 0x1ef   : > { %4399 = vmatprep.subr.bf16.mxu0 %v6129_v54  ;;  %v6283_v54 = vld [vmem:[%s6914_s28 + $0x780] ss:$24 sps:$4 sm:$0xff]  }
 0x1f0   : > { %4435 = vmatpush1.bf16.msra.mxu1 %v6229_v6 }
 0x1f1   : > { %4436 = vmatprep.subr.bf16.mxu1 %v6237_v57  ;;  %v6291_v57 = vld [vmem:[%s6914_s28 + $0x45c] ss:$24 sps:$4 sm:$0xff]  }
 0x1f2   : > { %4400 = vmatpush2.bf16.msra.mxu0 %v6127_v56 }
 0x1f3   : > { %4401 = vmatprep.subr.bf16.mxu0 %v6132_v26 }
 0x1f4   : > { %4437 = vmatpush1.bf16.msra.mxu1 %v6235_v29  ;;  %v6145_v29 = vld [vmem:[%s6914_s28 + $0x158] ss:$24 sps:$4 sm:$0xff]  }
 0x1f5   : > { %4438 = vmatprep.subr.bf16.mxu1 %v6243_v60  ;;  %v6150_v60 = vld [vmem:[%s6914_s28 + $0x12c] ss:$24 sps:$4 sm:$0xff]  }
 0x1f6   : > { %4402 = vmatpush2.bf16.msra.mxu0 %v6130_v59 }
 0x1f7   : > { %4403 = vmatprep.subr.bf16.mxu0 %v6135_v58 }
 0x1f8   : > { %4439 = vmatpush2.bf16.msra.mxu1 %v6241_v62  ;;  %v6153_v62 = vld [vmem:[%s6914_s28 + $0xfc] ss:$24 sps:$4 sm:$0xff]  }
 0x1f9   : > { %4440 = vmatprep.subr.bf16.mxu1 %v6249_v1  ;;  %v6156_v1 = vld [vmem:[%s6914_s28 + $0xcc] ss:$24 sps:$4 sm:$0xff]  }
 0x1fa   : > { %4404 = vmatpush2.bf16.msra.mxu0 %v6133_v61  ;;  %v6148_v61 = vld [vmem:[%s6914_s28 + $0x128] ss:$24 sps:$4 sm:$0xff]  }
 0x1fb   : > { %4405 = vmatprep.subr.bf16.mxu0 %v6138_v63  ;;  %v6151_v63 = vld [vmem:[%s6914_s28 + $0xf8] ss:$24 sps:$4 sm:$0xff]  }
 0x1fc   : > { %4441 = vmatpush2.bf16.msra.mxu1 %v6247_v3  ;;  %v6159_v3 = vld [vmem:[%s6914_s28 + $0x9c] ss:$24 sps:$4 sm:$0xff]  }
 0x1fd   : > { %4442 = vmatprep.subr.bf16.mxu1 %v6255_v7  ;;  %v6160_v7 = vld [vmem:[%s6914_s28 + $0x68] ss:$24 sps:$4 sm:$0xff]  }
 0x1fe   : > { %4406 = vmatpush2.bf16.msra.mxu0 %v6136_v2  ;;  %v6154_v2 = vld [vmem:[%s6914_s28 + $0xc8] ss:$24 sps:$4 sm:$0xff]  }
 0x1ff   : > { %4407 = vmatprep.subr.bf16.mxu0 %v6141_v5  ;;  %v6162_v5 = vld [vmem:[%s6914_s28 + $0x6c] ss:$24 sps:$4 sm:$0xff]  }
 0x200   : > { %4443 = vmatpush2.bf16.msra.mxu1 %v6253_v9  ;;  %v6163_v9 = vld [vmem:[%s6914_s28 + $0x38] ss:$24 sps:$4 sm:$0xff]  }
 0x201   : > { %4444 = vmatprep.subr.bf16.mxu1 %v6261_v14  ;;  %v6174_v14 = vld [vmem:[%s6914_s28 + $0x2ac] ss:$24 sps:$4 sm:$0xff]  }
 0x202   : > { %4408 = vmatpush2.bf16.msra.mxu0 %v6139_v8  ;;  %v6165_v8 = vld [vmem:[%s6914_s28 + $0x3c] ss:$24 sps:$4 sm:$0xff]  }
 0x203   : > { %4409 = vmatprep.subr.bf16.mxu0 %v6144_v11  ;;  %v6166_v11 = vld [vmem:[%s6914_s28 + $0x8] ss:$24 sps:$4 sm:$0xff]  }
 0x204   : > { %4445 = vmatpush2.bf16.msra.mxu1 %v6259_v15  ;;  %v6177_v15 = vld [vmem:[%s6914_s28 + $0x27c] ss:$24 sps:$4 sm:$0xff]  }
 0x205   : > { %4446 = vmatprep.subr.bf16.mxu1 %v6267_v20  ;;  %v6181_v20 = vld [vmem:[%s6914_s28 + $0x218] ss:$24 sps:$4 sm:$0xff]  }
 0x206   : > { %4410 = vmatpush2.bf16.msra.mxu0 %v6142_v37  ;;  %v6172_v37 = vld [vmem:[%s6914_s28 + $0x2a8] ss:$24 sps:$4 sm:$0xff]  }
 0x207   : > { %4465 = vmatprep.subr.bf16.mxu0 %v6147_v17  ;;  %v6180_v17 = vld [vmem:[%s6914_s28 + $0x24c] ss:$24 sps:$4 sm:$0xff]  }
 0x208   : > { %4447 = vmatpush2.bf16.msra.mxu1 %v6265_v21  ;;  %v6186_v21 = vld [vmem:[%s6914_s28 + $0x1ec] ss:$24 sps:$4 sm:$0xff]  }
 0x209   : > { %v2397_v28 = vpop.f32.mrf.mxu0  ;;  %4448 = vmatprep.subr.bf16.mxu1 %v6273_v30  ;;  %v6190_v30 = vld [vmem:[%s6914_s28 + $0x188] ss:$24 sps:$4 sm:$0xff]  }
 0x20a   : > { %v2398_v36 = vadd.f32 %v2397_v28, %v2355_v24  ;;  %v6187_v24 = vld [vmem:[%s6914_s28 + $0x1b8] ss:$24 sps:$4 sm:$0xff]   ;;  %v6192_v28 = vld [vmem:[%s6914_s28 + $0x18c] ss:$24 sps:$4 sm:$0xff]  }
 0x20b   : > { %v2399_v32 = vpop.f32.mrf.mxu0  ;;  %v2440_v33 = vpop.f32.mrf.mxu1 }
 0x20c   : > { %v2400_v35 = vadd.f32 %v2399_v32, %v2357_v23  ;;  %4449 = vmatpush2.bf16.msra.mxu1 %v6271_v31  ;;  %v2441_v51 = vadd.f32 %v2440_v33, %v2398_v36  ;;  %v6189_v23 = vld [vmem:[%s6914_s28 + $0x1bc] ss:$24 sps:$4 sm:$0xff]   ;;  %v6196_v32 = vld [vmem:[%s6914_s28 + $0x758] ss:$24 sps:$4 sm:$0xff]   ;;  %v6204_v33 = vld [vmem:[%s6914_s28 + $0x72c] ss:$24 sps:$4 sm:$0xff]  }
 0x20d   : > { %v2401_v38 = vpop.f32.mrf.mxu0  ;;  %v2442_v39 = vpop.f32.mrf.mxu1  ;;  %4450 = vmatprep.subr.bf16.mxu1 %v6279_v40  ;;  %v6198_v31 = vld [vmem:[%s6914_s28 + $0x75c] ss:$24 sps:$4 sm:$0xff]   ;;  %v6208_v36 = vld [vmem:[%s6914_s28 + $0x6f8] ss:$24 sps:$4 sm:$0xff]  }
 0x20e   : > { %v2402_v42 = vadd.f32 %v2401_v38, %v2359_v34  ;;  %v2443_v47 = vadd.f32 %v2442_v39, %v2400_v35  ;;  %v2580_v26 = vmax.f32 %v2441_v51, 0.0  ;;  %v6202_v34 = vld [vmem:[%s6914_s28 + $0x728] ss:$24 sps:$4 sm:$0xff]   ;;  %v6210_v35 = vld [vmem:[%s6914_s28 + $0x6fc] ss:$24 sps:$4 sm:$0xff]  }
 0x20f   : > { %v2403_v45 = vpop.f32.mrf.mxu0  ;;  %v2444_v46 = vpop.f32.mrf.mxu1  ;;  %v6216_v38 = vld [vmem:[%s6914_s28 + $0x6cc] ss:$24 sps:$4 sm:$0xff]   ;;  %v6214_v39 = vld [vmem:[%s6914_s28 + $0x6c8] ss:$24 sps:$4 sm:$0xff]   ;;  %v6222_v40 = vld [vmem:[%s6914_s28 + $0x69c] ss:$24 sps:$4 sm:$0xff]  }
 0x210   : > { %v2404_v49 = vadd.f32 %v2403_v45, %v2361_v41  ;;  %v2445_v50 = vadd.f32 %v2444_v46, %v2402_v42  ;;  %4451 = vmatpush2.bf16.msra.mxu1 %v6277_v43  ;;  %v2581_v56 = vmax.f32 %v2443_v47, 0.0  ;;  %v6220_v41 = vld [vmem:[%s6914_s28 + $0x698] ss:$24 sps:$4 sm:$0xff]   ;;  %v6228_v42 = vld [vmem:[%s6914_s28 + $0x66c] ss:$24 sps:$4 sm:$0xff]  }
 0x211   : > { %v2446_v52 = vpop.f32.mrf.mxu1  ;;  %4452 = vmatprep.subr.bf16.mxu1 %v6285_v53  ;;  %v6226_v43 = vld [vmem:[%s6914_s28 + $0x668] ss:$24 sps:$4 sm:$0xff]   ;;  %v6234_v45 = vld [vmem:[%s6914_s28 + $0x63c] ss:$24 sps:$4 sm:$0xff]   ;;  %v6232_v46 = vld [vmem:[%s6914_s28 + $0x638] ss:$24 sps:$4 sm:$0xff]  }
 0x212   : > { %v2447_v0 = vadd.f32 %v2446_v52, %v2404_v49  ;;  %v2586_v55 = vmax.f32 %v2445_v50, 0.0  ;;  %v6240_v47 = vld [vmem:[%s6914_s28 + $0x60c] ss:$24 sps:$4 sm:$0xff]   ;;  %v6238_v49 = vld [vmem:[%s6914_s28 + $0x608] ss:$24 sps:$4 sm:$0xff]  }
 0x213   : > { %v6246_v50 = vld [vmem:[%s6914_s28 + $0x8dc] ss:$24 sps:$4 sm:$0xff]   ;;  %v6244_v51 = vld [vmem:[%s6914_s28 + $0x8d8] ss:$24 sps:$4 sm:$0xff]   ;;  %v6252_v52 = vld [vmem:[%s6914_s28 + $0x8ac] ss:$24 sps:$4 sm:$0xff]  }
 0x214   : > { %v2587_v6 = vmax.f32 %v2447_v0, 0.0  ;;  %4453 = vmatpush2.bf16.msra.mxu1 %v6283_v54  ;;  %v7364_v58 = vpack.c.bf16 %v2586_v55, %v2580_v26  ;;  %v6250_v53 = vld [vmem:[%s6914_s28 + $0x8a8] ss:$24 sps:$4 sm:$0xff]   ;;  %v6258_v54 = vld [vmem:[%s6914_s28 + $0x87c] ss:$24 sps:$4 sm:$0xff]  }
 0x215   : > { %4508 = vmatprep.subr.bf16.mxu1 %v6291_v57  ;;  %v6256_v55 = vld [vmem:[%s6914_s28 + $0x878] ss:$24 sps:$4 sm:$0xff]   ;;  %v6264_v26 = vld [vmem:[%s6914_s28 + $0x84c] ss:$24 sps:$4 sm:$0xff]   ;;  %v743_v57 = vsub.s32 5, %v7268_v44 }
 0x216   : > { %v7361_v59 = vpack.c.bf16 %v2587_v6, %v2581_v56 }
 0x218   : > { %4411 = vmatprep.mubr.bf16.mxu0 %v7361_v59 }
 0x219   : > { %4412 = vmatmul.mubr.bf16.vlgmr.msra.gmra.mxu0 %v7364_v58 }
 0x21a   : > { %4466 = vmatpush1.bf16.msra.mxu0 %v6145_v29  ;;  %4497 = vmatprep.mubr.bf16.mxu0 %v7294_v25  ;;  %v739_v29 = vsub.s32 4, %v7268_v44 }
 0x21b   : > { %4467 = vmatprep.subr.bf16.mxu0 %v6150_v60  ;;  %v6262_v60 = vld [vmem:[%s6914_s28 + $0x848] ss:$24 sps:$4 sm:$0xff]  }
 0x21e   : > { %4468 = vmatpush1.bf16.msra.mxu0 %v6148_v61 }
 0x21f   : > { %4469 = vmatprep.subr.bf16.mxu0 %v6153_v62 }
 0x222   : > { %4470 = vmatpush1.bf16.msra.mxu0 %v6151_v63  ;;  %v6270_v63 = vld [vmem:[%s6914_s28 + $0x81c] ss:$24 sps:$4 sm:$0xff]  }
 0x223   : > { %4471 = vmatprep.subr.bf16.mxu0 %v6156_v1  ;;  %v744_v1 = vrot.slane %v7275_v48, %v743_v57  ;;  %v6319_v57 = vld [vmem:[%s6914_s28 + $0x368] ss:$24 sps:$4 sm:$0xff]  }
 0x226   : > { %4472 = vmatpush1.bf16.msra.mxu0 %v6154_v2  ;;  %v740_v2 = vrot.slane %v7275_v48, %v739_v29  ;;  %v6282_v48 = vld [vmem:[%s6914_s28 + $0x7bc] ss:$24 sps:$4 sm:$0xff]  }
 0x227   : > { %4473 = vmatprep.subr.bf16.mxu0 %v6159_v3  ;;  %v6268_v3 = vld [vmem:[%s6914_s28 + $0x818] ss:$24 sps:$4 sm:$0xff]   ;;  %v6327_v29 = vld [vmem:[%s6914_s28 + $0x33c] ss:$24 sps:$4 sm:$0xff]  }
 0x22a   : > { %4474 = vmatpush1.bf16.msra.mxu0 %v6157_v4 }
 0x22b   : > { %4475 = vmatprep.subr.bf16.mxu0 %v6162_v5 }
 0x22e   : > { %4476 = vmatpush1.bf16.msra.mxu0 %v6160_v7  ;;  %v6276_v7 = vld [vmem:[%s6914_s28 + $0x7ec] ss:$24 sps:$4 sm:$0xff]  }
 0x22f   : > { %4477 = vmatprep.subr.bf16.mxu0 %v6165_v8 }
 0x232   : > { %4478 = vmatpush1.bf16.msra.mxu0 %v6163_v9 }
 0x233   : > { %4479 = vmatprep.subr.bf16.mxu0 %v6168_v10 }
 0x236   : > { %4480 = vmatpush1.bf16.msra.mxu0 %v6166_v11 }
 0x237   : > { %4481 = vmatprep.subr.bf16.mxu0 %v6171_v12  ;;  %v6274_v12 = vld [vmem:[%s6914_s28 + $0x7e8] ss:$24 sps:$4 sm:$0xff]  }
 0x23a   : > { %4482 = vmatpush2.bf16.msra.mxu0 %v6169_v13 }
 0x23b   : > { %4483 = vmatprep.subr.bf16.mxu0 %v6174_v14 }
 0x23e   : > { %4484 = vmatpush2.bf16.msra.mxu0 %v6172_v37 }
 0x23f   : > { %4485 = vmatprep.subr.bf16.mxu0 %v6177_v15 }
 0x242   : > { %4486 = vmatpush2.bf16.msra.mxu0 %v6175_v16 }
 0x243   : > { %4487 = vmatprep.subr.bf16.mxu0 %v6180_v17 }
 0x246   : > { %4488 = vmatpush2.bf16.msra.mxu0 %v6178_v18 }
 0x247   : > { %4489 = vmatprep.subr.bf16.mxu0 %v6183_v19 }
 0x249   : > { %v2483_v0 = vpop.f32.mrf.mxu0 }
 0x24a   : > { %4490 = vmatpush2.bf16.msra.mxu0 %v6181_v20  ;;  %v2484_v9 = vadd.f32 %v2483_v0, %v740_v2  ;;  %v6310_v0 = vld [vmem:[%s6914_s28 + $0x3d0] ss:$24 sps:$4 sm:$0xff]  }
 0x24b   : > { %4491 = vmatprep.subr.bf16.mxu0 %v6186_v21  ;;  %v2485_v56 = vpop.f32.mrf.mxu0  ;;  %v2526_v6 = vpop.f32.mrf.mxu1  ;;  %v6280_v21 = vld [vmem:[%s6914_s28 + $0x7b8] ss:$24 sps:$4 sm:$0xff]  }
 0x24c   : > { %v2486_v8 = vadd.f32 %v2485_v56, %v744_v1  ;;  %v2527_v16 = vadd.f32 %v2526_v6, %v2484_v9  ;;  %v6321_v56 = vld [vmem:[%s6914_s28 + $0x36c] ss:$24 sps:$4 sm:$0xff]   ;;  %v6316_v6 = vld [vmem:[%s6914_s28 + $0x3a0] ss:$24 sps:$4 sm:$0xff]  }
 0x24d   : > { %v2487_v61 = vpop.f32.mrf.mxu0  ;;  %v2528_v62 = vpop.f32.mrf.mxu1  ;;  %v6340_v9 = vld [vmem:[%s6914_s28 + $0x5e0] ss:$24 sps:$4 sm:$0xff]  }
 0x24e   : > { %4492 = vmatpush2.bf16.msra.mxu0 %v6184_v22  ;;  %v2488_v44 = vadd.f32 %v2487_v61, %v740_v2  ;;  %v2529_v37 = vadd.f32 %v2528_v62, %v2486_v8  ;;  %v6330_v61 = vld [vmem:[%s6914_s28 + $0x344] ss:$24 sps:$4 sm:$0xff]   ;;  %v6325_v62 = vld [vmem:[%s6914_s28 + $0x338] ss:$24 sps:$4 sm:$0xff]   ;;  %v6336_v2 = vld [vmem:[%s6914_s28 + $0x314] ss:$24 sps:$4 sm:$0xff]  }
 0x24f   : > { %4493 = vmatprep.subr.bf16.mxu0 %v6189_v23  ;;  %v2489_v4 = vpop.f32.mrf.mxu0  ;;  %v2530_v5 = vpop.f32.mrf.mxu1  ;;  %v6337_v8 = vld [vmem:[%s6914_s28 + $0x5d8] ss:$24 sps:$4 sm:$0xff]  }
 0x250   : > { %v2490_v11 = vadd.f32 %v2489_v4, %v744_v1  ;;  %v2531_v15 = vadd.f32 %v2530_v5, %v2488_v44  ;;  %v6328_v1 = vld [vmem:[%s6914_s28 + $0x340] ss:$24 sps:$4 sm:$0xff]   ;;  %v6339_v4 = vld [vmem:[%s6914_s28 + $0x5dc] ss:$24 sps:$4 sm:$0xff]   ;;  %v6334_v5 = vld [vmem:[%s6914_s28 + $0x310] ss:$24 sps:$4 sm:$0xff]  }
 0x251   : > { %v2532_v13 = vpop.f32.mrf.mxu1  ;;  %v6345_v44 = vld [vmem:[%s6914_s28 + $0x5ac] ss:$24 sps:$4 sm:$0xff]  }
 0x252   : > { %4494 = vmatpush2.bf16.msra.mxu0 %v6187_v24  ;;  %v2533_v18 = vadd.f32 %v2532_v13, %v2490_v11  ;;  %v6288_v24 = vld [vmem:[%s6914_s28 + $0x78c] ss:$24 sps:$4 sm:$0xff]   ;;  %v6343_v11 = vld [vmem:[%s6914_s28 + $0x5a8] ss:$24 sps:$4 sm:$0xff]  }
 0x253   : > { %4495 = vmatprep.subr.bf16.mxu0 %v6192_v28  ;;  %v6346_v13 = vld [vmem:[%s6914_s28 + $0x5b0] ss:$24 sps:$4 sm:$0xff]  }
 0x256   : > { %4496 = vmatpush2.bf16.msra.mxu0 %v6190_v30 }
 0x257   : > { %4551 = vmatprep.subr.bf16.mxu0 %v6198_v31 }
 0x259   : > { %4498 = vmatmul.mubr.bf16.vlgmr.msra.gmra.mxu0 %v7296_v27 }
 0x25a   : > { %4552 = vmatpush1.bf16.msra.mxu0 %v6196_v32 }
 0x25b   : > { %4553 = vmatprep.subr.bf16.mxu0 %v6204_v33  ;;  %v6286_v33 = vld [vmem:[%s6914_s28 + $0x788] ss:$24 sps:$4 sm:$0xff]  }
 0x25e   : > { %4554 = vmatpush1.bf16.msra.mxu0 %v6202_v34 }
 0x25f   : > { %4555 = vmatprep.subr.bf16.mxu0 %v6210_v35 }
 0x262   : > { %4556 = vmatpush1.bf16.msra.mxu0 %v6208_v36  ;;  %v6289_v36 = vld [vmem:[%s6914_s28 + $0x458] ss:$24 sps:$4 sm:$0xff]  }
 0x263   : > { %4557 = vmatprep.subr.bf16.mxu0 %v6216_v38 }
 0x266   : > { %4558 = vmatpush1.bf16.msra.mxu0 %v6214_v39  ;;  %v6294_v39 = vld [vmem:[%s6914_s28 + $0x464] ss:$24 sps:$4 sm:$0xff]  }
 0x267   : > { %4559 = vmatprep.subr.bf16.mxu0 %v6222_v40  ;;  %v6292_v40 = vld [vmem:[%s6914_s28 + $0x460] ss:$24 sps:$4 sm:$0xff]  }
 0x26a   : > { %4560 = vmatpush1.bf16.msra.mxu0 %v6220_v41  ;;  %v6297_v41 = vld [vmem:[%s6914_s28 + $0x42c] ss:$24 sps:$4 sm:$0xff]  }
 0x26b   : > { %4561 = vmatprep.subr.bf16.mxu0 %v6228_v42  ;;  %v6300_v42 = vld [vmem:[%s6914_s28 + $0x434] ss:$24 sps:$4 sm:$0xff]  }
 0x26e   : > { %4562 = vmatpush1.bf16.msra.mxu0 %v6226_v43  ;;  %v6295_v43 = vld [vmem:[%s6914_s28 + $0x428] ss:$24 sps:$4 sm:$0xff]  }
 0x26f   : > { %4563 = vmatprep.subr.bf16.mxu0 %v6234_v45  ;;  %v6303_v45 = vld [vmem:[%s6914_s28 + $0x3fc] ss:$24 sps:$4 sm:$0xff]  }
 0x272   : > { %4564 = vmatpush1.bf16.msra.mxu0 %v6232_v46  ;;  %v6298_v46 = vld [vmem:[%s6914_s28 + $0x430] ss:$24 sps:$4 sm:$0xff]  }
 0x273   : > { %4565 = vmatprep.subr.bf16.mxu0 %v6240_v47  ;;  %v6306_v47 = vld [vmem:[%s6914_s28 + $0x404] ss:$24 sps:$4 sm:$0xff]  }
 0x276   : > { %4566 = vmatpush1.bf16.msra.mxu0 %v6238_v49  ;;  %v6301_v49 = vld [vmem:[%s6914_s28 + $0x3f8] ss:$24 sps:$4 sm:$0xff]  }
 0x277   : > { %4567 = vmatprep.subr.bf16.mxu0 %v6246_v50  ;;  %v6309_v50 = vld [vmem:[%s6914_s28 + $0x3cc] ss:$24 sps:$4 sm:$0xff]  }
 0x27a   : > { %4568 = vmatpush2.bf16.msra.mxu0 %v6244_v51  ;;  %v6304_v51 = vld [vmem:[%s6914_s28 + $0x400] ss:$24 sps:$4 sm:$0xff]  }
 0x27b   : > { %4569 = vmatprep.subr.bf16.mxu0 %v6252_v52  ;;  %v6312_v52 = vld [vmem:[%s6914_s28 + $0x3d4] ss:$24 sps:$4 sm:$0xff]  }
 0x27e   : > { %4570 = vmatpush2.bf16.msra.mxu0 %v6250_v53  ;;  %v6315_v53 = vld [vmem:[%s6914_s28 + $0x39c] ss:$24 sps:$4 sm:$0xff]  }
 0x27f   : > { %4571 = vmatprep.subr.bf16.mxu0 %v6258_v54  ;;  %v6318_v54 = vld [vmem:[%s6914_s28 + $0x3a4] ss:$24 sps:$4 sm:$0xff]  }
 0x282   : > { %4572 = vmatpush2.bf16.msra.mxu0 %v6256_v55  ;;  %v6313_v55 = vld [vmem:[%s6914_s28 + $0x398] ss:$24 sps:$4 sm:$0xff]  }
 0x283   : > { %4573 = vmatprep.subr.bf16.mxu0 %v6264_v26  ;;  %v6324_v26 = vld [vmem:[%s6914_s28 + $0x374] ss:$24 sps:$4 sm:$0xff]  }
 0x286   : > { %4574 = vmatpush2.bf16.msra.mxu0 %v6262_v60  ;;  %v6322_v60 = vld [vmem:[%s6914_s28 + $0x370] ss:$24 sps:$4 sm:$0xff]  }
 0x287   : > { %4575 = vmatprep.subr.bf16.mxu0 %v6270_v63  ;;  %v6333_v63 = vld [vmem:[%s6914_s28 + $0x30c] ss:$24 sps:$4 sm:$0xff]  }
 0x289   : > { %v2569_v10 = vpop.f32.mrf.mxu0 }
 0x28a   : > { %4576 = vmatpush2.bf16.msra.mxu0 %v6268_v3  ;;  %v2570_v22 = vadd.f32 %v2569_v10, %v2527_v16  ;;  %v6331_v3 = vld [vmem:[%s6914_s28 + $0x308] ss:$24 sps:$4 sm:$0xff]   ;;  %v6348_v10 = vld [vmem:[%s6914_s28 + $0x5b4] ss:$24 sps:$4 sm:$0xff]  }
 0x28b   : > { %v2571_v14 = vpop.f32.mrf.mxu0  ;;  %4577 = vmatprep.subr.bf16.mxu0 %v6276_v7  ;;  %v6342_v7 = vld [vmem:[%s6914_s28 + $0x5e4] ss:$24 sps:$4 sm:$0xff]   ;;  %v6360_v16 = vld [vmem:[%s6914_s28 + $0x554] ss:$24 sps:$4 sm:$0xff]  }
 0x28c   : > { %v2572_v19 = vadd.f32 %v2571_v14, %v2529_v37  ;;  %v2582_v34 = vmax.f32 %v2570_v22, 0.0  ;;  %v6354_v14 = vld [vmem:[%s6914_s28 + $0x584] ss:$24 sps:$4 sm:$0xff]  }
 0x28d   : > { %v2573_v17 = vpop.f32.mrf.mxu0  ;;  %v6357_v37 = vld [vmem:[%s6914_s28 + $0x54c] ss:$24 sps:$4 sm:$0xff]  }
 0x28e   : > { %v2574_v20 = vadd.f32 %v2573_v17, %v2531_v15  ;;  %4578 = vmatpush2.bf16.msra.mxu0 %v6274_v12  ;;  %v2583_v31 = vmax.f32 %v2572_v19, 0.0  ;;  %v6351_v12 = vld [vmem:[%s6914_s28 + $0x57c] ss:$24 sps:$4 sm:$0xff]   ;;  %v6352_v15 = vld [vmem:[%s6914_s28 + $0x580] ss:$24 sps:$4 sm:$0xff]  }
 0x28f   : > { %v2575_v23 = vpop.f32.mrf.mxu0  ;;  %4579 = vmatprep.subr.bf16.mxu0 %v6282_v48  ;;  %v6349_v48 = vld [vmem:[%s6914_s28 + $0x578] ss:$24 sps:$4 sm:$0xff]   ;;  %v6355_v17 = vld [vmem:[%s6914_s28 + $0x548] ss:$24 sps:$4 sm:$0xff]   ;;  %v6369_v22 = vld [vmem:[%s6914_s28 + $0x4ec] ss:$24 sps:$4 sm:$0xff]  }
 0x290   : > { %v2576_v28 = vadd.f32 %v2575_v23, %v2533_v18  ;;  %v2588_v30 = vmax.f32 %v2574_v20, 0.0  ;;  %v6363_v18 = vld [vmem:[%s6914_s28 + $0x51c] ss:$24 sps:$4 sm:$0xff]   ;;  %v6358_v19 = vld [vmem:[%s6914_s28 + $0x550] ss:$24 sps:$4 sm:$0xff]  }
 0x291   : > { %v6366_v20 = vld [vmem:[%s6914_s28 + $0x524] ss:$24 sps:$4 sm:$0xff]   ;;  %v6364_v23 = vld [vmem:[%s6914_s28 + $0x520] ss:$24 sps:$4 sm:$0xff]  }
 0x292   : > { %v2589_v32 = vmax.f32 %v2576_v28, 0.0  ;;  %4580 = vmatpush2.bf16.msra.mxu0 %v6280_v21  ;;  %v7439_v38 = vpack.c.bf16 %v2588_v30, %v2582_v34  ;;  %v6361_v21 = vld [vmem:[%s6914_s28 + $0x518] ss:$24 sps:$4 sm:$0xff]   ;;  %v6367_v28 = vld [vmem:[%s6914_s28 + $0x4e8] ss:$24 sps:$4 sm:$0xff]  }
 0x293   : > { %4581 = vmatprep.subr.bf16.mxu0 %v6288_v24  ;;  %v6372_v24 = vld [vmem:[%s6914_s28 + $0x4f4] ss:$24 sps:$4 sm:$0xff]  }
 0x294   : > { %v7436_v35 = vpack.c.bf16 %v2589_v32, %v2583_v31  ;;  %v6375_v30 = vld [vmem:[%s6914_s28 + $0x4bc] ss:$24 sps:$4 sm:$0xff]   ;;  %v6370_v31 = vld [vmem:[%s6914_s28 + $0x4f0] ss:$24 sps:$4 sm:$0xff]   ;;  %v6381_v34 = vld [vmem:[%s6914_s28 + $0x48c] ss:$24 sps:$4 sm:$0xff]  }
 0x295   : > { %v6378_v32 = vld [vmem:[%s6914_s28 + $0x4c4] ss:$24 sps:$4 sm:$0xff]  }
 0x296   : > { %4582 = vmatpush2.bf16.msra.mxu0 %v6286_v33  ;;  %4454 = vmatprep.mubr.bf16.mxu1 %v7436_v35  ;;  %v6373_v33 = vld [vmem:[%s6914_s28 + $0x4b8] ss:$24 sps:$4 sm:$0xff]  }
 0x297   : > { %4583 = vmatprep.mubr.bf16.mxu0 %v7436_v35  ;;  %4455 = vmatmul.mubr.bf16.vlgmr.msra.gmra.mxu1 %v7439_v38 }
 0x298   : > { %4509 = vmatpush1.bf16.msra.mxu1 %v6289_v36  ;;  %4540 = vmatprep.mubr.bf16.mxu1 %v7361_v59  ;;  %v6376_v36 = vld [vmem:[%s6914_s28 + $0x4c0] ss:$24 sps:$4 sm:$0xff]  }
 0x299   : > { %4584 = vmatmul.mubr.bf16.vlgmr.msra.gmra.mxu0 %v7439_v38  ;;  %4637 = vmatprep.subr.bf16.mxu0 %v6294_v39  ;;  %v6384_v39 = vld [vmem:[%s6914_s28 + $0x494] ss:$24 sps:$4 sm:$0xff]  }
 0x29a   : > { %4638 = vmatpush1.bf16.msra.mxu0 %v6292_v40  ;;  %4669 = vmatprep.mubr.bf16.mxu0 %v7361_v59  ;;  %v6307_v59 = vld [vmem:[%s6914_s28 + $0x3c8] ss:$24 sps:$4 sm:$0xff]  }
 0x29b   : > { %4510 = vmatprep.subr.bf16.mxu1 %v6297_v41  ;;  %4639 = vmatprep.subr.bf16.mxu0 %v6300_v42  ;;  %v6379_v40 = vld [vmem:[%s6914_s28 + $0x488] ss:$24 sps:$4 sm:$0xff]   ;;  %v6387_v41 = vld [vmem:[%s6914_s28 + $0x164] ss:$24 sps:$4 sm:$0xff]  }
 0x29c   : > { %4511 = vmatpush1.bf16.msra.mxu1 %v6295_v43  ;;  %v6382_v42 = vld [vmem:[%s6914_s28 + $0x490] ss:$24 sps:$4 sm:$0xff]   ;;  %v6385_v43 = vld [vmem:[%s6914_s28 + $0x160] ss:$24 sps:$4 sm:$0xff]  }
 0x29d   : > { %4512 = vmatprep.subr.bf16.mxu1 %v6303_v45  ;;  %v6390_v45 = vld [vmem:[%s6914_s28 + $0x134] ss:$24 sps:$4 sm:$0xff]  }
 0x29e   : > { %4640 = vmatpush1.bf16.msra.mxu0 %v6298_v46  ;;  %v6388_v46 = vld [vmem:[%s6914_s28 + $0x130] ss:$24 sps:$4 sm:$0xff]  }
 0x29f   : > { %4641 = vmatprep.subr.bf16.mxu0 %v6306_v47  ;;  %v6393_v47 = vld [vmem:[%s6914_s28 + $0x104] ss:$24 sps:$4 sm:$0xff]  }
 0x2a0   : > { %4513 = vmatpush1.bf16.msra.mxu1 %v6301_v49  ;;  %v6391_v49 = vld [vmem:[%s6914_s28 + $0x100] ss:$24 sps:$4 sm:$0xff]  }
 0x2a1   : > { %4514 = vmatprep.subr.bf16.mxu1 %v6309_v50  ;;  %v6396_v50 = vld [vmem:[%s6914_s28 + $0xd4] ss:$24 sps:$4 sm:$0xff]  }
 0x2a2   : > { %4642 = vmatpush1.bf16.msra.mxu0 %v6304_v51  ;;  %v6394_v51 = vld [vmem:[%s6914_s28 + $0xd0] ss:$24 sps:$4 sm:$0xff]  }
 0x2a3   : > { %4643 = vmatprep.subr.bf16.mxu0 %v6312_v52  ;;  %v6399_v52 = vld [vmem:[%s6914_s28 + $0xa4] ss:$24 sps:$4 sm:$0xff]  }
 0x2a4   : > { %4515 = vmatpush1.bf16.msra.mxu1 %v6307_v59  ;;  %v6400_v59 = vld [vmem:[%s6914_s28 + $0x70] ss:$24 sps:$4 sm:$0xff]  }
 0x2a5   : > { %4516 = vmatprep.subr.bf16.mxu1 %v6315_v53  ;;  %v6405_v53 = vld [vmem:[%s6914_s28 + $0x44] ss:$24 sps:$4 sm:$0xff]  }
 0x2a6   : > { %4644 = vmatpush1.bf16.msra.mxu0 %v6310_v0  ;;  %v6403_v0 = vld [vmem:[%s6914_s28 + $0x40] ss:$24 sps:$4 sm:$0xff]  }
 0x2a7   : > { %4645 = vmatprep.subr.bf16.mxu0 %v6318_v54  ;;  %v6408_v54 = vld [vmem:[%s6914_s28 + $0x14] ss:$24 sps:$4 sm:$0xff]  }
 0x2a8   : > { %4517 = vmatpush1.bf16.msra.mxu1 %v6313_v55  ;;  %v6406_v55 = vld [vmem:[%s6914_s28 + $0x10] ss:$24 sps:$4 sm:$0xff]  }
 0x2a9   : > { %4518 = vmatprep.subr.bf16.mxu1 %v6321_v56  ;;  %v6411_v56 = vld [vmem:[%s6914_s28 + $0x2e4] ss:$24 sps:$4 sm:$0xff]  }
 0x2aa   : > { %4646 = vmatpush1.bf16.msra.mxu0 %v6316_v6  ;;  %v6409_v6 = vld [vmem:[%s6914_s28 + $0x2e0] ss:$24 sps:$4 sm:$0xff]  }
 0x2ab   : > { %4647 = vmatprep.subr.bf16.mxu0 %v6324_v26  ;;  %v6414_v26 = vld [vmem:[%s6914_s28 + $0x2b4] ss:$24 sps:$4 sm:$0xff]  }
 0x2ac   : > { %4519 = vmatpush1.bf16.msra.mxu1 %v6319_v57  ;;  %v6412_v57 = vld [vmem:[%s6914_s28 + $0x2b0] ss:$24 sps:$4 sm:$0xff]  }
 0x2ad   : > { %4520 = vmatprep.subr.bf16.mxu1 %v6327_v29  ;;  %v6417_v29 = vld [vmem:[%s6914_s28 + $0x284] ss:$24 sps:$4 sm:$0xff]  }
 0x2ae   : > { %4648 = vmatpush1.bf16.msra.mxu0 %v6322_v60  ;;  %v6415_v60 = vld [vmem:[%s6914_s28 + $0x280] ss:$24 sps:$4 sm:$0xff]  }
 0x2af   : > { %4649 = vmatprep.subr.bf16.mxu0 %v6330_v61  ;;  %v6420_v61 = vld [vmem:[%s6914_s28 + $0x254] ss:$24 sps:$4 sm:$0xff]  }
 0x2b0   : > { %4521 = vmatpush1.bf16.msra.mxu1 %v6325_v62  ;;  %v6418_v62 = vld [vmem:[%s6914_s28 + $0x250] ss:$24 sps:$4 sm:$0xff]  }
 0x2b1   : > { %4522 = vmatprep.subr.bf16.mxu1 %v6333_v63  ;;  %v6423_v63 = vld [vmem:[%s6914_s28 + $0x224] ss:$24 sps:$4 sm:$0xff]  }
 0x2b2   : > { %4650 = vmatpush1.bf16.msra.mxu0 %v6328_v1  ;;  %v6421_v1 = vld [vmem:[%s6914_s28 + $0x220] ss:$24 sps:$4 sm:$0xff]  }
 0x2b3   : > { %4651 = vmatprep.subr.bf16.mxu0 %v6336_v2  ;;  %v6426_v2 = vld [vmem:[%s6914_s28 + $0x1f4] ss:$24 sps:$4 sm:$0xff]  }
 0x2b4   : > { %4523 = vmatpush1.bf16.msra.mxu1 %v6331_v3  ;;  %v6424_v3 = vld [vmem:[%s6914_s28 + $0x1f0] ss:$24 sps:$4 sm:$0xff]  }
 0x2b5   : > { %4524 = vmatprep.subr.bf16.mxu1 %v6339_v4  ;;  %v6429_v4 = vld [vmem:[%s6914_s28 + $0x1c4] ss:$24 sps:$4 sm:$0xff]  }
 0x2b6   : > { %4652 = vmatpush1.bf16.msra.mxu0 %v6334_v5  ;;  %v6427_v5 = vld [vmem:[%s6914_s28 + $0x1c0] ss:$24 sps:$4 sm:$0xff]  }
 0x2b7   : > { %4653 = vmatprep.subr.bf16.mxu0 %v6342_v7  ;;  %v6432_v7 = vld [vmem:[%s6914_s28 + $0x194] ss:$24 sps:$4 sm:$0xff]  }
 0x2b8   : > { %4525 = vmatpush2.bf16.msra.mxu1 %v6337_v8  ;;  %v6430_v8 = vld [vmem:[%s6914_s28 + $0x190] ss:$24 sps:$4 sm:$0xff]  }
 0x2b9   : > { %4526 = vmatprep.subr.bf16.mxu1 %v6345_v44  ;;  %v6435_v44 = vld [vmem:[%s6914_s28 + $0x764] ss:$24 sps:$4 sm:$0xff]  }
 0x2ba   : > { %4654 = vmatpush2.bf16.msra.mxu0 %v6340_v9  ;;  %v6433_v9 = vld [vmem:[%s6914_s28 + $0x760] ss:$24 sps:$4 sm:$0xff]  }
 0x2bb   : > { %4655 = vmatprep.subr.bf16.mxu0 %v6348_v10  ;;  %v6438_v10 = vld [vmem:[%s6914_s28 + $0x734] ss:$24 sps:$4 sm:$0xff]  }
 0x2bc   : > { %4527 = vmatpush2.bf16.msra.mxu1 %v6343_v11  ;;  %v6436_v11 = vld [vmem:[%s6914_s28 + $0x730] ss:$24 sps:$4 sm:$0xff]  }
 0x2bd   : > { %4528 = vmatprep.subr.bf16.mxu1 %v6351_v12  ;;  %v6441_v12 = vld [vmem:[%s6914_s28 + $0x704] ss:$24 sps:$4 sm:$0xff]  }
 0x2be   : > { %4656 = vmatpush2.bf16.msra.mxu0 %v6346_v13  ;;  %v6439_v13 = vld [vmem:[%s6914_s28 + $0x700] ss:$24 sps:$4 sm:$0xff]  }
 0x2bf   : > { %4657 = vmatprep.subr.bf16.mxu0 %v6354_v14  ;;  %v6444_v14 = vld [vmem:[%s6914_s28 + $0x6d4] ss:$24 sps:$4 sm:$0xff]  }
 0x2c0   : > { %4529 = vmatpush2.bf16.msra.mxu1 %v6349_v48  ;;  %v6442_v48 = vld [vmem:[%s6914_s28 + $0x6d0] ss:$24 sps:$4 sm:$0xff]  }
 0x2c1   : > { %4530 = vmatprep.subr.bf16.mxu1 %v6357_v37  ;;  %v6445_v37 = vld [vmem:[%s6914_s28 + $0x6a0] ss:$24 sps:$4 sm:$0xff]  }
 0x2c2   : > { %4658 = vmatpush2.bf16.msra.mxu0 %v6352_v15  ;;  %v6448_v15 = vld [vmem:[%s6914_s28 + $0x670] ss:$24 sps:$4 sm:$0xff]  }
 0x2c3   : > { %4659 = vmatprep.subr.bf16.mxu0 %v6360_v16  ;;  %v6453_v16 = vld [vmem:[%s6914_s28 + $0x644] ss:$24 sps:$4 sm:$0xff]  }
 0x2c4   : > { %4531 = vmatpush2.bf16.msra.mxu1 %v6355_v17  ;;  %v6451_v17 = vld [vmem:[%s6914_s28 + $0x640] ss:$24 sps:$4 sm:$0xff]  }
 0x2c5   : > { %4532 = vmatprep.subr.bf16.mxu1 %v6363_v18  ;;  %v6456_v18 = vld [vmem:[%s6914_s28 + $0x614] ss:$24 sps:$4 sm:$0xff]  }
 0x2c6   : > { %4660 = vmatpush2.bf16.msra.mxu0 %v6358_v19  ;;  %v6454_v19 = vld [vmem:[%s6914_s28 + $0x610] ss:$24 sps:$4 sm:$0xff]  }
 0x2c7   : > { %4661 = vmatprep.subr.bf16.mxu0 %v6366_v20  ;;  %v6459_v20 = vld [vmem:[%s6914_s28 + $0x8e4] ss:$24 sps:$4 sm:$0xff]  }
 0x2c8   : > { %4533 = vmatpush2.bf16.msra.mxu1 %v6361_v21  ;;  %v6457_v21 = vld [vmem:[%s6914_s28 + $0x8e0] ss:$24 sps:$4 sm:$0xff]  }
 0x2c9   : > { %4534 = vmatprep.subr.bf16.mxu1 %v6369_v22  ;;  %v6462_v22 = vld [vmem:[%s6914_s28 + $0x8b4] ss:$24 sps:$4 sm:$0xff]  }
 0x2ca   : > { %4662 = vmatpush2.bf16.msra.mxu0 %v6364_v23  ;;  %v6460_v23 = vld [vmem:[%s6914_s28 + $0x8b0] ss:$24 sps:$4 sm:$0xff]  }
 0x2cb   : > { %4663 = vmatprep.subr.bf16.mxu0 %v6372_v24  ;;  %v6465_v24 = vld [vmem:[%s6914_s28 + $0x884] ss:$24 sps:$4 sm:$0xff]  }
 0x2cc   : > { %4535 = vmatpush2.bf16.msra.mxu1 %v6367_v28  ;;  %v6463_v28 = vld [vmem:[%s6914_s28 + $0x880] ss:$24 sps:$4 sm:$0xff]  }
 0x2cd   : > { %4536 = vmatprep.subr.bf16.mxu1 %v6375_v30  ;;  %v6468_v30 = vld [vmem:[%s6914_s28 + $0x854] ss:$24 sps:$4 sm:$0xff]  }
 0x2ce   : > { %4664 = vmatpush2.bf16.msra.mxu0 %v6370_v31  ;;  %v6466_v31 = vld [vmem:[%s6914_s28 + $0x850] ss:$24 sps:$4 sm:$0xff]  }
 0x2cf   : > { %4665 = vmatprep.subr.bf16.mxu0 %v6378_v32  ;;  %v6471_v32 = vld [vmem:[%s6914_s28 + $0x824] ss:$24 sps:$4 sm:$0xff]  }
 0x2d0   : > { %4537 = vmatpush2.bf16.msra.mxu1 %v6373_v33  ;;  %v6469_v33 = vld [vmem:[%s6914_s28 + $0x820] ss:$24 sps:$4 sm:$0xff]  }
 0x2d1   : > { %4538 = vmatprep.subr.bf16.mxu1 %v6381_v34  ;;  %v6474_v34 = vld [vmem:[%s6914_s28 + $0x7f4] ss:$24 sps:$4 sm:$0xff]  }
 0x2d2   : > { %4666 = vmatpush2.bf16.msra.mxu0 %v6376_v36  ;;  %v6472_v36 = vld [vmem:[%s6914_s28 + $0x7f0] ss:$24 sps:$4 sm:$0xff]  }
 0x2d3   : > { %4667 = vmatprep.subr.bf16.mxu0 %v6384_v39  ;;  %v4370_v39 = vpop.f32.mrf.mxu1 }
 0x2d4   : > { %4539 = vmatpush2.bf16.msra.mxu1 %v6379_v40  ;;  %v6477_v40 = vld [vmem:[%s6914_s28 + $0x7c4] ss:$24 sps:$4 sm:$0xff]  }
 0x2d5   : > { %4594 = vmatprep.subr.bf16.mxu1 %v6387_v41  ;;  %v6475_v41 = vld [vmem:[%s6914_s28 + $0x7c0] ss:$24 sps:$4 sm:$0xff]  }
 0x2d6   : > { %4668 = vmatpush2.bf16.msra.mxu0 %v6382_v42  ;;  %v4372_v42 = vpop.f32.mrf.mxu1 }
 0x2d7   : > { %4541 = vmatmul.mubr.bf16.vlgmr.msra.gmra.mxu1 %v7364_v58 }
 0x2d8   : > { %4595 = vmatpush1.bf16.msra.mxu1 %v6385_v43  ;;  %4626 = vmatprep.mubr.bf16.mxu1 %v7294_v25  ;;  %v6397_v25 = vld [vmem:[%s6914_s28 + $0xa0] ss:$24 sps:$4 sm:$0xff]  }
 0x2d9   : > { %4670 = vmatmul.mubr.bf16.vlgmr.msra.gmra.mxu0 %v7364_v58  ;;  %4596 = vmatprep.subr.bf16.mxu1 %v6390_v45  ;;  %v6402_v58 = vld [vmem:[%s6914_s28 + $0x74] ss:$24 sps:$4 sm:$0xff]   ;;  %v4413_v43 = vpop.f32.mrf.mxu0 }
 0x2da   : > { %v6480_v45 = vld [vmem:[%s6914_s28 + $0x794] ss:$24 sps:$4 sm:$0xff]  }
 0x2dc   : > { %4597 = vmatpush1.bf16.msra.mxu1 %v6388_v46  ;;  %v6478_v46 = vld [vmem:[%s6914_s28 + $0x790] ss:$24 sps:$4 sm:$0xff]  }
 0x2dd   : > { %4598 = vmatprep.subr.bf16.mxu1 %v6393_v47  ;;  %v4374_v47 = vpop.f32.mrf.mxu1 }
 0x2e0   : > { %4599 = vmatpush1.bf16.msra.mxu1 %v6391_v49  ;;  %v4415_v49 = vpop.f32.mrf.mxu0 }
 0x2e1   : > { %4600 = vmatprep.subr.bf16.mxu1 %v6396_v50  ;;  %v4376_v50 = vpop.f32.mrf.mxu1 }
 0x2e4   : > { %4601 = vmatpush1.bf16.msra.mxu1 %v6394_v51  ;;  %v4417_v51 = vpop.f32.mrf.mxu0 }
 0x2e5   : > { %4602 = vmatprep.subr.bf16.mxu1 %v6399_v52  ;;  %v4414_v52 = vadd.f32 %v4413_v43, %v4370_v39  ;;  %v2594_v43 = vld [vmem:[#allocation2 + $0x50] sm:$0xff] }
 0x2e8   : > { %4603 = vmatpush1.bf16.msra.mxu1 %v6397_v25  ;;  %v2590_v25 = vld [vmem:[#allocation2 + $0x30] sm:$0xff] }
 0x2e9   : > { %4604 = vmatprep.subr.bf16.mxu1 %v6402_v58 }
 0x2ec   : > { %4605 = vmatpush1.bf16.msra.mxu1 %v6400_v59  ;;  %v4416_v59 = vadd.f32 %v4415_v49, %v4372_v42  ;;  %v2595_v49 = vld [vmem:[#allocation2 + $0x20] sm:$0xff] }
 0x2ed   : > { %4606 = vmatprep.subr.bf16.mxu1 %v6405_v53 }
 0x2f0   : > { %4607 = vmatpush1.bf16.msra.mxu1 %v6403_v0  ;;  %v4419_v0 = vpop.f32.mrf.mxu0 }
 0x2f1   : > { %4608 = vmatprep.subr.bf16.mxu1 %v6408_v54  ;;  %v2591_v54 = vld [vmem:[#allocation2] sm:$0xff] }
 0x2f4   : > { %4609 = vmatpush1.bf16.msra.mxu1 %v6406_v55 }
 0x2f5   : > { %4610 = vmatprep.subr.bf16.mxu1 %v6411_v56  ;;  %v4418_v56 = vadd.f32 %v4417_v51, %v4374_v47 }
 0x2f8   : > { %4611 = vmatpush2.bf16.msra.mxu1 %v6409_v6 }
 0x2f9   : > { %4612 = vmatprep.subr.bf16.mxu1 %v6414_v26 }
 0x2fc   : > { %4613 = vmatpush2.bf16.msra.mxu1 %v6412_v57  ;;  %v2596_v57 = vld [vmem:[#allocation2 + $0x8] sm:$0xff] }
 0x2fd   : > { %4614 = vmatprep.subr.bf16.mxu1 %v6417_v29 }
 0x300   : > { %4615 = vmatpush2.bf16.msra.mxu1 %v6415_v60  ;;  %v4420_v60 = vadd.f32 %v4419_v0, %v4376_v50 }
 0x301   : > { %4616 = vmatprep.subr.bf16.mxu1 %v6420_v61 }
 0x304   : > { %4617 = vmatpush2.bf16.msra.mxu1 %v6418_v62 }
 0x305   : > { %4618 = vmatprep.subr.bf16.mxu1 %v6423_v63  ;;  %v2597_v63 = vld [vmem:[#allocation2 + $0x38] sm:$0xff] }
 0x308   : > { %4619 = vmatpush2.bf16.msra.mxu1 %v6421_v1 }
 0x309   : > { %4620 = vmatprep.subr.bf16.mxu1 %v6426_v2 }
 0x30c   : > { %4621 = vmatpush2.bf16.msra.mxu1 %v6424_v3 }
 0x30d   : > { %4622 = vmatprep.subr.bf16.mxu1 %v6429_v4 }
 0x310   : > { %4623 = vmatpush2.bf16.msra.mxu1 %v6427_v5 }
 0x311   : > { %4624 = vmatprep.subr.bf16.mxu1 %v6432_v7 }
 0x314   : > { %4625 = vmatpush2.bf16.msra.mxu1 %v6430_v8 }
 0x315   : > { %4680 = vmatprep.subr.bf16.mxu1 %v6435_v44 }
 0x317   : > { %4627 = vmatmul.mubr.bf16.vlgmr.msra.gmra.mxu1 %v7296_v27  ;;  %v6447_v27 = vld [vmem:[%s6914_s28 + $0x6a4] ss:$24 sps:$4 sm:$0xff]  }
 0x318   : > { %4681 = vmatpush1.bf16.msra.mxu1 %v6433_v9  ;;  %4712 = vmatprep.mubr.bf16.mxu1 %v7436_v35  ;;  %v6450_v35 = vld [vmem:[%s6914_s28 + $0x674] ss:$24 sps:$4 sm:$0xff]  }
 0x319   : > { %4682 = vmatprep.subr.bf16.mxu1 %v6438_v10  ;;  %v4499_v4 = vpop.f32.mrf.mxu0 }
 0x31b   : > { %v4501_v5 = vpop.f32.mrf.mxu0 }
 0x31c   : > { %4683 = vmatpush1.bf16.msra.mxu1 %v6436_v11 }
 0x31d   : > { %4684 = vmatprep.subr.bf16.mxu1 %v6441_v12  ;;  %v4503_v7 = vpop.f32.mrf.mxu0  ;;  %v2592_v12 = vld [vmem:[#allocation2 + $0x58] sm:$0xff] }
 0x31f   : > { %v4505_v8 = vpop.f32.mrf.mxu0 }
 0x320   : > { %4685 = vmatpush1.bf16.msra.mxu1 %v6439_v13 }
 0x321   : > { %4686 = vmatprep.subr.bf16.mxu1 %v6444_v14 }
 0x324   : > { %4687 = vmatpush1.bf16.msra.mxu1 %v6442_v48 }
 0x325   : > { %4688 = vmatprep.subr.bf16.mxu1 %v6447_v27 }
 0x328   : > { %4689 = vmatpush1.bf16.msra.mxu1 %v6445_v37  ;;  %v2593_v37 = vld [vmem:[#allocation2 + $0x18] sm:$0xff] }
 0x329   : > { %4690 = vmatprep.subr.bf16.mxu1 %v6450_v35 }
 0x32c   : > { %4691 = vmatpush1.bf16.msra.mxu1 %v6448_v15 }
 0x32d   : > { %4692 = vmatprep.subr.bf16.mxu1 %v6453_v16 }
 0x330   : > { %4693 = vmatpush1.bf16.msra.mxu1 %v6451_v17 }
 0x331   : > { %4694 = vmatprep.subr.bf16.mxu1 %v6456_v18  ;;  %v2598_v18 = vld [vmem:[#allocation2 + $0x28] sm:$0xff] }
 0x334   : > { %4695 = vmatpush1.bf16.msra.mxu1 %v6454_v19 }
 0x335   : > { %4696 = vmatprep.subr.bf16.mxu1 %v6459_v20 }
 0x338   : > { %4697 = vmatpush2.bf16.msra.mxu1 %v6457_v21 }
 0x339   : > { %4698 = vmatprep.subr.bf16.mxu1 %v6462_v22 }
 0x33c   : > { %4699 = vmatpush2.bf16.msra.mxu1 %v6460_v23 }
 0x33d   : > { %4700 = vmatprep.subr.bf16.mxu1 %v6465_v24  ;;  %v2599_v24 = vld [vmem:[#allocation2 + $0x48] sm:$0xff] }
 0x340   : > { %4701 = vmatpush2.bf16.msra.mxu1 %v6463_v28 }
 0x341   : > { %4702 = vmatprep.subr.bf16.mxu1 %v6468_v30 }
 0x344   : > { %4703 = vmatpush2.bf16.msra.mxu1 %v6466_v31 }
 0x345   : > { %4704 = vmatprep.subr.bf16.mxu1 %v6471_v32 }
 0x348   : > { %4705 = vmatpush2.bf16.msra.mxu1 %v6469_v33 }
 0x349   : > { %4706 = vmatprep.subr.bf16.mxu1 %v6474_v34 }
 0x34c   : > { %4707 = vmatpush2.bf16.msra.mxu1 %v6472_v36 }
 0x34d   : > { %4708 = vmatprep.subr.bf16.mxu1 %v6477_v40 }
 0x350   : > { %4709 = vmatpush2.bf16.msra.mxu1 %v6475_v41 }
 0x351   : > { %4710 = vmatprep.subr.bf16.mxu1 %v6480_v45 }
 0x354   : > { %4711 = vmatpush2.bf16.msra.mxu1 %v6478_v46 }
 0x357   : > { %4713 = vmatmul.mubr.bf16.vlgmr.msra.gmra.mxu1 %v7439_v38  ;;  %v4456_v58 = vpop.f32.mrf.mxu1 }
 0x358   : > { %v4457_v53 = vadd.f32 %v4456_v58, %v4414_v52 }
 0x359   : > { %v4458_v55 = vpop.f32.mrf.mxu1  ;;  %v4585_v44 = vpop.f32.mrf.mxu0 }
 0x35a   : > { %v4723_v6 = vadd.f32 %v4457_v53, %v2590_v25  ;;  %v4459_v26 = vadd.f32 %v4458_v55, %v4416_v59  ;;  %v2600_v59 = vld [vmem:[#allocation2 + $0x10] sm:$0xff] }
 0x35b   : > { %v4460_v29 = vpop.f32.mrf.mxu1  ;;  %v4587_v9 = vpop.f32.mrf.mxu0 }
 0x35c   : > { %4735 = vst [vmem:[#allocation2 + $0x30] sm:$0xff] %v4723_v6  ;;  %v4724_v61 = vadd.f32 %v4459_v26, %v2591_v54  ;;  %v4461_v62 = vadd.f32 %v4460_v29, %v4418_v56  ;;  %v2601_v56 = vld [vmem:[#allocation2 + $0x40] sm:$0xff] }
 0x35d   : > { %v4462_v1 = vpop.f32.mrf.mxu1  ;;  %v4589_v27 = vpop.f32.mrf.mxu0 }
 0x35e   : > { %4736 = vst [vmem:[#allocation2] sm:$0xff] %v4724_v61  ;;  %v4729_v38 = vadd.f32 %v4461_v62, %v2596_v57  ;;  %v4463_v2 = vadd.f32 %v4462_v1, %v4420_v60 }
 0x35f   : > { %v4591_v23 = vpop.f32.mrf.mxu0 }
 0x360   : > { %4741 = vst [vmem:[#allocation2 + $0x8] sm:$0xff] %v4729_v38  ;;  %v4730_v3 = vadd.f32 %v4463_v2, %v2597_v63 }
 0x362   : > { %4742 = vst [vmem:[#allocation2 + $0x38] sm:$0xff] %v4730_v3 }
 0x397   : > { %v4542_v10 = vpop.f32.mrf.mxu1 }
 0x398   : > { %v4543_v11 = vadd.f32 %v4542_v10, %v4499_v4 }
 0x399   : > { %v4544_v13 = vpop.f32.mrf.mxu1  ;;  %v4671_v34 = vpop.f32.mrf.mxu0 }
 0x39a   : > { %v4586_v14 = vadd.f32 %v4585_v44, %v4543_v11  ;;  %v4545_v48 = vadd.f32 %v4544_v13, %v4501_v5 }
 0x39b   : > { %v4546_v35 = vpop.f32.mrf.mxu1  ;;  %v4673_v39 = vpop.f32.mrf.mxu0 }
 0x39c   : > { %v4725_v15 = vadd.f32 %v4586_v14, %v2592_v12  ;;  %v4588_v16 = vadd.f32 %v4587_v9, %v4545_v48  ;;  %v4547_v17 = vadd.f32 %v4546_v35, %v4503_v7 }
 0x39d   : > { %v4548_v19 = vpop.f32.mrf.mxu1  ;;  %v4675_v42 = vpop.f32.mrf.mxu0 }
 0x39e   : > { %4737 = vst [vmem:[#allocation2 + $0x58] sm:$0xff] %v4725_v15  ;;  %v4726_v20 = vadd.f32 %v4588_v16, %v2593_v37  ;;  %v4590_v21 = vadd.f32 %v4589_v27, %v4547_v17  ;;  %v4549_v22 = vadd.f32 %v4548_v19, %v4505_v8 }
 0x39f   : > { %v4677_v58 = vpop.f32.mrf.mxu0 }
 0x3a0   : > { %4738 = vst [vmem:[#allocation2 + $0x18] sm:$0xff] %v4726_v20  ;;  %v4731_v28 = vadd.f32 %v4590_v21, %v2598_v18  ;;  %v4592_v30 = vadd.f32 %v4591_v23, %v4549_v22 }
 0x3a2   : > { %4743 = vst [vmem:[#allocation2 + $0x28] sm:$0xff] %v4731_v28  ;;  %v4732_v31 = vadd.f32 %v4592_v30, %v2599_v24 }
 0x3a4   : > { %4744 = vst [vmem:[#allocation2 + $0x48] sm:$0xff] %v4732_v31 }
 0x3d7   : > { %v4628_v32 = vpop.f32.mrf.mxu1 }
 0x3d8   : > { %v4672_v41 = vadd.f32 %v4671_v34, %v4628_v32 }
 0x3d9   : > { %v4630_v33 = vpop.f32.mrf.mxu1 }
 0x3da   : > { %v4674_v46 = vadd.f32 %v4673_v39, %v4630_v33 }
 0x3db   : > { %v4632_v36 = vpop.f32.mrf.mxu1 }
 0x3dc   : > { %v4676_v51 = vadd.f32 %v4675_v42, %v4632_v36 }
 0x3dd   : > { %v4634_v40 = vpop.f32.mrf.mxu1 }
 0x3de   : > { %v4678_v0 = vadd.f32 %v4677_v58, %v4634_v40 }
 0x417   : > { %v4714_v45 = vpop.f32.mrf.mxu1 }
 0x418   : > { %v4715_v47 = vadd.f32 %v4714_v45, %v4672_v41 }
 0x419   : > { %v4716_v50 = vpop.f32.mrf.mxu1 }
 0x41a   : > { %v4727_v52 = vadd.f32 %v4715_v47, %v2594_v43  ;;  %v4717_v25 = vadd.f32 %v4716_v50, %v4674_v46 }
 0x41b   : > { %v4718_v53 = vpop.f32.mrf.mxu1 }
 0x41c   : > { %4739 = vst [vmem:[#allocation2 + $0x50] sm:$0xff] %v4727_v52  ;;  %v4728_v54 = vadd.f32 %v4717_v25, %v2595_v49  ;;  %v4719_v55 = vadd.f32 %v4718_v53, %v4676_v51 }
 0x41d   : > { %v4720_v6 = vpop.f32.mrf.mxu1 }
 0x41e   : > { %4740 = vst [vmem:[#allocation2 + $0x20] sm:$0xff] %v4728_v54  ;;  %v4733_v26 = vadd.f32 %v4719_v55, %v2600_v59  ;;  %v4721_v57 = vadd.f32 %v4720_v6, %v4678_v0  ;;  %4750 = sbr.rel (%p5503_p6) target bundleno = 1067 (0x42b), region = 68 }
 0x420   : > { %4745 = vst [vmem:[#allocation2 + $0x10] sm:$0xff] %v4733_v26  ;;  %v4734_v29 = vadd.f32 %v4721_v57, %v2601_v56 }
 0x422   : > { %4746 = vst [vmem:[#allocation2 + $0x40] sm:$0xff] %v4734_v29 }
 0x423   : > { %v4751_v60 = vld [vmem:[#allocation2 + $0x30] sm:$0xff]  ;;  %v4752_v61 = vld [vmem:[#allocation2] sm:$0xff]  ;;  %v4753_v62 = vld [vmem:[#allocation2 + $0x58] sm:$0xff] }
 0x424   : > { %4763 = vst [vmem:[#allocation12] sm:$0xff] %v4751_v60  ;;  %4764 = vst [vmem:[#allocation12 + $0x8] sm:$0xff] %v4752_v61  ;;  %v4754_v63 = vld [vmem:[#allocation2 + $0x18] sm:$0xff]  ;;  %v4755_v1 = vld [vmem:[#allocation2 + $0x50] sm:$0xff] }
 0x425   : > { %4765 = vst [vmem:[#allocation12 + $0x10] sm:$0xff] %v4753_v62  ;;  %v4756_v38 = vld [vmem:[#allocation2 + $0x20] sm:$0xff]  ;;  %4766 = vst [vmem:[#allocation12 + $0x18] sm:$0xff] %v4754_v63  ;;  %v4757_v2 = vld [vmem:[#allocation2 + $0x8] sm:$0xff] }
 0x426   : > { %4767 = vst [vmem:[#allocation12 + $0x20] sm:$0xff] %v4755_v1  ;;  %4768 = vst [vmem:[#allocation12 + $0x28] sm:$0xff] %v4756_v38  ;;  %v4758_v3 = vld [vmem:[#allocation2 + $0x38] sm:$0xff]  ;;  %v4759_v4 = vld [vmem:[#allocation2 + $0x28] sm:$0xff] }
 0x427   : > { %4769 = vst [vmem:[#allocation12 + $0x30] sm:$0xff] %v4757_v2  ;;  %4770 = vst [vmem:[#allocation12 + $0x38] sm:$0xff] %v4758_v3  ;;  %v4760_v5 = vld [vmem:[#allocation2 + $0x48] sm:$0xff]  ;;  %v4761_v7 = vld [vmem:[#allocation2 + $0x10] sm:$0xff] }
 0x428   : > { %4771 = vst [vmem:[#allocation12 + $0x40] sm:$0xff] %v4759_v4  ;;  %4772 = vst [vmem:[#allocation12 + $0x48] sm:$0xff] %v4760_v5 }
 0x429   : > { %v4762_v8 = vld [vmem:[#allocation2 + $0x40] sm:$0xff]  ;;  %4773 = vst [vmem:[#allocation12 + $0x50] sm:$0xff] %v4761_v7 }
 0x42a   : > { %4774 = vst [vmem:[#allocation12 + $0x58] sm:$0xff] %v4762_v8 }
 0x42b PF: > { %p5557_p2 = scmp.eq.s32.totalorder %s6781_s24, 3  ;;  %s6719_s21 = smov [#allocation12]  }
 0x42c   : > { %s4785_s26 = sshll.u32 %s6719_s21, 4  ;;  %s4786_s26 = int_to_ptr.vmem [resolvable:$true] %s4785_s26 }
 0x42d   : > { %s6617_s10 = scalar_lea.vmem %s4786_s26, 1536  ;;  %p6624_p13 = scmp.lt.s32.totalorder %s4786_s26, %s4786_s26 }
 0x42e   : > { %p6618_p5 = scmp.ne.s32.totalorder %s4786_s26, %s6617_s10  ;;  %p6625_p4 = scmp.lt.s32.totalorder %s6617_s10, %s6617_s10 }
 0x430   : > { %p6619_p7 = pnand %p6618_p5, %p5557_p2  ;;  %p6626_p3 = por %p6625_p4, %p6624_p13 }
 0x432   : > { %p6620_p9 = pneg %p6619_p7 }
 0x434   : > { %p6627_p0 = pnand %p6626_p3, %p6620_p9 }
 0x436   : > { %6630 = shalt.err (!%p6627_p0)
}
 0x437   : > { %s6720_s11 = smov 768   ;;  %s6721_s16 = smov 48  }
 0x438   : > { %5531 = dma.vmem_to_hbm [thread:$0]  (%p5557_p2), %s4786_s26, 1536, %s7615_s5, [#allocation5], %s6720_s11, %s6720_s11, %s6721_s16  }
 0x439   : > { %6682 = dma.done.wait (%p5557_p2), [#allocation5], 1536  }
 0x43a   : > { %6684 = vsyncadd (%p5557_p2), [#allocation5], 4294965760 }
 0x43b PF: > { %s23_s23 = sadd.s32 1, %s6707_s23   ;;  %s7638_s17 = sld [smem:[#allocation19_spill]] }
 0x43c   : > { %p20_p10 = scmp.ge.s32.totalorder %s23_s23, 6   ;;  %s7639_s29 = sld [smem:[#allocation18_spill]] }
 0x43d   : > { %s7640_s18 = smov %s6691_s19  ;;  %s7641_s19 = smov %s6695_s20 }
 0x43e   : > { %s7643_s21 = smov %s6703_s22  ;;  %22 = sbr.rel (!%p20_p10) target bundleno = 11 (0xb), region = 120 }
 0x441   : > { %s7642_s20 = smov %s7638_s17 }
 0x442   : > { %s7644_s22 = smov %s7639_s29 }
 0x443   :  { %4801 = vsyncpa [#allocation4], 1 }
 0x444   :  { %4803 = vsyncpa [#allocation4 + $0x1], 1 }
 0x445   :  { %4804 = vsyncpa [#allocation7], 1 }
 0x446   :  { %4806 = vsyncpa [#allocation7 + $0x1], 1 }
 0x447   :  { %4807 = vsyncpa [#allocation10], 1 }
 0x448   :  { %4809 = vsyncpa [#allocation10 + $0x1], 1 }
 0x449   :  { %4810 = vsyncpa [#allocation5], 1 }
 0x44a   :  { %4812 = vsyncpa [#allocation5 + $0x1], 1 }

</bundles_post_ra>
